<compile_context>
chip_gen: v7x
topology: tpu7x:2x2x1
jax: 0.10.0
libtpu: 0.0.40
codegen_flags: <defaults>
</compile_context>

<pallas_src>
import functools

import jax
import jax.numpy as jnp
from jax.experimental import pallas as pl
from jax.experimental.pallas import tpu as pltpu

BN_EPS = 1e-5
# 40 MiB: comfortably holds the largest fused block (~11 MiB of resident refs
# for layer3 + temporaries) while staying well under v7x's 64 MiB physical VMEM
# (v5e/v6e have 128 MiB).
VMEM_LIMIT_BYTES = 40 * 1024 * 1024


# ----------------------------------------------------------------------------
# Geometry of the guarded flat layout
# ----------------------------------------------------------------------------
def _make_geom(n, h, w):
    hp, wp = h + 2, w + 2                       # pad=1 halo
    rows_p = n * hp * wp                        # padded spatial positions
    guard = ((wp + 1 + 7) // 8) * 8             # >= wp+1, sublane aligned
    return dict(N=n, H=h, W=w, HP=hp, WP=wp, ROWS_P=rows_p,
                GUARD=guard, ROWS_G=rows_p + 2 * guard, NHW=n * h * w)


# ----------------------------------------------------------------------------
# In-kernel helpers (traced inside the Pallas kernels)
# ----------------------------------------------------------------------------
def _bn_train(acc, mask, gamma, beta, nhw):
    """BatchNorm2d (training mode): biased batch stats over the NHW interior.

    One-pass statistics; halo/guard rows are masked out of the sums.
    Halo rows of the returned tensor are NOT re-zeroed (caller masks).
    """
    accm = acc * mask
    s1 = jnp.sum(accm, axis=0, keepdims=True)
    s2 = jnp.sum(accm * accm, axis=0, keepdims=True)
    inv_n = 1.0 / nhw
    mean = s1 * inv_n
    var = jnp.maximum(s2 * inv_n - mean * mean, 0.0)
    scale = jax.lax.rsqrt(var + BN_EPS) * gamma
    return (accm - mean) * scale + beta


def _conv_from_guarded(src_ref, w_ref, *, ksize, geom):
    """KxK stride-1 conv of a guarded-flat activation as row-shifted matmuls.

    src_ref: (ROWS_G, cin) f32 ref with zero halo + zero guards.
    w_ref:   (ksize*ksize*cin, cout) bf16 ref.
    Returns the f32 accumulator over the ROWS_P padded positions (halo rows
    hold junk that the caller masks away before/after BN).
    """
    guard, rows_p, wp = geom["GUARD"], geom["ROWS_P"], geom["WP"]
    cin = src_ref.shape[-1]
    cout = w_ref.shape[-1]
    if ksize == 1:
        lhs = src_ref[guard:guard + rows_p, :].astype(jnp.bfloat16)
        return jnp.dot(lhs, w_ref[...], preferred_element_type=jnp.float32)
    pad = ksize // 2
    acc = jnp.zeros((rows_p, cout), jnp.float32)
    for dy in range(ksize):
        for dx in range(ksize):
            shift = (dy - pad) * wp + (dx - pad)
            start = guard + shift
            lhs = src_ref[start:start + rows_p, :].astype(jnp.bfloat16)
            t = dy * ksize + dx
            acc = acc + jnp.dot(lhs, w_ref[t * cin:(t + 1) * cin, :],
                                preferred_element_type=jnp.float32)
    return acc


def _store_guarded(dst_ref, interior, geom):
    """Write (ROWS_P, C) interior + zero the guard rows of a (ROWS_G, C) ref."""
    guard, rows_p, rows_g = geom["GUARD"], geom["ROWS_P"], geom["ROWS_G"]
    c = dst_ref.shape[-1]
    zeros = jnp.zeros((guard, c), dst_ref.dtype)
    dst_ref[0:guard, :] = zeros
    dst_ref[guard + rows_p:rows_g, :] = zeros
    dst_ref[guard:guard + rows_p, :] = interior.astype(dst_ref.dtype)


# ----------------------------------------------------------------------------
# Kernels
# ----------------------------------------------------------------------------
def _stem_kernel(lhs_ref, mask_ref, w_ref, g_ref, b_ref, out_ref, *, geom):
    """Stem: single (rows, 9*cin) @ (9*cin, 64) matmul + BN(train) + ReLU."""
    mask = mask_ref[...]
    acc = jnp.dot(lhs_ref[...], w_ref[...], preferred_element_type=jnp.float32)
    y = _bn_train(acc, mask, g_ref[...], b_ref[...], geom["NHW"])
    y = jnp.maximum(y, 0.0) * mask          # re-zero halo => valid padding for next conv
    _store_guarded(out_ref, y, geom)


def _res_block_kernel(x_ref, mask_ref, w1_ref, g1_ref, b1_ref,
                      w2_ref, g2_ref, b2_ref, *rest, has_ds, geom):
    """Fully fused residual block: conv1+BN+ReLU, conv2+BN, (1x1 ds+BN), add, ReLU."""
    if has_ds:
        wd_ref, gd_ref, bd_ref, out_ref, h_ref = rest
    else:
        out_ref, h_ref = rest
    guard, rows_p, nhw = geom["GUARD"], geom["ROWS_P"], geom["NHW"]
    mask = mask_ref[...]

    # conv1 3x3 + BN + ReLU -> guarded VMEM scratch (zero halo/guards) for conv2.
    acc1 = _conv_from_guarded(x_ref, w1_ref, ksize=3, geom=geom)
    y1 = jnp.maximum(_bn_train(acc1, mask, g1_ref[...], b1_ref[...], nhw), 0.0) * mask
    _store_guarded(h_ref, y1, geom)

    # conv2 3x3 + BN (ReLU applied after the residual add).
    acc2 = _conv_from_guarded(h_ref, w2_ref, ksize=3, geom=geom)
    y2 = _bn_train(acc2, mask, g2_ref[...], b2_ref[...], nhw)

    # Residual branch: 1x1 conv + BN when channels change, else identity.
    if has_ds:
        accd = _conv_from_guarded(x_ref, wd_ref, ksize=1, geom=geom)
        res = _bn_train(accd, mask, gd_ref[...], bd_ref[...], nhw)
    else:
        res = x_ref[guard:guard + rows_p, :]

    out = jnp.maximum(y2 + res, 0.0) * mask
    _store_guarded(out_ref, out, geom)


# ----------------------------------------------------------------------------
# pallas_call wrappers (no grid: tiny activations, everything VMEM-resident)
# ----------------------------------------------------------------------------
def _call_stem(stem_lhs, mask, p, geom):
    cout = p["w"].shape[-1]
    kernel = functools.partial(_stem_kernel, geom=geom)
    return pl.pallas_call(
        kernel,
        out_shape=jax.ShapeDtypeStruct((geom["ROWS_G"], cout), jnp.float32),
        compiler_params=pltpu.CompilerParams(vmem_limit_bytes=VMEM_LIMIT_BYTES),
    )(stem_lhs, mask, p["w"], p["gamma"], p["beta"])


def _call_res_block(xg, mask, blk, geom):
    planes = blk["conv1"]["w"].shape[-1]
    has_ds = "downsample" in blk
    args = [xg, mask,
            blk["conv1"]["w"], blk["conv1"]["gamma"], blk["conv1"]["beta"],
            blk["conv2"]["w"], blk["conv2"]["gamma"], blk["conv2"]["beta"]]
    if has_ds:
        ds = blk["downsample"]
        args += [ds["w"], ds["gamma"], ds["beta"]]
    kernel = functools.partial(_res_block_kernel, has_ds=has_ds, geom=geom)
    return pl.pallas_call(
        kernel,
        out_shape=jax.ShapeDtypeStruct((geom["ROWS_G"], planes), jnp.float32),
        scratch_shapes=[pltpu.VMEM((geom["ROWS_G"], planes), jnp.float32)],
        compiler_params=pltpu.CompilerParams(vmem_limit_bytes=VMEM_LIMIT_BYTES),
    )(*args)


# ----------------------------------------------------------------------------
# Layout utilities (wrapper-side, run once per forward / at the boundaries)
# ----------------------------------------------------------------------------
def _interior_mask(geom):
    hp, wp, h, w = geom["HP"], geom["WP"], geom["H"], geom["W"]
    idx = jnp.arange(geom["ROWS_P"], dtype=jnp.int32)
    r = idx % (hp * wp)
    yy = r // wp
    xx = r % wp
    m = (yy >= 1) & (yy <= h) & (xx >= 1) & (xx <= w)
    return m.astype(jnp.float32).reshape(geom["ROWS_P"], 1)


def _from_guarded(xg, geom):
    n, h, w = geom["N"], geom["H"], geom["W"]
    c = xg.shape[-1]
    g = geom["GUARD"]
    flat = xg[g:g + geom["ROWS_P"], :]
    return flat.reshape(n, geom["HP"], geom["WP"], c)[:, 1:1 + h, 1:1 + w, :]


def _stem_im2col(x_nhwc, geom):
    # Fold the 9 taps of the cin=4 stem conv into the contraction dim (K=36)
    # so the stem kernel is one dense matmul instead of 9 depth-4 matmuls.
    n, h, w, c = x_nhwc.shape
    hp, wp = geom["HP"], geom["WP"]
    xp2 = jnp.pad(x_nhwc, ((0, 0), (2, 2), (2, 2), (0, 0)))
    cols = []
    for dy in range(3):
        for dx in range(3):
            cols.append(xp2[:, dy:dy + hp, dx:dx + wp, :].reshape(geom["ROWS_P"], c))
    return jnp.concatenate(cols, axis=1).astype(jnp.bfloat16)


# ----------------------------------------------------------------------------
# Parameter construction (deterministic, synthetic, kernel-ready shapes)
# ----------------------------------------------------------------------------
def _init_conv_bn(key, kh, kw, cin, cout):
    k_w, k_g, k_b = jax.random.split(key, 3)
    fan_in = kh * kw * cin
    w = jax.random.normal(k_w, (kh, kw, cin, cout), jnp.float32) \
        / jnp.sqrt(jnp.float32(fan_in))
    # Conv bias omitted: the training-mode BN that always follows cancels it.
    return dict(
        w=w.reshape(kh * kw * cin, cout).astype(jnp.bfloat16),   # MXU operand dtype
        gamma=(1.0 + 0.1 * jax.random.normal(k_g, (cout,), jnp.float32)).reshape(1, cout),
        beta=(0.1 * jax.random.normal(k_b, (cout,), jnp.float32)).reshape(1, cout),
    )


def init_cellconv_params(key, layers=(1, 1, 1, 1)):
    keys = iter(jax.random.split(key, 64))
    params = {"conv1": _init_conv_bn(next(keys), 3, 3, 4, 64), "layers": []}
    inplanes = 64
    for li, planes in enumerate((64, 128, 256, 512)):
        blocks = []
        for bi in range(layers[li]):
            cin = inplanes if bi == 0 else planes
            blk = {"conv1": _init_conv_bn(next(keys), 3, 3, cin, planes),
                   "conv2": _init_conv_bn(next(keys), 3, 3, planes, planes)}
            if bi == 0 and inplanes != planes:
                blk["downsample"] = _init_conv_bn(next(keys), 1, 1, cin, planes)
            blocks.append(blk)
        inplanes = planes
        params["layers"].append(blocks)
    return params


# ----------------------------------------------------------------------------
# Forward pass
# ----------------------------------------------------------------------------
def cellconv_forward(params, x_nchw, output_shape=(16, 16, 4)):
    n, _, h, w = x_nchw.shape
    geom = _make_geom(n, h, w)
    x_nhwc = jnp.transpose(x_nchw, (0, 2, 3, 1)).astype(jnp.float32)
    mask = _interior_mask(geom)

    # Stem conv (4->64) + BN + ReLU.
    xg = _call_stem(_stem_im2col(x_nhwc, geom), mask, params["conv1"], geom)

    # One fused pallas_call per residual block; activations stay in guarded
    # flat layout between blocks (no re-pad / reshape HBM round-trips).
    for layer_blocks in params["layers"]:
        for blk in layer_blocks:
            xg = _call_res_block(xg, mask, blk, geom)

    desired_h, desired_w = output_shape[0], output_shape[1]
    # ConvTranspose2d upsample branch only fires when spatial < desired; not taken here.
    assert h >= desired_h and w >= desired_w

    out_nhwc = _from_guarded(xg, geom)
    return jnp.transpose(out_nhwc, (0, 3, 1, 2))   # back to NCHW


if __name__ == "__main__":
    key = jax.random.PRNGKey(0)
    k_x, k_p = jax.random.split(key)

    # Small shapes consistent with the module: batch=2, channels=4, spatial=16.
    x = jax.random.normal(k_x, (2, 4, 16, 16), jnp.float32)
    params = init_cellconv_params(k_p, layers=(1, 1, 1, 1))

    out = cellconv_forward(params, x, output_shape=(16, 16, 4))
    out = jax.block_until_ready(out)
    assert out.shape == (2, 512, 16, 16), out.shape
    assert bool(jnp.all(jnp.isfinite(out)))
    print("KERNEL_OK")
</pallas_src>

<mosaic_0001>
module attributes {stable_mosaic.version = 11 : i64} {
  func.func @_stem_kernel(%arg0: memref<648x36xbf16, #tpu.memory_space<vmem>>, %arg1: memref<648x1xf32, #tpu.memory_space<vmem>>, %arg2: memref<36x64xbf16, #tpu.memory_space<vmem>>, %arg3: memref<1x64xf32, #tpu.memory_space<vmem>>, %arg4: memref<1x64xf32, #tpu.memory_space<vmem>>, %arg5: memref<696x64xf32, #tpu.memory_space<vmem>>) attributes {dimension_semantics = [], scalar_prefetch = 0 : i64, scratch_operands = 0 : i64, tpu.core_type = #tpu.core_type<tc>} {
    %c0 = arith.constant 0 : index
    %c0_0 = arith.constant 0 : index
    %0 = vector.load %arg1[%c0, %c0_0] : memref<648x1xf32, #tpu.memory_space<vmem>>, vector<648x1xf32>
    %c0_1 = arith.constant 0 : index
    %c0_2 = arith.constant 0 : index
    %1 = vector.load %arg0[%c0_1, %c0_2] : memref<648x36xbf16, #tpu.memory_space<vmem>>, vector<648x36xbf16>
    %c0_3 = arith.constant 0 : index
    %c0_4 = arith.constant 0 : index
    %2 = vector.load %arg2[%c0_3, %c0_4] : memref<36x64xbf16, #tpu.memory_space<vmem>>, vector<36x64xbf16>
    %cst = arith.constant dense<0.000000e+00> : vector<648x64xf32>
    %3 = tpu.matmul %1, %2, %cst {dimension_numbers = #tpu.dot_dimension_numbers<[1], [0], [0], [1], [0, 0, 1, 1], [], []>} : vector<648x36xbf16>, vector<36x64xbf16>, vector<648x64xf32> -> vector<648x64xf32>
    %c0_5 = arith.constant 0 : index
    %c0_6 = arith.constant 0 : index
    %4 = vector.load %arg3[%c0_5, %c0_6] : memref<1x64xf32, #tpu.memory_space<vmem>>, vector<1x64xf32>
    %c0_7 = arith.constant 0 : index
    %c0_8 = arith.constant 0 : index
    %5 = vector.load %arg4[%c0_7, %c0_8] : memref<1x64xf32, #tpu.memory_space<vmem>>, vector<1x64xf32>
    %6 = vector.broadcast %0 : vector<648x1xf32> to vector<648x64xf32>
    %7 = arith.mulf %3, %6 : vector<648x64xf32>
    %cst_9 = arith.constant dense<0.000000e+00> : vector<64xf32>
    %8 = vector.multi_reduction <add>, %7, %cst_9 [0] : vector<648x64xf32> to vector<64xf32>
    %9 = vector.shape_cast %8 : vector<64xf32> to vector<1x64xf32>
    %10 = arith.mulf %7, %7 : vector<648x64xf32>
    %cst_10 = arith.constant dense<0.000000e+00> : vector<64xf32>
    %11 = vector.multi_reduction <add>, %10, %cst_10 [0] : vector<648x64xf32> to vector<64xf32>
    %12 = vector.shape_cast %11 : vector<64xf32> to vector<1x64xf32>
    %cst_11 = arith.constant 0.001953125 : f32
    %13 = vector.broadcast %cst_11 : f32 to vector<1x64xf32>
    %14 = arith.mulf %9, %13 : vector<1x64xf32>
    %cst_12 = arith.constant 0.001953125 : f32
    %15 = vector.broadcast %cst_12 : f32 to vector<1x64xf32>
    %16 = arith.mulf %12, %15 : vector<1x64xf32>
    %17 = arith.mulf %14, %14 : vector<1x64xf32>
    %18 = arith.subf %16, %17 : vector<1x64xf32>
    %cst_13 = arith.constant 0.000000e+00 : f32
    %19 = vector.broadcast %cst_13 : f32 to vector<1x64xf32>
    %20 = arith.maximumf %18, %19 : vector<1x64xf32>
    %cst_14 = arith.constant 9.99999974E-6 : f32
    %21 = vector.broadcast %cst_14 : f32 to vector<1x64xf32>
    %22 = arith.addf %20, %21 : vector<1x64xf32>
    %23 = math.rsqrt %22 : vector<1x64xf32>
    %24 = arith.mulf %23, %4 : vector<1x64xf32>
    %25 = vector.broadcast %14 : vector<1x64xf32> to vector<648x64xf32>
    %26 = arith.subf %7, %25 : vector<648x64xf32>
    %27 = vector.broadcast %24 : vector<1x64xf32> to vector<648x64xf32>
    %28 = arith.mulf %26, %27 : vector<648x64xf32>
    %29 = vector.broadcast %5 : vector<1x64xf32> to vector<648x64xf32>
    %30 = arith.addf %28, %29 : vector<648x64xf32>
    %cst_15 = arith.constant 0.000000e+00 : f32
    %31 = vector.broadcast %cst_15 : f32 to vector<648x64xf32>
    %32 = arith.maximumf %30, %31 : vector<648x64xf32>
    %33 = vector.broadcast %0 : vector<648x1xf32> to vector<648x64xf32>
    %34 = arith.mulf %32, %33 : vector<648x64xf32>
    %cst_16 = arith.constant 0.000000e+00 : f32
    %35 = vector.broadcast %cst_16 : f32 to vector<24x64xf32>
    %c0_17 = arith.constant 0 : index
    %c0_18 = arith.constant 0 : index
    %36 = vector.load %arg5[%c0_17, %c0_18] : memref<696x64xf32, #tpu.memory_space<vmem>>, vector<24x64xf32>
    tpu.vector_store %arg5[%c0_17, %c0_18], %35 {strides = array<i32>} : memref<696x64xf32, #tpu.memory_space<vmem>>, vector<24x64xf32>,
    %c672 = arith.constant 672 : index
    %c0_19 = arith.constant 0 : index
    %37 = vector.load %arg5[%c672, %c0_19] : memref<696x64xf32, #tpu.memory_space<vmem>>, vector<24x64xf32>
    tpu.vector_store %arg5[%c672, %c0_19], %35 {strides = array<i32>} : memref<696x64xf32, #tpu.memory_space<vmem>>, vector<24x64xf32>,
    %c24 = arith.constant 24 : index
    %c0_20 = arith.constant 0 : index
    %38 = vector.load %arg5[%c24, %c0_20] : memref<696x64xf32, #tpu.memory_space<vmem>>, vector<648x64xf32>
    tpu.vector_store %arg5[%c24, %c0_20], %34 {strides = array<i32>} : memref<696x64xf32, #tpu.memory_space<vmem>>, vector<648x64xf32>,
    return
  }
}

</mosaic_0001>

<bundles_post_ra>
// kernel: tpu_custom_call.1
= control target key start
LH: loop header
LB: loop body
LE: loop exit
PB: predicated region body
PF: predicated region fallthrough
CT: control target
= control target key end

     0   :  { %v2669_v0 = vmov 0.0   ;;  %vm2670_vm0 = vmmov 0   ;;  %vm530_vm1 = vcmask 1041408   ;;  %v2671_v4 = vmov 0   ;;  %s5841_s2 = inlined_call_operand.vmem [shape: bf16[36,64], index: 2, kind: input, shape index: {}]   ;;  %s5842_s1 = inlined_call_operand.vmem [shape: f32[648,1], index: 1, kind: input, shape index: {}]   ;;  %s5843_s0 = inlined_call_operand.vmem [shape: bf16[648,36], index: 0, kind: input, shape index: {}]   ;;  %s5844_s5 = inlined_call_operand.vmem [shape: f32[696,64], index: 5, kind: output, shape index: {}]   ;;  %s5845_s3 = inlined_call_operand.vmem [shape: f32[1,64], index: 3, kind: input, shape index: {}]   ;;  %s5846_s4 = inlined_call_operand.vmem [shape: f32[1,64], index: 4, kind: input, shape index: {}]  }
   0x1   :  { %2442 = vmatprep.subr.bf16.mxu0 %v2669_v0  ;;  %2612 = vmatprep.subr.bf16.mxu1 %v2669_v0  ;;  %v2623_v1 = vld [vmem:[%s5841_s2] sm:$0xff]   ;;  %v2624_v2 = vld [vmem:[%s5841_s2 + $0x8] sm:$0xff]   ;;  %v2625_v3 = vld [vmem:[%s5841_s2 + $0x10] ss:$0 sps:$4 sm:$0x33]   ;;  %vm406_vm2 = vcmask 293888  }
   0x2   :  { %2448 = vmatprep.mubr.msk.bf16.mxu0 %vm2670_vm0, %v2669_v0  ;;  %2532 = vmatprep.mubr.msk.bf16.mxu1 %vm2670_vm0, %v2669_v0  ;;  %v21_v5 = vld [vmem:[%s5842_s1] sm:$0xff]  ;;  %v22_v6 = vld [vmem:[%s5842_s1 + $0x8] sm:$0xff]  ;;  %v532_v7 = vsel %vm530_vm1, %v2625_v3, 0  ;;  %v23_v8 = vld [vmem:[%s5842_s1 + $0x10] sm:$0xff]  ;;  %vm1382_vm3 = vcmask 523264  }
   0x3   :  { %2443 = vmatpush3.bf16.msra.mxu0 %v2623_v1  ;;  %2615 = vmatpush3.bf16.msra.mxu1 %v2623_v1  ;;  %v2626_v9 = vld [vmem:[%s5843_s0] sm:$0xff]   ;;  %v2627_v10 = vld [vmem:[%s5843_s0 + $0xa8] sm:$0xff]   ;;  %v24_v11 = vld [vmem:[%s5842_s1 + $0x18] sm:$0xff]  ;;  %2221 = vst.msk [vmem:[%s5844_s5] sm:$0xff] %vm1382_vm3, %v2669_v0 }
   0x4   :  { %2444 = vmatprep.subr.bf16.mxu0 %v2669_v0  ;;  %2613 = vmatprep.subr.bf16.mxu1 %v2669_v0  ;;  %v25_v12 = vld [vmem:[%s5842_s1 + $0x20] sm:$0xff]  ;;  %v26_v13 = vld [vmem:[%s5842_s1 + $0x28] sm:$0xff]  ;;  %v27_v14 = vld [vmem:[%s5842_s1 + $0x30] sm:$0xff]  ;;  %2222 = vst.msk [vmem:[%s5844_s5 + $0x8] sm:$0xff] %vm1382_vm3, %v2669_v0 }
   0x5   :  { %2621 = vset.pattern.permute.xlu0 %v2671_v4  ;;  %2622 = vset.pattern.permute.xlu1 %v2671_v4  ;;  %v2628_v15 = vld [vmem:[%s5843_s0 + $0x8] sm:$0xff]   ;;  %v2629_v16 = vld [vmem:[%s5843_s0 + $0xb0] sm:$0xff]   ;;  %v28_v17 = vld [vmem:[%s5842_s1 + $0x38] sm:$0xff]  ;;  %2223 = vst.msk [vmem:[%s5844_s5 + $0x10] sm:$0xff] %vm1382_vm3, %v2669_v0 }
   0x6   :  { %898 = vperm.xlu0 %2621, %v21_v5   ;;  %908 = vperm.xlu1 %2622, %v23_v8   ;;  %v29_v18 = vld [vmem:[%s5842_s1 + $0x40] sm:$0xff]  ;;  %v30_v19 = vld [vmem:[%s5842_s1 + $0x48] sm:$0xff]  ;;  %v2630_v20 = vld [vmem:[%s5843_s0 + $0x10] sm:$0xff]   ;;  %2224 = vst.msk [vmem:[%s5844_s5 + $0x2a0] sm:$0xff] %vm1382_vm3, %v2669_v0 }
   0x7   :  { %2445 = vmatpush3.bf16.msra.mxu0 %v2624_v2  ;;  %2616 = vmatpush3.bf16.msra.mxu1 %v2624_v2  ;;  %v2631_v21 = vld [vmem:[%s5843_s0 + $0xb8] sm:$0xff]   ;;  %v31_v22 = vld [vmem:[%s5842_s1 + $0x50] sm:$0xff]  ;;  %v33_v24 = vld [vmem:[%s5842_s1 + $0x60] sm:$0xff]  ;;  %2225 = vst.msk [vmem:[%s5844_s5 + $0x2a8] sm:$0xff] %vm1382_vm3, %v2669_v0 }
   0x8   :  { %2446 = vmatprep.subr.bf16.mxu0 %v2669_v0  ;;  %2614 = vmatprep.subr.bf16.mxu1 %v2669_v0  ;;  %v32_v23 = vld [vmem:[%s5842_s1 + $0x58] sm:$0xff]  ;;  %v34_v25 = vld [vmem:[%s5842_s1 + $0x68] sm:$0xff]  ;;  %v2633_v27 = vld [vmem:[%s5843_s0 + $0xc0] sm:$0xff]   ;;  %2226 = vst.msk [vmem:[%s5844_s5 + $0x2b0] sm:$0xff] %vm1382_vm3, %v2669_v0 }
   0x9   :  { %v2632_v26 = vld [vmem:[%s5843_s0 + $0x18] sm:$0xff]   ;;  %v35_v28 = vld [vmem:[%s5842_s1 + $0x70] sm:$0xff]  ;;  %v37_v30 = vld [vmem:[%s5842_s1 + $0x80] sm:$0xff] }
   0xa   :  { %903 = vperm.xlu0 %2621, %v22_v6   ;;  %913 = vperm.xlu1 %2622, %v24_v11   ;;  %v36_v29 = vld [vmem:[%s5842_s1 + $0x78] sm:$0xff]  ;;  %v38_v31 = vld [vmem:[%s5842_s1 + $0x88] sm:$0xff]  ;;  %v39_v32 = vld [vmem:[%s5842_s1 + $0x90] sm:$0xff] }
   0xb   :  { %2447 = vmatpush3.bf16.msra.mxu0 %v532_v7  ;;  %2617 = vmatpush3.bf16.msra.mxu1 %v532_v7  ;;  %v2634_v33 = vld [vmem:[%s5843_s0 + $0x20] sm:$0xff]   ;;  %v2635_v34 = vld [vmem:[%s5843_s0 + $0xc8] sm:$0xff]   ;;  %v40_v35 = vld [vmem:[%s5842_s1 + $0x98] sm:$0xff] }
   0xc   :  { %v41_v36 = vld [vmem:[%s5842_s1 + $0xa0] sm:$0xff]  ;;  %v42_v37 = vld [vmem:[%s5842_s1 + $0xa8] sm:$0xff]  ;;  %v2637_v39 = vld [vmem:[%s5843_s0 + $0xd0] sm:$0xff]  }
   0xd   :  { %v2636_v38 = vld [vmem:[%s5843_s0 + $0x28] sm:$0xff]   ;;  %v43_v40 = vld [vmem:[%s5842_s1 + $0xb0] sm:$0xff]  ;;  %v44_v41 = vld [vmem:[%s5842_s1 + $0xb8] sm:$0xff] }
   0xe   :  { %2449 = vmatmul.mubr.msk.bf16.vlgmr.msra.gmra.mrb[0].mxu0 %vm406_vm2, %v2626_v9  ;;  %2533 = vmatmul.mubr.msk.bf16.vlgmr.msra.gmra.mrb[0].mxu1 %vm406_vm2, %v2627_v10  ;;  %v45_v42 = vld [vmem:[%s5842_s1 + $0xc0] sm:$0xff]  ;;  %v46_v43 = vld [vmem:[%s5842_s1 + $0xc8] sm:$0xff]  ;;  %v47_v44 = vld [vmem:[%s5842_s1 + $0xd0] sm:$0xff] }
   0xf   :  { %2452 = vmatprep.mubr.msk.bf16.mxu0 %vm2670_vm0, %v2669_v0  ;;  %2536 = vmatprep.mubr.msk.bf16.mxu1 %vm2670_vm0, %v2669_v0  ;;  %v2638_v45 = vld [vmem:[%s5843_s0 + $0x30] sm:$0xff]   ;;  %v2639_v46 = vld [vmem:[%s5843_s0 + $0xd8] sm:$0xff]   ;;  %v49_v48 = vld [vmem:[%s5842_s1 + $0xe0] sm:$0xff] }
  0x10   :  { %918 = vperm.xlu0 %2621, %v25_v12   ;;  %923 = vperm.xlu1 %2622, %v26_v13   ;;  %v48_v47 = vld [vmem:[%s5842_s1 + $0xd8] sm:$0xff]  ;;  %v50_v49 = vld [vmem:[%s5842_s1 + $0xe8] sm:$0xff]  ;;  %v2641_v51 = vld [vmem:[%s5843_s0 + $0xe0] sm:$0xff]  }
  0x11   :  { %v2640_v50 = vld [vmem:[%s5843_s0 + $0x38] sm:$0xff]   ;;  %v51_v52 = vld [vmem:[%s5842_s1 + $0xf0] sm:$0xff]  ;;  %v53_v54 = vld [vmem:[%s5842_s1 + $0x100] sm:$0xff] }
  0x12   :  { %v52_v53 = vld [vmem:[%s5842_s1 + $0xf8] sm:$0xff]  ;;  %v54_v55 = vld [vmem:[%s5842_s1 + $0x108] sm:$0xff]  ;;  %v55_v56 = vld [vmem:[%s5842_s1 + $0x110] sm:$0xff] }
  0x13   :  { %v2642_v57 = vld [vmem:[%s5843_s0 + $0x40] sm:$0xff]   ;;  %v2643_v58 = vld [vmem:[%s5843_s0 + $0xe8] sm:$0xff]   ;;  %v56_v59 = vld [vmem:[%s5842_s1 + $0x118] sm:$0xff] }
  0x14   :  { %928 = vperm.xlu0 %2621, %v27_v14   ;;  %933 = vperm.xlu1 %2622, %v28_v17   ;;  %v57_v60 = vld [vmem:[%s5842_s1 + $0x120] sm:$0xff]  ;;  %v58_v61 = vld [vmem:[%s5842_s1 + $0x128] sm:$0xff]  ;;  %v59_v62 = vld [vmem:[%s5842_s1 + $0x130] sm:$0xff] }
  0x15   :  { %v2644_v63 = vld [vmem:[%s5843_s0 + $0x48] sm:$0xff]   ;;  %v2645_v1 = vld [vmem:[%s5843_s0 + $0xf0] sm:$0xff]   ;;  %v60_v2 = vld [vmem:[%s5842_s1 + $0x138] sm:$0xff] }
  0x16   :  { %2453 = vmatmul.mubr.msk.bf16.gmra.mrb[4].mxu0 %vm406_vm2, %v2628_v15  ;;  %2537 = vmatmul.mubr.msk.bf16.gmra.mrb[4].mxu1 %vm406_vm2, %v2629_v16  ;;  %v61_v3 = vld [vmem:[%s5842_s1 + $0x140] sm:$0xff]  ;;  %v62_v4 = vld [vmem:[%s5842_s1 + $0x148] sm:$0xff]  ;;  %v63_v5 = vld [vmem:[%s5842_s1 + $0x150] sm:$0xff] }
  0x17   :  { %2456 = vmatprep.mubr.msk.bf16.mxu0 %vm2670_vm0, %v2669_v0  ;;  %2540 = vmatprep.mubr.msk.bf16.mxu1 %vm2670_vm0, %v2669_v0  ;;  %v2646_v6 = vld [vmem:[%s5843_s0 + $0x50] sm:$0xff]   ;;  %v2647_v7 = vld [vmem:[%s5843_s0 + $0xf8] sm:$0xff]   ;;  %v65_v9 = vld [vmem:[%s5842_s1 + $0x160] sm:$0xff] }
  0x18   :  { %938 = vperm.xlu0 %2621, %v29_v18   ;;  %943 = vperm.xlu1 %2622, %v30_v19   ;;  %v64_v8 = vld [vmem:[%s5842_s1 + $0x158] sm:$0xff]  ;;  %v66_v10 = vld [vmem:[%s5842_s1 + $0x168] sm:$0xff]  ;;  %v67_v11 = vld [vmem:[%s5842_s1 + $0x170] sm:$0xff] }
  0x19   :  { %v2648_v12 = vld [vmem:[%s5843_s0 + $0x58] sm:$0xff]   ;;  %v2649_v13 = vld [vmem:[%s5843_s0 + $0x100] sm:$0xff]   ;;  %v70_v16 = vld [vmem:[%s5842_s1 + $0x188] sm:$0xff] }
  0x1a   :  { %v68_v14 = vld [vmem:[%s5842_s1 + $0x178] sm:$0xff]  ;;  %v69_v15 = vld [vmem:[%s5842_s1 + $0x180] sm:$0xff]  ;;  %v71_v17 = vld [vmem:[%s5842_s1 + $0x190] sm:$0xff] }
  0x1b   :  { %v2650_v18 = vld [vmem:[%s5843_s0 + $0x60] sm:$0xff]   ;;  %v2651_v19 = vld [vmem:[%s5843_s0 + $0x108] sm:$0xff]  }
  0x1c   :  { %948 = vperm.xlu0 %2621, %v31_v22   ;;  %953 = vperm.xlu1 %2622, %v32_v23   ;;  %v74_v22 = vld [vmem:[%s5842_s1 + $0x1a8] sm:$0xff]  ;;  %v75_v23 = vld [vmem:[%s5842_s1 + $0x1b0] sm:$0xff] }
  0x1e   :  { %2457 = vmatmul.mubr.msk.bf16.gmra.mrb[8].mxu0 %vm406_vm2, %v2630_v20  ;;  %2541 = vmatmul.mubr.msk.bf16.gmra.mrb[8].mxu1 %vm406_vm2, %v2631_v21  ;;  %v72_v20 = vld [vmem:[%s5842_s1 + $0x198] sm:$0xff]  ;;  %v73_v21 = vld [vmem:[%s5842_s1 + $0x1a0] sm:$0xff] }
  0x1f   :  { %2460 = vmatprep.mubr.msk.bf16.mxu0 %vm2670_vm0, %v2669_v0  ;;  %2544 = vmatprep.mubr.msk.bf16.mxu1 %vm2670_vm0, %v2669_v0 }
  0x20   :  { %958 = vperm.xlu0 %2621, %v33_v24   ;;  %963 = vperm.xlu1 %2622, %v34_v25   ;;  %v2652_v24 = vld [vmem:[%s5843_s0 + $0x68] sm:$0xff]   ;;  %v2653_v25 = vld [vmem:[%s5843_s0 + $0x110] sm:$0xff]  }
  0x24   :  { %968 = vperm.xlu0 %2621, %v35_v28   ;;  %973 = vperm.xlu1 %2622, %v36_v29   ;;  %v78_v28 = vld [vmem:[%s5842_s1 + $0x1c8] sm:$0xff]  ;;  %v79_v29 = vld [vmem:[%s5842_s1 + $0x1d0] sm:$0xff] }
  0x26   :  { %2461 = vmatmul.mubr.msk.bf16.gmra.mrb[12].mxu0 %vm406_vm2, %v2632_v26  ;;  %2545 = vmatmul.mubr.msk.bf16.gmra.mrb[12].mxu1 %vm406_vm2, %v2633_v27  ;;  %v76_v26 = vld [vmem:[%s5842_s1 + $0x1b8] sm:$0xff]  ;;  %v77_v27 = vld [vmem:[%s5842_s1 + $0x1c0] sm:$0xff] }
  0x27   :  { %2464 = vmatprep.mubr.msk.bf16.mxu0 %vm2670_vm0, %v2669_v0  ;;  %2548 = vmatprep.mubr.msk.bf16.mxu1 %vm2670_vm0, %v2669_v0 }
  0x28   :  { %978 = vperm.xlu0 %2621, %v37_v30   ;;  %983 = vperm.xlu1 %2622, %v38_v31   ;;  %v2654_v30 = vld [vmem:[%s5843_s0 + $0x70] sm:$0xff]   ;;  %v2655_v31 = vld [vmem:[%s5843_s0 + $0x118] sm:$0xff]  }
  0x2c   :  { %988 = vperm.xlu0 %2621, %v39_v32   ;;  %993 = vperm.xlu1 %2622, %v40_v35   ;;  %v80_v32 = vld [vmem:[%s5842_s1 + $0x1d8] sm:$0xff]  ;;  %v83_v35 = vld [vmem:[%s5842_s1 + $0x1f0] sm:$0xff] }
  0x2e   :  { %2465 = vmatmul.mubr.msk.bf16.gmra.mrb[16].mxu0 %vm406_vm2, %v2634_v33  ;;  %2549 = vmatmul.mubr.msk.bf16.gmra.mrb[16].mxu1 %vm406_vm2, %v2635_v34  ;;  %v81_v33 = vld [vmem:[%s5842_s1 + $0x1e0] sm:$0xff]  ;;  %v82_v34 = vld [vmem:[%s5842_s1 + $0x1e8] sm:$0xff] }
  0x2f   :  { %2468 = vmatprep.mubr.msk.bf16.mxu0 %vm2670_vm0, %v2669_v0  ;;  %2552 = vmatprep.mubr.msk.bf16.mxu1 %vm2670_vm0, %v2669_v0 }
  0x30   :  { %998 = vperm.xlu0 %2621, %v41_v36   ;;  %1003 = vperm.xlu1 %2622, %v42_v37   ;;  %v2656_v36 = vld [vmem:[%s5843_s0 + $0x78] sm:$0xff]   ;;  %v2657_v37 = vld [vmem:[%s5843_s0 + $0x120] sm:$0xff]  }
  0x34   :  { %1008 = vperm.xlu0 %2621, %v43_v40   ;;  %1013 = vperm.xlu1 %2622, %v44_v41   ;;  %v86_v40 = vld [vmem:[%s5842_s1 + $0x208] sm:$0xff]  ;;  %v87_v41 = vld [vmem:[%s5842_s1 + $0x210] sm:$0xff] }
  0x36   :  { %2469 = vmatmul.mubr.msk.bf16.gmra.mrb[20].mxu0 %vm406_vm2, %v2636_v38  ;;  %2553 = vmatmul.mubr.msk.bf16.gmra.mrb[20].mxu1 %vm406_vm2, %v2637_v39  ;;  %v84_v38 = vld [vmem:[%s5842_s1 + $0x1f8] sm:$0xff]  ;;  %v85_v39 = vld [vmem:[%s5842_s1 + $0x200] sm:$0xff] }
  0x37   :  { %2472 = vmatprep.mubr.msk.bf16.mxu0 %vm2670_vm0, %v2669_v0  ;;  %2556 = vmatprep.mubr.msk.bf16.mxu1 %vm2670_vm0, %v2669_v0 }
  0x38   :  { %1018 = vperm.xlu0 %2621, %v45_v42   ;;  %1023 = vperm.xlu1 %2622, %v46_v43   ;;  %v2658_v42 = vld [vmem:[%s5843_s0 + $0x80] sm:$0xff]   ;;  %v2659_v43 = vld [vmem:[%s5843_s0 + $0x128] sm:$0xff]  }
  0x3c   :  { %1028 = vperm.xlu0 %2621, %v47_v44   ;;  %1033 = vperm.xlu1 %2622, %v48_v47   ;;  %v88_v44 = vld [vmem:[%s5842_s1 + $0x218] sm:$0xff]  ;;  %v91_v47 = vld [vmem:[%s5842_s1 + $0x230] sm:$0xff] }
  0x3e   :  { %2473 = vmatmul.mubr.msk.bf16.gmra.mrb[24].mxu0 %vm406_vm2, %v2638_v45  ;;  %2557 = vmatmul.mubr.msk.bf16.gmra.mrb[24].mxu1 %vm406_vm2, %v2639_v46  ;;  %v89_v45 = vld [vmem:[%s5842_s1 + $0x220] sm:$0xff]  ;;  %v90_v46 = vld [vmem:[%s5842_s1 + $0x228] sm:$0xff] }
  0x3f   :  { %2476 = vmatprep.mubr.msk.bf16.mxu0 %vm2670_vm0, %v2669_v0  ;;  %2560 = vmatprep.mubr.msk.bf16.mxu1 %vm2670_vm0, %v2669_v0 }
  0x40   :  { %1038 = vperm.xlu0 %2621, %v49_v48   ;;  %1043 = vperm.xlu1 %2622, %v50_v49   ;;  %v2660_v48 = vld [vmem:[%s5843_s0 + $0x88] sm:$0xff]   ;;  %v2661_v49 = vld [vmem:[%s5843_s0 + $0x130] sm:$0xff]  }
  0x44   :  { %1048 = vperm.xlu0 %2621, %v51_v52   ;;  %1053 = vperm.xlu1 %2622, %v52_v53   ;;  %v94_v52 = vld [vmem:[%s5842_s1 + $0x248] sm:$0xff]  ;;  %v95_v53 = vld [vmem:[%s5842_s1 + $0x250] sm:$0xff] }
  0x46   :  { %2477 = vmatmul.mubr.msk.bf16.gmra.mrb[28].mxu0 %vm406_vm2, %v2640_v50  ;;  %2561 = vmatmul.mubr.msk.bf16.gmra.mrb[28].mxu1 %vm406_vm2, %v2641_v51  ;;  %v92_v50 = vld [vmem:[%s5842_s1 + $0x238] sm:$0xff]  ;;  %v93_v51 = vld [vmem:[%s5842_s1 + $0x240] sm:$0xff] }
  0x47   :  { %2480 = vmatprep.mubr.msk.bf16.mxu0 %vm2670_vm0, %v2669_v0  ;;  %2564 = vmatprep.mubr.msk.bf16.mxu1 %vm2670_vm0, %v2669_v0 }
  0x48   :  { %1058 = vperm.xlu0 %2621, %v53_v54   ;;  %1063 = vperm.xlu1 %2622, %v54_v55   ;;  %v2662_v54 = vld [vmem:[%s5843_s0 + $0x90] sm:$0xff]   ;;  %v2663_v55 = vld [vmem:[%s5843_s0 + $0x138] sm:$0xff]  }
  0x4c   :  { %1068 = vperm.xlu0 %2621, %v55_v56   ;;  %1073 = vperm.xlu1 %2622, %v56_v59   ;;  %v96_v56 = vld [vmem:[%s5842_s1 + $0x258] sm:$0xff]  ;;  %v99_v59 = vld [vmem:[%s5842_s1 + $0x270] sm:$0xff] }
  0x4e   :  { %2481 = vmatmul.mubr.msk.bf16.gmra.mrb[32].mxu0 %vm406_vm2, %v2642_v57  ;;  %2565 = vmatmul.mubr.msk.bf16.gmra.mrb[32].mxu1 %vm406_vm2, %v2643_v58  ;;  %v97_v57 = vld [vmem:[%s5842_s1 + $0x260] sm:$0xff]  ;;  %v98_v58 = vld [vmem:[%s5842_s1 + $0x268] sm:$0xff] }
  0x4f   :  { %2484 = vmatprep.mubr.msk.bf16.mxu0 %vm2670_vm0, %v2669_v0  ;;  %2568 = vmatprep.mubr.msk.bf16.mxu1 %vm2670_vm0, %v2669_v0 }
  0x50   :  { %1078 = vperm.xlu0 %2621, %v57_v60   ;;  %1083 = vperm.xlu1 %2622, %v58_v61   ;;  %v2664_v60 = vld [vmem:[%s5843_s0 + $0x98] sm:$0xff]   ;;  %v2665_v61 = vld [vmem:[%s5843_s0 + $0x140] ss:$0 sps:$4 sm:$0xff]  }
  0x54   :  { %1088 = vperm.xlu0 %2621, %v59_v62   ;;  %1093 = vperm.xlu1 %2622, %v60_v2   ;;  %v100_v62 = vld [vmem:[%s5842_s1 + $0x278] sm:$0xff] }
  0x56   :  { %2485 = vmatmul.mubr.msk.bf16.gmra.mrb[36].mxu0 %vm406_vm2, %v2644_v63  ;;  %2569 = vmatmul.mubr.msk.bf16.gmra.mrb[36].mxu1 %vm406_vm2, %v2645_v1  ;;  %v101_v63 = vld [vmem:[%s5842_s1 + $0x280] sm:$0xff] }
  0x57   :  { %2488 = vmatprep.mubr.msk.bf16.mxu0 %vm2670_vm0, %v2669_v0  ;;  %2572 = vmatprep.mubr.msk.bf16.mxu1 %vm2670_vm0, %v2669_v0  ;;  %v2666_v1 = vld [vmem:[%s5843_s0 + $0xa0] sm:$0xff]  }
  0x58   :  { %1098 = vperm.xlu0 %2621, %v61_v3   ;;  %1103 = vperm.xlu1 %2622, %v62_v4  }
  0x5c   :  { %1108 = vperm.xlu0 %2621, %v63_v5   ;;  %1113 = vperm.xlu1 %2622, %v64_v8  }
  0x5e   :  { %2489 = vmatmul.mubr.msk.bf16.gmra.mrb[40].mxu0 %vm406_vm2, %v2646_v6  ;;  %2573 = vmatmul.mubr.msk.bf16.gmra.mrb[40].mxu1 %vm406_vm2, %v2647_v7 }
  0x5f   :  { %2492 = vmatprep.mubr.msk.bf16.mxu0 %vm2670_vm0, %v2669_v0  ;;  %2576 = vmatprep.mubr.msk.bf16.mxu1 %vm2670_vm0, %v2669_v0 }
  0x60   :  { %1118 = vperm.xlu0 %2621, %v65_v9   ;;  %1123 = vperm.xlu1 %2622, %v66_v10  }
  0x64   :  { %1128 = vperm.xlu0 %2621, %v67_v11   ;;  %1133 = vperm.xlu1 %2622, %v68_v14  }
  0x66   :  { %2493 = vmatmul.mubr.msk.bf16.gmra.mrb[44].mxu0 %vm406_vm2, %v2648_v12  ;;  %2577 = vmatmul.mubr.msk.bf16.gmra.mrb[44].mxu1 %vm406_vm2, %v2649_v13 }
  0x67   :  { %2496 = vmatprep.mubr.msk.bf16.mxu0 %vm2670_vm0, %v2669_v0  ;;  %2580 = vmatprep.mubr.msk.bf16.mxu1 %vm2670_vm0, %v2669_v0 }
  0x68   :  { %1138 = vperm.xlu0 %2621, %v69_v15   ;;  %1143 = vperm.xlu1 %2622, %v70_v16  }
  0x6c   :  { %1148 = vperm.xlu0 %2621, %v71_v17   ;;  %1153 = vperm.xlu1 %2622, %v72_v20  }
  0x6e   :  { %2497 = vmatmul.mubr.msk.bf16.gmra.mrb[48].mxu0 %vm406_vm2, %v2650_v18  ;;  %2581 = vmatmul.mubr.msk.bf16.gmra.mrb[48].mxu1 %vm406_vm2, %v2651_v19 }
  0x6f   :  { %2500 = vmatprep.mubr.msk.bf16.mxu0 %vm2670_vm0, %v2669_v0  ;;  %2584 = vmatprep.mubr.msk.bf16.mxu1 %vm2670_vm0, %v2669_v0 }
  0x70   :  { %1158 = vperm.xlu0 %2621, %v73_v21   ;;  %1163 = vperm.xlu1 %2622, %v74_v22  }
  0x74   :  { %1168 = vperm.xlu0 %2621, %v75_v23   ;;  %1173 = vperm.xlu1 %2622, %v76_v26  }
  0x76   :  { %2501 = vmatmul.mubr.msk.bf16.gmra.mrb[52].mxu0 %vm406_vm2, %v2652_v24  ;;  %2585 = vmatmul.mubr.msk.bf16.gmra.mrb[52].mxu1 %vm406_vm2, %v2653_v25 }
  0x77   :  { %2504 = vmatprep.mubr.msk.bf16.mxu0 %vm2670_vm0, %v2669_v0  ;;  %2588 = vmatprep.mubr.msk.bf16.mxu1 %vm2670_vm0, %v2669_v0 }
  0x78   :  { %1178 = vperm.xlu0 %2621, %v77_v27   ;;  %1183 = vperm.xlu1 %2622, %v78_v28  }
  0x7c   :  { %1188 = vperm.xlu0 %2621, %v79_v29   ;;  %1193 = vperm.xlu1 %2622, %v80_v32  }
  0x7e   :  { %2505 = vmatmul.mubr.msk.bf16.gmra.mrb[56].mxu0 %vm406_vm2, %v2654_v30  ;;  %2589 = vmatmul.mubr.msk.bf16.gmra.mrb[56].mxu1 %vm406_vm2, %v2655_v31 }
  0x7f   :  { %2508 = vmatprep.mubr.msk.bf16.mxu0 %vm2670_vm0, %v2669_v0  ;;  %2592 = vmatprep.mubr.msk.bf16.mxu1 %vm2670_vm0, %v2669_v0 }
  0x80   :  { %1198 = vperm.xlu0 %2621, %v81_v33   ;;  %1203 = vperm.xlu1 %2622, %v82_v34  }
  0x84   :  { %1208 = vperm.xlu0 %2621, %v83_v35   ;;  %1213 = vperm.xlu1 %2622, %v84_v38  }
  0x85   :  { %v3206_v2 = vpop.permute.xlu0 %898  ;;  %v3210_v4 = vpop.permute.xlu1 %908 }
  0x86   :  { %2509 = vmatmul.mubr.msk.bf16.gmra.mrb[60].mxu0 %vm406_vm2, %v2656_v36  ;;  %2593 = vmatmul.mubr.msk.bf16.gmra.mrb[60].mxu1 %vm406_vm2, %v2657_v37  ;;  %6068 = vst [vmem:[#allocation2_spill] sm:$0xff] %v3206_v2  ;;  %6070 = vst [vmem:[#allocation4_spill] sm:$0xff] %v3210_v4 }
  0x87   :  { %2512 = vmatprep.mubr.msk.bf16.mxu0 %vm2670_vm0, %v2669_v0  ;;  %2596 = vmatprep.mubr.msk.bf16.mxu1 %vm2670_vm0, %v2669_v0 }
  0x88   :  { %1218 = vperm.xlu0 %2621, %v85_v39   ;;  %1223 = vperm.xlu1 %2622, %v86_v40  }
  0x89   :  { %v3208_v3 = vpop.permute.xlu0 %903  ;;  %v3214_v6 = vpop.permute.xlu1 %913 }
  0x8a   :  { %6069 = vst [vmem:[#allocation3_spill] sm:$0xff] %v3208_v3  ;;  %6072 = vst [vmem:[#allocation6_spill] sm:$0xff] %v3214_v6 }
  0x8c   :  { %1228 = vperm.xlu0 %2621, %v87_v41   ;;  %1233 = vperm.xlu1 %2622, %v88_v44  }
  0x8e   :  { %2513 = vmatmul.mubr.msk.bf16.gmra.mrb[64].mxu0 %vm406_vm2, %v2658_v42  ;;  %2597 = vmatmul.mubr.msk.bf16.gmra.mrb[64].mxu1 %vm406_vm2, %v2659_v43 }
  0x8f   :  { %2516 = vmatprep.mubr.msk.bf16.mxu0 %vm2670_vm0, %v2669_v0  ;;  %2600 = vmatprep.mubr.msk.bf16.mxu1 %vm2670_vm0, %v2669_v0  ;;  %v3212_v5 = vpop.permute.xlu0 %918  ;;  %v3218_v8 = vpop.permute.xlu1 %923 }
  0x90   :  { %1238 = vperm.xlu0 %2621, %v89_v45   ;;  %1243 = vperm.xlu1 %2622, %v90_v46   ;;  %6071 = vst [vmem:[#allocation5_spill] sm:$0xff] %v3212_v5  ;;  %6074 = vst [vmem:[#allocation8_spill] sm:$0xff] %v3218_v8 }
  0x93   :  { %v3216_v7 = vpop.permute.xlu0 %928  ;;  %v3222_v10 = vpop.permute.xlu1 %933 }
  0x94   :  { %1248 = vperm.xlu0 %2621, %v91_v47   ;;  %1253 = vperm.xlu1 %2622, %v92_v50   ;;  %6073 = vst [vmem:[#allocation7_spill] sm:$0xff] %v3216_v7  ;;  %6076 = vst [vmem:[#allocation10_spill] sm:$0xff] %v3222_v10 }
  0x96   :  { %2517 = vmatmul.mubr.msk.bf16.gmra.mrb[68].mxu0 %vm406_vm2, %v2660_v48  ;;  %2601 = vmatmul.mubr.msk.bf16.gmra.mrb[68].mxu1 %vm406_vm2, %v2661_v49 }
  0x97   :  { %2520 = vmatprep.mubr.msk.bf16.mxu0 %vm2670_vm0, %v2669_v0  ;;  %2604 = vmatprep.mubr.msk.bf16.mxu1 %vm2670_vm0, %v2669_v0  ;;  %v3220_v9 = vpop.permute.xlu0 %938  ;;  %v3226_v12 = vpop.permute.xlu1 %943 }
  0x98   :  { %1258 = vperm.xlu0 %2621, %v93_v51   ;;  %1263 = vperm.xlu1 %2622, %v94_v52   ;;  %6075 = vst [vmem:[#allocation9_spill] sm:$0xff] %v3220_v9  ;;  %6078 = vst [vmem:[#allocation12_spill] sm:$0xff] %v3226_v12 }
  0x9b   :  { %v3224_v11 = vpop.permute.xlu0 %948  ;;  %v3230_v14 = vpop.permute.xlu1 %953 }
  0x9c   :  { %1268 = vperm.xlu0 %2621, %v95_v53   ;;  %1273 = vperm.xlu1 %2622, %v96_v56   ;;  %6077 = vst [vmem:[#allocation11_spill] sm:$0xff] %v3224_v11  ;;  %6080 = vst [vmem:[#allocation14_spill] sm:$0xff] %v3230_v14 }
  0x9e   :  { %2521 = vmatmul.mubr.msk.bf16.gmra.mrb[72].mxu0 %vm406_vm2, %v2662_v54  ;;  %2605 = vmatmul.mubr.msk.bf16.gmra.mrb[72].mxu1 %vm406_vm2, %v2663_v55 }
  0x9f   :  { %2524 = vmatprep.mubr.msk.bf16.mxu0 %vm2670_vm0, %v2669_v0  ;;  %2608 = vmatprep.mubr.msk.bf16.mxu1 %vm2670_vm0, %v2669_v0  ;;  %v3228_v13 = vpop.permute.xlu0 %958  ;;  %v3234_v16 = vpop.permute.xlu1 %963 }
  0xa0   :  { %1278 = vperm.xlu0 %2621, %v97_v57   ;;  %1283 = vperm.xlu1 %2622, %v98_v58   ;;  %6079 = vst [vmem:[#allocation13_spill] sm:$0xff] %v3228_v13  ;;  %6082 = vst [vmem:[#allocation16_spill] sm:$0xff] %v3234_v16 }
  0xa3   :  { %v3232_v15 = vpop.permute.xlu0 %968  ;;  %v3242_v26 = vpop.permute.xlu1 %973 }
  0xa4   :  { %1288 = vperm.xlu0 %2621, %v99_v59   ;;  %1293 = vperm.xlu1 %2622, %v100_v62   ;;  %6081 = vst [vmem:[#allocation15_spill] sm:$0xff] %v3232_v15  ;;  %6084 = vst [vmem:[#allocation18_spill] sm:$0xff] %v3242_v26 }
  0xa6   :  { %2525 = vmatmul.mubr.msk.bf16.gmra.mrb[76].mxu0 %vm406_vm2, %v2664_v60  ;;  %2609 = vmatmul.mubr.msk.bf16.gmra.mrb[76].mxu1 %vm406_vm2, %v2665_v61 }
  0xa7   :  { %2528 = vmatprep.mubr.msk.bf16.mxu0 %vm2670_vm0, %v2669_v0  ;;  %v3240_v25 = vpop.permute.xlu0 %978  ;;  %v3250_v36 = vpop.permute.xlu1 %983 }
  0xa8   :  { %1298 = vperm.xlu0 %2621, %v101_v63   ;;  %6083 = vst [vmem:[#allocation17_spill] sm:$0xff] %v3240_v25  ;;  %6086 = vst [vmem:[#allocation20_spill] sm:$0xff] %v3250_v36 }
  0xab   :  { %v3248_v35 = vpop.permute.xlu0 %988  ;;  %v3260_v46 = vpop.permute.xlu1 %993 }
  0xac   :  { %6085 = vst [vmem:[#allocation19_spill] sm:$0xff] %v3248_v35  ;;  %6088 = vst [vmem:[#allocation22_spill] sm:$0xff] %v3260_v46 }
  0xae   :  { %2529 = vmatmul.mubr.msk.bf16.gmra.mrb[80].mxu0 %vm406_vm2, %v2666_v1 }
  0xaf   :  { %v3258_v45 = vpop.permute.xlu0 %998  ;;  %v3272_v56 = vpop.permute.xlu1 %1003 }
  0xb0   :  { %6087 = vst [vmem:[#allocation21_spill] sm:$0xff] %v3258_v45  ;;  %6090 = vst [vmem:[#allocation24_spill] sm:$0xff] %v3272_v56 }
  0xb3   :  { %v3270_v55 = vpop.permute.xlu0 %1008 }
  0xb4   :  { %6089 = vst [vmem:[#allocation23_spill] sm:$0xff] %v3270_v55 }
  0xe1   :  { %v568_v17 = vpop.f32.mrb[0].mxu0  ;;  %v3236_v18 = vpop.f32.mrb[0].mxu1 }
  0xe2   :  { %v2450_v19 = vpop.f32.mrb[1].mxu0  ;;  %v2534_v20 = vpop.f32.mrb[1].mxu1 }
  0xe3   :  { %v571_v21 = vpop.f32.mrb[2].mxu0  ;;  %v3238_v23 = vpop.f32.mrb[2].mxu1 }
  0xe4   :  { %v2451_v22 = vpop.f32.mrb[3].mxu0  ;;  %v2535_v24 = vpop.f32.mrb[3].mxu1 }
  0xe5   :  { %v3282_v19 = vpop.permute.xlu0 %1018  ;;  %v3284_v20 = vpop.permute.xlu1 %1013  ;;  %v3287_v22 = vmul.f32 %v3208_v3, %v571_v21 }
  0xe6   :  { %6091 = vst [vmem:[#allocation25_spill] sm:$0xff] %v3282_v19  ;;  %6092 = vst [vmem:[#allocation26_spill] sm:$0xff] %v3284_v20 }
  0xe7   :  { %6093 = vst [vmem:[#allocation27_spill] sm:$0xff] %v3287_v22 }
  0xe9   :  { %v576_v27 = vpop.f32.mrb[4].mxu0  ;;  %v3244_v28 = vpop.f32.mrb[4].mxu1 }
  0xea   :  { %v2454_v29 = vpop.f32.mrb[5].mxu0  ;;  %v2538_v30 = vpop.f32.mrb[5].mxu1 }
  0xeb   :  { %v579_v31 = vpop.f32.mrb[6].mxu0  ;;  %v3246_v33 = vpop.f32.mrb[6].mxu1  ;;  %v3324_v29 = vmul.f32 %v3206_v2, %v568_v17  ;;  %v3327_v30 = vmul.f32 %v3210_v4, %v576_v27  ;;  %v1384_v17 = vsel %vm1382_vm3, %v3287_v22, 0.0 }
  0xec   :  { %v2455_v32 = vpop.f32.mrb[7].mxu0  ;;  %v2539_v34 = vpop.f32.mrb[7].mxu1 }
  0xed   :  { %6094 = vst [vmem:[#allocation28_spill] sm:$0xff] %v3324_v29  ;;  %6095 = vst [vmem:[#allocation29_spill] sm:$0xff] %v3327_v30  ;;  %v1550_v0 = vmul.f32 %v3324_v29, %v3324_v29  ;;  %v1552_v27 = vmul.f32 %v3327_v30, %v3327_v30 }
  0xf1   :  { %v584_v37 = vpop.f32.mrb[8].mxu0  ;;  %v3252_v38 = vpop.f32.mrb[8].mxu1 }
  0xf2   :  { %v2458_v39 = vpop.f32.mrb[9].mxu0  ;;  %v2542_v40 = vpop.f32.mrb[9].mxu1 }
  0xf3   :  { %v3254_v41 = vpop.f32.mrb[10].mxu0  ;;  %v3256_v43 = vpop.f32.mrb[10].mxu1  ;;  %v1551_v40 = vmul.f32 %v3287_v22, %v3287_v22 }
  0xf4   :  { %v2459_v42 = vpop.f32.mrb[11].mxu0  ;;  %v2543_v44 = vpop.f32.mrb[11].mxu1 }
  0xf9   :  { %v3262_v47 = vpop.f32.mrb[12].mxu0  ;;  %v3264_v48 = vpop.f32.mrb[12].mxu1 }
  0xfa   :  { %v2462_v49 = vpop.f32.mrb[13].mxu0  ;;  %v2546_v50 = vpop.f32.mrb[13].mxu1 }
  0xfb   :  { %v3266_v51 = vpop.f32.mrb[14].mxu0  ;;  %v3268_v53 = vpop.f32.mrb[14].mxu1  ;;  %v3342_v49 = vmul.f32 %v3214_v6, %v579_v31 }
  0xfc   :  { %v2463_v52 = vpop.f32.mrb[15].mxu0  ;;  %v2547_v54 = vpop.f32.mrb[15].mxu1 }
  0xfd   :  { %6096 = vst [vmem:[#allocation30_spill] sm:$0xff] %v3342_v49  ;;  %v3344_v52 = vpop.permute.xlu0 %1028  ;;  %v3346_v54 = vpop.permute.xlu1 %1023  ;;  %v1553_v6 = vmul.f32 %v3342_v49, %v3342_v49 }
  0xfe   :  { %6097 = vst [vmem:[#allocation31_spill] sm:$0xff] %v3344_v52  ;;  %6098 = vst [vmem:[#allocation32_spill] sm:$0xff] %v3346_v54 }
 0x101   :  { %v3274_v57 = vpop.f32.mrb[16].mxu0  ;;  %v3276_v58 = vpop.f32.mrb[16].mxu1 }
 0x102   :  { %v2466_v59 = vpop.f32.mrb[17].mxu0  ;;  %v2550_v60 = vpop.f32.mrb[17].mxu1 }
 0x103   :  { %v3278_v61 = vpop.f32.mrb[18].mxu0  ;;  %v3280_v63 = vpop.f32.mrb[18].mxu1  ;;  %v1383_v59 = vsel %vm1382_vm3, %v3324_v29, 0.0  ;;  %v1632_v60 = vsel %vm1382_vm3, %v1551_v40, 0.0 }
 0x104   :  { %v2467_v62 = vpop.f32.mrb[19].mxu0  ;;  %v2551_v1 = vpop.f32.mrb[19].mxu1 }
 0x105   :  { %v1386_v62 = vsel %vm1382_vm3, %v3327_v30, 0.0  ;;  %v3354_v1 = vmul.f32 %v3212_v5, %v584_v37  ;;  %v1388_v37 = vsel %vm1382_vm3, %v3342_v49, 0.0  ;;  %v3385_v49 = vpop.permute.xlu1 %1033 }
 0x106   :  { %6103 = vst [vmem:[#allocation37_spill] sm:$0xff] %v3385_v49 }
 0x107   :  { %6099 = vst [vmem:[#allocation33_spill] sm:$0xff] %v3354_v1 }
 0x109   :  { %v3319_v21 = vpop.f32.mrb[20].mxu0  ;;  %v3321_v24 = vpop.f32.mrb[20].mxu1 }
 0x10a   :  { %v2470_v32 = vpop.f32.mrb[21].mxu0  ;;  %v2554_v34 = vpop.f32.mrb[21].mxu1 }
 0x10b   :  { %v3329_v39 = vpop.f32.mrb[22].mxu0  ;;  %v3333_v44 = vpop.f32.mrb[22].mxu1  ;;  %v1385_v32 = vadd.f32 %v1384_v17, %v1383_v59  ;;  %v1554_v17 = vmul.f32 %v3354_v1, %v3354_v1 }
 0x10c   :  { %v2471_v42 = vpop.f32.mrb[23].mxu0  ;;  %v2555_v50 = vpop.f32.mrb[23].mxu1 }
 0x10d   :  { %v1631_v42 = vsel %vm1382_vm3, %v1550_v0, 0.0  ;;  %v1634_v50 = vsel %vm1382_vm3, %v1552_v27, 0.0  ;;  %v1387_v2 = vadd.f32 %v1386_v62, %v1385_v32  ;;  %v3372_v0 = vmul.f32 %v3218_v8, %v3254_v41 }
 0x10e   :  { %v1633_v3 = vadd.f32 %v1632_v60, %v1631_v42  ;;  %v1390_v60 = vsel %vm1382_vm3, %v3354_v1, 0.0  ;;  %v3381_v62 = vmul.f32 %v3216_v7, %v3262_v47  ;;  %v1638_v41 = vsel %vm1382_vm3, %v1554_v17, 0.0 }
 0x10f   :  { %6100 = vst [vmem:[#allocation34_spill] sm:$0xff] %v3372_v0  ;;  %v1389_v42 = vadd.f32 %v1388_v37, %v1387_v2  ;;  %v1392_v47 = vsel %vm1382_vm3, %v3372_v0, 0.0  ;;  %v3400_v37 = vmul.f32 %v3222_v10, %v3266_v51  ;;  %v3418_v10 = vpop.permute.xlu1 %1043 }
 0x110   :  { %v1635_v59 = vadd.f32 %v1634_v50, %v1633_v3  ;;  %6101 = vst [vmem:[#allocation35_spill] sm:$0xff] %v3381_v62  ;;  %v1555_v3 = vmul.f32 %v3372_v0, %v3372_v0  ;;  %v1556_v2 = vmul.f32 %v3381_v62, %v3381_v62  ;;  %6107 = vst [vmem:[#allocation41_spill] sm:$0xff] %v3418_v10 }
 0x111   :  { %v3356_v34 = vpop.f32.mrb[24].mxu0  ;;  %v3358_v31 = vpop.f32.mrb[24].mxu1  ;;  %6104 = vst [vmem:[#allocation38_spill] sm:$0xff] %v3400_v37 }
 0x112   :  { %v2474_v4 = vpop.f32.mrb[25].mxu0  ;;  %v2558_v40 = vpop.f32.mrb[25].mxu1 }
 0x113   :  { %v3364_v30 = vpop.f32.mrb[26].mxu0  ;;  %v3374_v5 = vpop.f32.mrb[26].mxu1  ;;  %v1636_v4 = vsel %vm1382_vm3, %v1553_v6, 0.0  ;;  %v1391_v6 = vadd.f32 %v1390_v60, %v1389_v42  ;;  %v3409_v60 = vmul.f32 %v3220_v9, %v3274_v57  ;;  %v1396_v57 = vsel %vm1382_vm3, %v3400_v37, 0.0 }
 0x114   :  { %v2475_v27 = vpop.f32.mrb[27].mxu0  ;;  %v2559_v32 = vpop.f32.mrb[27].mxu1  ;;  %v1637_v50 = vadd.f32 %v1636_v4, %v1635_v59  ;;  %v1640_v59 = vsel %vm1382_vm3, %v1555_v3, 0.0  ;;  %v1394_v4 = vsel %vm1382_vm3, %v3381_v62, 0.0 }
 0x115   :  { %v3383_v40 = vpop.permute.xlu0 %1038  ;;  %6105 = vst [vmem:[#allocation39_spill] sm:$0xff] %v3409_v60  ;;  %v1393_v22 = vadd.f32 %v1392_v47, %v1391_v6  ;;  %v3426_v6 = vmul.f32 %v3226_v12, %v3278_v61 }
 0x116   :  { %6102 = vst [vmem:[#allocation36_spill] sm:$0xff] %v3383_v40  ;;  %v1639_v7 = vadd.f32 %v1638_v41, %v1637_v50  ;;  %v1557_v41 = vmul.f32 %v3400_v37, %v3400_v37 }
 0x117   :  { %6108 = vst [vmem:[#allocation42_spill] sm:$0xff] %v3426_v6 }
 0x118   :  { %v1641_v50 = vadd.f32 %v1640_v59, %v1639_v7  ;;  %v1644_v7 = vsel %vm1382_vm3, %v1557_v41, 0.0  ;;  %v3437_v59 = vmul.f32 %v3224_v11, %v3319_v21  ;;  %v1400_v21 = vsel %vm1382_vm3, %v3426_v6, 0.0 }
 0x119   :  { %v3390_v27 = vpop.f32.mrb[28].mxu0  ;;  %v3392_v8 = vpop.f32.mrb[28].mxu1 }
 0x11a   :  { %v2478_v17 = vpop.f32.mrb[29].mxu0  ;;  %v2562_v32 = vpop.f32.mrb[29].mxu1  ;;  %6109 = vst [vmem:[#allocation43_spill] sm:$0xff] %v3437_v59 }
 0x11b   :  { %v3402_v1 = vpop.f32.mrb[30].mxu0  ;;  %v3411_v0 = vpop.f32.mrb[30].mxu1  ;;  %v1642_v17 = vsel %vm1382_vm3, %v1556_v2, 0.0  ;;  %v1395_v32 = vadd.f32 %v1394_v4, %v1393_v22  ;;  %v1398_v22 = vsel %vm1382_vm3, %v3409_v60, 0.0 }
 0x11c   :  { %v2479_v42 = vpop.f32.mrb[31].mxu0  ;;  %v2563_v51 = vpop.f32.mrb[31].mxu1  ;;  %v1643_v47 = vadd.f32 %v1642_v17, %v1641_v50  ;;  %v1559_v17 = vmul.f32 %v3426_v6, %v3426_v6 }
 0x11d   :  { %v3416_v3 = vpop.permute.xlu0 %1048  ;;  %v1558_v42 = vmul.f32 %v3409_v60, %v3409_v60  ;;  %v1397_v37 = vadd.f32 %v1396_v57, %v1395_v32  ;;  %v3452_v32 = vmul.f32 %v3230_v14, %v3329_v39 }
 0x11e   :  { %6106 = vst [vmem:[#allocation40_spill] sm:$0xff] %v3416_v3  ;;  %v1645_v41 = vadd.f32 %v1644_v7, %v1643_v47 }
 0x11f   :  { %v1646_v61 = vsel %vm1382_vm3, %v1558_v42, 0.0  ;;  %v1399_v29 = vadd.f32 %v1398_v22, %v1397_v37  ;;  %6111 = vst [vmem:[#allocation45_spill] sm:$0xff] %v3452_v32  ;;  %v1402_v37 = vsel %vm1382_vm3, %v3437_v59, 0.0 }
 0x120   :  { %v1647_v57 = vadd.f32 %v1646_v61, %v1645_v41  ;;  %v1561_v61 = vmul.f32 %v3452_v32, %v3452_v32 }
 0x121   :  { %v3428_v2 = vpop.f32.mrb[32].mxu0  ;;  %v3430_v51 = vpop.f32.mrb[32].mxu1  ;;  %v1401_v47 = vadd.f32 %v1400_v21, %v1399_v29  ;;  %v3478_v21 = vmul.f32 %v3234_v16, %v3364_v30 }
 0x122   :  { %v2482_v4 = vpop.f32.mrb[33].mxu0  ;;  %v2566_v9 = vpop.f32.mrb[33].mxu1 }
 0x123   :  { %v3439_v62 = vpop.f32.mrb[34].mxu0  ;;  %v3444_v12 = vpop.f32.mrb[34].mxu1  ;;  %v1560_v9 = vmul.f32 %v3437_v59, %v3437_v59  ;;  %6115 = vst [vmem:[#allocation49_spill] sm:$0xff] %v3478_v21  ;;  %v1408_v16 = vsel %vm1382_vm3, %v3478_v21, 0.0 }
 0x124   :  { %v2483_v50 = vpop.f32.mrb[35].mxu0  ;;  %6110 = vst [vmem:[#allocation44_spill] sm:$0xff] %v3444_v12  ;;  %v2567_v60 = vpop.f32.mrb[35].mxu1 }
 0x125   :  { %v3454_v42 = vpop.permute.xlu0 %1058  ;;  %v3456_v4 = vpop.permute.xlu1 %1053  ;;  %v1648_v50 = vsel %vm1382_vm3, %v1559_v17, 0.0  ;;  %v3463_v60 = vmul.f32 %v3228_v13, %v3356_v34  ;;  %v1650_v39 = vsel %vm1382_vm3, %v1560_v9, 0.0  ;;  %v1403_v17 = vadd.f32 %v1402_v37, %v1401_v47 }
 0x126   :  { %6112 = vst [vmem:[#allocation46_spill] sm:$0xff] %v3454_v42  ;;  %6113 = vst [vmem:[#allocation47_spill] sm:$0xff] %v3456_v4  ;;  %v1649_v11 = vadd.f32 %v1648_v50, %v1647_v57  ;;  %v1404_v34 = vsel %vm1382_vm3, %v3452_v32, 0.0  ;;  %v3485_v50 = vmul.f32 %v3232_v15, %v3390_v27 }
 0x127   :  { %6114 = vst [vmem:[#allocation48_spill] sm:$0xff] %v3463_v60  ;;  %v1562_v29 = vmul.f32 %v3463_v60, %v3463_v60  ;;  %v1406_v57 = vsel %vm1382_vm3, %v3463_v60, 0.0  ;;  %v1405_v37 = vadd.f32 %v1404_v34, %v1403_v17  ;;  %v3502_v17 = vmul.f32 %v3242_v26, %v3402_v1 }
 0x128   :  { %v1651_v59 = vadd.f32 %v1650_v39, %v1649_v11  ;;  %6116 = vst [vmem:[#allocation50_spill] sm:$0xff] %v3485_v50  ;;  %v1564_v27 = vmul.f32 %v3485_v50, %v3485_v50 }
 0x129   :  { %v640_v7 = vpop.f32.mrb[36].mxu0  ;;  %v3465_v22 = vpop.f32.mrb[36].mxu1  ;;  %v1654_v30 = vsel %vm1382_vm3, %v1562_v29, 0.0  ;;  %v1407_v39 = vadd.f32 %v1406_v57, %v1405_v37  ;;  %6120 = vst [vmem:[#allocation54_spill] sm:$0xff] %v3502_v17  ;;  %v3511_v57 = vmul.f32 %v3240_v25, %v3428_v2  ;;  %v1412_v26 = vsel %vm1382_vm3, %v3502_v17, 0.0 }
 0x12a   :  { %v2486_v41 = vpop.f32.mrb[37].mxu0  ;;  %v2570_v14 = vpop.f32.mrb[37].mxu1  ;;  %v1658_v1 = vsel %vm1382_vm3, %v1564_v27, 0.0 }
 0x12b   :  { %v643_v6 = vpop.f32.mrb[38].mxu0  ;;  %v3470_v12 = vpop.f32.mrb[38].mxu1  ;;  %v1652_v14 = vsel %vm1382_vm3, %v1561_v61, 0.0  ;;  %6121 = vst [vmem:[#allocation55_spill] sm:$0xff] %v3511_v57  ;;  %v1566_v2 = vmul.f32 %v3511_v57, %v3511_v57 }
 0x12c   :  { %v2487_v9 = vpop.f32.mrb[39].mxu0  ;;  %v2571_v13 = vpop.f32.mrb[39].mxu1  ;;  %v1653_v11 = vadd.f32 %v1652_v14, %v1651_v59  ;;  %v1410_v14 = vsel %vm1382_vm3, %v3485_v50, 0.0 }
 0x12d   :  { %v3487_v47 = vpop.permute.xlu0 %1068  ;;  %v3489_v41 = vpop.permute.xlu1 %1063  ;;  %v1563_v13 = vmul.f32 %v3478_v21, %v3478_v21 }
 0x12e   :  { %6117 = vst [vmem:[#allocation51_spill] sm:$0xff] %v3487_v47  ;;  %6118 = vst [vmem:[#allocation52_spill] sm:$0xff] %v3489_v41  ;;  %v1655_v15 = vadd.f32 %v1654_v30, %v1653_v11  ;;  %v1565_v30 = vmul.f32 %v3502_v17, %v3502_v17 }
 0x12f   :  { %v1656_v59 = vsel %vm1382_vm3, %v1563_v13, 0.0 }
 0x130   :  { %v1657_v11 = vadd.f32 %v1656_v59, %v1655_v15  ;;  %v1660_v15 = vsel %vm1382_vm3, %v1565_v30, 0.0  ;;  %v3534_v59 = vmul.f32 %v3248_v35, %v640_v7 }
 0x131   :  { %v648_v61 = vpop.f32.mrb[40].mxu0  ;;  %v3494_v9 = vpop.f32.mrb[40].mxu1 }
 0x132   :  { %6119 = vst [vmem:[#allocation53_spill] sm:$0xff] %v3494_v9  ;;  %v2490_v34 = vpop.f32.mrb[41].mxu0  ;;  %v2574_v29 = vpop.f32.mrb[41].mxu1  ;;  %v1409_v9 = vadd.f32 %v1408_v16, %v1407_v39  ;;  %v3526_v16 = vmul.f32 %v3250_v36, %v3439_v62  ;;  %6126 = vst [vmem:[#allocation60_spill] sm:$0xff] %v3534_v59  ;;  %v1662_v62 = vsel %vm1382_vm3, %v1566_v2, 0.0  ;;  %v1568_v7 = vmul.f32 %v3534_v59, %v3534_v59 }
 0x133   :  { %v651_v60 = vpop.f32.mrb[42].mxu0  ;;  %v3504_v32 = vpop.f32.mrb[42].mxu1 }
 0x134   :  { %v2491_v37 = vpop.f32.mrb[43].mxu0  ;;  %v2575_v21 = vpop.f32.mrb[43].mxu1  ;;  %v1411_v34 = vadd.f32 %v1410_v14, %v1409_v9  ;;  %6124 = vst [vmem:[#allocation58_spill] sm:$0xff] %v3526_v16  ;;  %v1414_v9 = vsel %vm1382_vm3, %v3511_v57, 0.0  ;;  %v1416_v57 = vsel %vm1382_vm3, %v3526_v16, 0.0 }
 0x135   :  { %v3516_v29 = vpop.permute.xlu0 %1078  ;;  %v3518_v13 = vpop.permute.xlu1 %1073  ;;  %v1659_v21 = vadd.f32 %v1658_v1, %v1657_v11  ;;  %v1567_v1 = vmul.f32 %v3526_v16, %v3526_v16 }
 0x136   :  { %6122 = vst [vmem:[#allocation56_spill] sm:$0xff] %v3516_v29  ;;  %6123 = vst [vmem:[#allocation57_spill] sm:$0xff] %v3518_v13  ;;  %v1413_v25 = vadd.f32 %v1412_v26, %v1411_v34  ;;  %v3546_v26 = vmul.f32 %v3260_v46, %v643_v6  ;;  %v1666_v6 = vsel %vm1382_vm3, %v1568_v7, 0.0 }
 0x137   :  { %v1661_v30 = vadd.f32 %v1660_v15, %v1659_v21 }
 0x138   :  { %6127 = vst [vmem:[#allocation61_spill] sm:$0xff] %v3546_v26 }
 0x139   :  { %v656_v39 = vpop.f32.mrb[44].mxu0  ;;  %v3528_v27 = vpop.f32.mrb[44].mxu1  ;;  %v1663_v34 = vadd.f32 %v1662_v62, %v1661_v30  ;;  %v1569_v62 = vmul.f32 %v3546_v26, %v3546_v26 }
 0x13a   :  { %6125 = vst [vmem:[#allocation59_spill] sm:$0xff] %v3528_v27  ;;  %v2494_v14 = vpop.f32.mrb[45].mxu0  ;;  %v2578_v37 = vpop.f32.mrb[45].mxu1  ;;  %v1415_v27 = vadd.f32 %v1414_v9, %v1413_v25  ;;  %v3556_v25 = vmul.f32 %v3258_v45, %v648_v61  ;;  %v1420_v61 = vsel %vm1382_vm3, %v3546_v26, 0.0 }
 0x13b   :  { %v659_v17 = vpop.f32.mrb[46].mxu0  ;;  %v3536_v50 = vpop.f32.mrb[46].mxu1  ;;  %v1664_v37 = vsel %vm1382_vm3, %v1567_v1, 0.0 }
 0x13c   :  { %v2495_v11 = vpop.f32.mrb[47].mxu0  ;;  %v2579_v36 = vpop.f32.mrb[47].mxu1  ;;  %6130 = vst [vmem:[#allocation64_spill] sm:$0xff] %v3556_v25  ;;  %v1417_v21 = vadd.f32 %v1416_v57, %v1415_v27  ;;  %v1665_v46 = vadd.f32 %v1664_v37, %v1663_v34  ;;  %v1570_v57 = vmul.f32 %v3556_v25, %v3556_v25  ;;  %v3570_v27 = vmul.f32 %v3272_v56, %v651_v60 }
 0x13d   :  { %v3548_v14 = vpop.permute.xlu0 %1088  ;;  %v3550_v2 = vpop.permute.xlu1 %1083  ;;  %v1418_v36 = vsel %vm1382_vm3, %v3534_v59, 0.0  ;;  %v1422_v34 = vsel %vm1382_vm3, %v3556_v25, 0.0  ;;  %v3576_v37 = vmul.f32 %v3270_v55, %v656_v39  ;;  %v3592_v39 = vmul.f32 %v3284_v20, %v659_v17 }
 0x13e   :  { %6128 = vst [vmem:[#allocation62_spill] sm:$0xff] %v3548_v14  ;;  %6129 = vst [vmem:[#allocation63_spill] sm:$0xff] %v3550_v2  ;;  %v1419_v35 = vadd.f32 %v1418_v36, %v1417_v21  ;;  %v1667_v59 = vadd.f32 %v1666_v6, %v1665_v46  ;;  %v1670_v26 = vsel %vm1382_vm3, %v1570_v57, 0.0  ;;  %v1571_v60 = vmul.f32 %v3570_v27, %v3570_v27 }
 0x13f   :  { %6131 = vst [vmem:[#allocation65_spill] sm:$0xff] %v3570_v27  ;;  %6132 = vst [vmem:[#allocation66_spill] sm:$0xff] %v3576_v37 }
 0x140   :  { %v1421_v36 = vadd.f32 %v1420_v61, %v1419_v35  ;;  %v1572_v35 = vmul.f32 %v3576_v37, %v3576_v37  ;;  %6136 = vst [vmem:[#allocation70_spill] sm:$0xff] %v3592_v39 }
 0x141   :  { %v664_v15 = vpop.f32.mrb[48].mxu0  ;;  %v3558_v9 = vpop.f32.mrb[48].mxu1 }
 0x142   :  { %v2498_v11 = vpop.f32.mrb[49].mxu0  ;;  %v2582_v30 = vpop.f32.mrb[49].mxu1  ;;  %v1423_v46 = vadd.f32 %v1422_v34, %v1421_v36  ;;  %v3600_v34 = vmul.f32 %v3282_v19, %v664_v15  ;;  %v1674_v17 = vsel %vm1382_vm3, %v1572_v35, 0.0 }
 0x143   :  { %v667_v1 = vpop.f32.mrb[50].mxu0  ;;  %v3563_v16 = vpop.f32.mrb[50].mxu1  ;;  %v1668_v11 = vsel %vm1382_vm3, %v1569_v62, 0.0 }
 0x144   :  { %v2499_v7 = vpop.f32.mrb[51].mxu0  ;;  %v2583_v45 = vpop.f32.mrb[51].mxu1  ;;  %6137 = vst [vmem:[#allocation71_spill] sm:$0xff] %v3600_v34  ;;  %v1574_v15 = vmul.f32 %v3600_v34, %v3600_v34 }
 0x145   :  { %v3578_v21 = vpop.permute.xlu0 %1098  ;;  %v3580_v30 = vpop.permute.xlu1 %1093  ;;  %v1669_v45 = vadd.f32 %v1668_v11, %v1667_v59  ;;  %v1424_v7 = vsel %vm1382_vm3, %v3570_v27, 0.0  ;;  %v1672_v59 = vsel %vm1382_vm3, %v1571_v60, 0.0  ;;  %v1426_v11 = vsel %vm1382_vm3, %v3576_v37, 0.0 }
 0x146   :  { %6133 = vst [vmem:[#allocation67_spill] sm:$0xff] %v3578_v21  ;;  %6134 = vst [vmem:[#allocation68_spill] sm:$0xff] %v3580_v30  ;;  %v1428_v60 = vsel %vm1382_vm3, %v3592_v39, 0.0 }
 0x147   :  { %v1671_v57 = vadd.f32 %v1670_v26, %v1669_v45 }
 0x149   :  { %v672_v6 = vpop.f32.mrb[52].mxu0  ;;  %v3585_v62 = vpop.f32.mrb[52].mxu1  ;;  %v1673_v26 = vadd.f32 %v1672_v59, %v1671_v57 }
 0x14a   :  { %6135 = vst [vmem:[#allocation69_spill] sm:$0xff] %v3585_v62  ;;  %v2502_v61 = vpop.f32.mrb[53].mxu0  ;;  %v2586_v55 = vpop.f32.mrb[53].mxu1  ;;  %v1425_v62 = vadd.f32 %v1424_v7, %v1423_v46  ;;  %v3622_v59 = vmul.f32 %v3344_v52, %v672_v6 }
 0x14b   :  { %v675_v56 = vpop.f32.mrb[54].mxu0  ;;  %v3594_v25 = vpop.f32.mrb[54].mxu1  ;;  %v1573_v55 = vmul.f32 %v3592_v39, %v3592_v39  ;;  %v1675_v46 = vadd.f32 %v1674_v17, %v1673_v26 }
 0x14c   :  { %v2503_v36 = vpop.f32.mrb[55].mxu0  ;;  %v2587_v27 = vpop.f32.mrb[55].mxu1  ;;  %v1427_v45 = vadd.f32 %v1426_v11, %v1425_v62  ;;  %v1430_v62 = vsel %vm1382_vm3, %v3600_v34, 0.0  ;;  %6142 = vst [vmem:[#allocation76_spill] sm:$0xff] %v3622_v59  ;;  %v1576_v6 = vmul.f32 %v3622_v59, %v3622_v59 }
 0x14d   :  { %v3605_v61 = vpop.permute.xlu0 %1108  ;;  %v3607_v20 = vpop.permute.xlu1 %1103  ;;  %v3614_v27 = vmul.f32 %v3346_v54, %v667_v1  ;;  %v1676_v57 = vsel %vm1382_vm3, %v1573_v55, 0.0  ;;  %v1678_v1 = vsel %vm1382_vm3, %v1574_v15, 0.0 }
 0x14e   :  { %6138 = vst [vmem:[#allocation72_spill] sm:$0xff] %v3605_v61  ;;  %6139 = vst [vmem:[#allocation73_spill] sm:$0xff] %v3607_v20  ;;  %v1429_v19 = vadd.f32 %v1428_v60, %v1427_v45  ;;  %v1677_v55 = vadd.f32 %v1676_v57, %v1675_v46  ;;  %v3634_v45 = vmul.f32 %v3385_v49, %v675_v56  ;;  %v1682_v56 = vsel %vm1382_vm3, %v1576_v6, 0.0 }
 0x14f   :  { %6140 = vst [vmem:[#allocation74_spill] sm:$0xff] %v3614_v27  ;;  %v1575_v17 = vmul.f32 %v3614_v27, %v3614_v27  ;;  %v1432_v34 = vsel %vm1382_vm3, %v3614_v27, 0.0 }
 0x150   :  { %6143 = vst [vmem:[#allocation77_spill] sm:$0xff] %v3634_v45  ;;  %v1679_v60 = vadd.f32 %v1678_v1, %v1677_v55  ;;  %v1577_v1 = vmul.f32 %v3634_v45, %v3634_v45 }
 0x151   :  { %v680_v7 = vpop.f32.mrb[56].mxu0  ;;  %v3616_v35 = vpop.f32.mrb[56].mxu1 }
 0x152   :  { %6141 = vst [vmem:[#allocation75_spill] sm:$0xff] %v3616_v35  ;;  %v2506_v11 = vpop.f32.mrb[57].mxu0  ;;  %v2590_v36 = vpop.f32.mrb[57].mxu1  ;;  %v1431_v35 = vadd.f32 %v1430_v62, %v1429_v19  ;;  %v3644_v19 = vmul.f32 %v3383_v40, %v680_v7  ;;  %v1436_v7 = vsel %vm1382_vm3, %v3634_v45, 0.0 }
 0x153   :  { %v683_v39 = vpop.f32.mrb[58].mxu0  ;;  %v3624_v37 = vpop.f32.mrb[58].mxu1  ;;  %v1680_v36 = vsel %vm1382_vm3, %v1575_v17, 0.0 }
 0x154   :  { %v2507_v26 = vpop.f32.mrb[59].mxu0  ;;  %v2591_v54 = vpop.f32.mrb[59].mxu1  ;;  %6146 = vst [vmem:[#allocation80_spill] sm:$0xff] %v3644_v19  ;;  %v1433_v46 = vadd.f32 %v1432_v34, %v1431_v35  ;;  %v1681_v49 = vadd.f32 %v1680_v36, %v1679_v60  ;;  %v1578_v34 = vmul.f32 %v3644_v19, %v3644_v19  ;;  %v3658_v35 = vmul.f32 %v3418_v10, %v683_v39 }
 0x155   :  { %v3636_v11 = vpop.permute.xlu0 %1118  ;;  %v3638_v15 = vpop.permute.xlu1 %1113  ;;  %v1434_v54 = vsel %vm1382_vm3, %v3622_v59, 0.0  ;;  %v1438_v60 = vsel %vm1382_vm3, %v3644_v19, 0.0 }
 0x156   :  { %6144 = vst [vmem:[#allocation78_spill] sm:$0xff] %v3636_v11  ;;  %6145 = vst [vmem:[#allocation79_spill] sm:$0xff] %v3638_v15  ;;  %v1435_v52 = vadd.f32 %v1434_v54, %v1433_v46  ;;  %v1683_v59 = vadd.f32 %v1682_v56, %v1681_v49  ;;  %v1686_v45 = vsel %vm1382_vm3, %v1578_v34, 0.0  ;;  %v1579_v39 = vmul.f32 %v3658_v35, %v3658_v35 }
 0x157   :  { %6147 = vst [vmem:[#allocation81_spill] sm:$0xff] %v3658_v35 }
 0x158   :  { %v1437_v54 = vadd.f32 %v1436_v7, %v1435_v52 }
 0x159   :  { %v688_v57 = vpop.f32.mrb[60].mxu0  ;;  %v3646_v62 = vpop.f32.mrb[60].mxu1 }
 0x15a   :  { %v2510_v26 = vpop.f32.mrb[61].mxu0  ;;  %v2594_v55 = vpop.f32.mrb[61].mxu1  ;;  %v3664_v36 = vmul.f32 %v3416_v3, %v688_v57  ;;  %v1439_v49 = vadd.f32 %v1438_v60, %v1437_v54 }
 0x15b   :  { %v691_v17 = vpop.f32.mrb[62].mxu0  ;;  %v3651_v27 = vpop.f32.mrb[62].mxu1  ;;  %v1684_v26 = vsel %vm1382_vm3, %v1577_v1, 0.0 }
 0x15c   :  { %v2511_v6 = vpop.f32.mrb[63].mxu0  ;;  %v2595_v40 = vpop.f32.mrb[63].mxu1  ;;  %6148 = vst [vmem:[#allocation82_spill] sm:$0xff] %v3664_v36  ;;  %v1580_v52 = vmul.f32 %v3664_v36, %v3664_v36  ;;  %v3680_v57 = vmul.f32 %v3456_v4, %v691_v17 }
 0x15d   :  { %v3666_v46 = vpop.permute.xlu0 %1128  ;;  %v3668_v55 = vpop.permute.xlu1 %1123  ;;  %v1685_v40 = vadd.f32 %v1684_v26, %v1683_v59  ;;  %v1440_v6 = vsel %vm1382_vm3, %v3658_v35, 0.0  ;;  %v1688_v59 = vsel %vm1382_vm3, %v1579_v39, 0.0  ;;  %v1442_v26 = vsel %vm1382_vm3, %v3664_v36, 0.0 }
 0x15e   :  { %6149 = vst [vmem:[#allocation83_spill] sm:$0xff] %v3666_v46  ;;  %6150 = vst [vmem:[#allocation84_spill] sm:$0xff] %v3668_v55  ;;  %v1690_v17 = vsel %vm1382_vm3, %v1580_v52, 0.0  ;;  %v1444_v39 = vsel %vm1382_vm3, %v3680_v57, 0.0 }
 0x15f   :  { %6152 = vst [vmem:[#allocation86_spill] sm:$0xff] %v3680_v57  ;;  %v1687_v34 = vadd.f32 %v1686_v45, %v1685_v40 }
 0x161   :  { %v696_v56 = vpop.f32.mrb[64].mxu0  ;;  %v3673_v1 = vpop.f32.mrb[64].mxu1  ;;  %v1689_v45 = vadd.f32 %v1688_v59, %v1687_v34 }
 0x162   :  { %6151 = vst [vmem:[#allocation85_spill] sm:$0xff] %v3673_v1  ;;  %v2514_v7 = vpop.f32.mrb[65].mxu0  ;;  %v2598_v3 = vpop.f32.mrb[65].mxu1  ;;  %v3688_v60 = vmul.f32 %v3454_v42, %v696_v56  ;;  %v1441_v1 = vadd.f32 %v1440_v6, %v1439_v49 }
 0x163   :  { %v699_v10 = vpop.f32.mrb[66].mxu0  ;;  %v3682_v19 = vpop.f32.mrb[66].mxu1  ;;  %v1581_v3 = vmul.f32 %v3680_v57, %v3680_v57  ;;  %v1691_v49 = vadd.f32 %v1690_v17, %v1689_v45 }
 0x164   :  { %6153 = vst [vmem:[#allocation87_spill] sm:$0xff] %v3688_v60  ;;  %v2515_v54 = vpop.f32.mrb[67].mxu0  ;;  %v2599_v35 = vpop.f32.mrb[67].mxu1  ;;  %v1443_v40 = vadd.f32 %v1442_v26, %v1441_v1  ;;  %v1582_v56 = vmul.f32 %v3688_v60, %v3688_v60  ;;  %v1446_v1 = vsel %vm1382_vm3, %v3688_v60, 0.0 }
 0x165   :  { %v3693_v7 = vpop.permute.xlu0 %1138  ;;  %v3695_v4 = vpop.permute.xlu1 %1133  ;;  %v3702_v35 = vmul.f32 %v3489_v41, %v699_v10  ;;  %v1692_v34 = vsel %vm1382_vm3, %v1581_v3, 0.0 }
 0x166   :  { %6154 = vst [vmem:[#allocation88_spill] sm:$0xff] %v3693_v7  ;;  %6155 = vst [vmem:[#allocation89_spill] sm:$0xff] %v3695_v4  ;;  %v1445_v42 = vadd.f32 %v1444_v39, %v1443_v40  ;;  %v1694_v10 = vsel %vm1382_vm3, %v1582_v56, 0.0  ;;  %v1693_v3 = vadd.f32 %v1692_v34, %v1691_v49 }
 0x167   :  { %6156 = vst [vmem:[#allocation90_spill] sm:$0xff] %v3702_v35  ;;  %v1583_v17 = vmul.f32 %v3702_v35, %v3702_v35  ;;  %v1448_v60 = vsel %vm1382_vm3, %v3702_v35, 0.0 }
 0x168   :  { %v1695_v39 = vadd.f32 %v1694_v10, %v1693_v3 }
 0x169   :  { %v704_v6 = vpop.f32.mrb[68].mxu0  ;;  %v3704_v52 = vpop.f32.mrb[68].mxu1 }
 0x16a   :  { %6157 = vst [vmem:[#allocation91_spill] sm:$0xff] %v3704_v52  ;;  %v3710_v59 = vmul.f32 %v3487_v47, %v704_v6  ;;  %v2518_v26 = vpop.f32.mrb[69].mxu0  ;;  %v2602_v54 = vpop.f32.mrb[69].mxu1  ;;  %v1447_v52 = vadd.f32 %v1446_v1, %v1445_v42 }
 0x16b   :  { %v707_v57 = vpop.f32.mrb[70].mxu0  ;;  %v3712_v36 = vpop.f32.mrb[70].mxu1  ;;  %v1696_v54 = vsel %vm1382_vm3, %v1583_v17, 0.0 }
 0x16c   :  { %6158 = vst [vmem:[#allocation92_spill] sm:$0xff] %v3710_v59  ;;  %6159 = vst [vmem:[#allocation93_spill] sm:$0xff] %v3712_v36  ;;  %v2519_v45 = vpop.f32.mrb[71].mxu0  ;;  %v2603_v41 = vpop.f32.mrb[71].mxu1  ;;  %v1584_v6 = vmul.f32 %v3710_v59, %v3710_v59  ;;  %v3722_v40 = vmul.f32 %v3518_v13, %v707_v57  ;;  %v1449_v42 = vadd.f32 %v1448_v60, %v1447_v52 }
 0x16d   :  { %v3724_v26 = vpop.permute.xlu0 %1148  ;;  %v3726_v56 = vpop.permute.xlu1 %1143  ;;  %v1450_v41 = vsel %vm1382_vm3, %v3710_v59, 0.0  ;;  %v1697_v13 = vadd.f32 %v1696_v54, %v1695_v39 }
 0x16e   :  { %6160 = vst [vmem:[#allocation94_spill] sm:$0xff] %v3722_v40  ;;  %6161 = vst [vmem:[#allocation95_spill] sm:$0xff] %v3724_v26  ;;  %v1698_v1 = vsel %vm1382_vm3, %v1584_v6, 0.0  ;;  %v1585_v57 = vmul.f32 %v3722_v40, %v3722_v40  ;;  %v1451_v47 = vadd.f32 %v1450_v41, %v1449_v42  ;;  %v1452_v60 = vsel %vm1382_vm3, %v3722_v40, 0.0 }
 0x16f   :  { %6162 = vst [vmem:[#allocation96_spill] sm:$0xff] %v3726_v56 }
 0x170   :  { %v1453_v41 = vadd.f32 %v1452_v60, %v1451_v47 }
 0x171   :  { %v712_v49 = vpop.f32.mrb[72].mxu0  ;;  %v3731_v34 = vpop.f32.mrb[72].mxu1 }
 0x172   :  { %6163 = vst [vmem:[#allocation97_spill] sm:$0xff] %v3731_v34  ;;  %v3737_v10 = vmul.f32 %v3516_v29, %v712_v49  ;;  %v2522_v45 = vpop.f32.mrb[73].mxu0  ;;  %v2606_v3 = vpop.f32.mrb[73].mxu1  ;;  %v1699_v34 = vadd.f32 %v1698_v1, %v1697_v13  ;;  %v1700_v49 = vsel %vm1382_vm3, %v1585_v57, 0.0 }
 0x173   :  { %v715_v17 = vpop.f32.mrb[74].mxu0  ;;  %v3739_v35 = vpop.f32.mrb[74].mxu1 }
 0x174   :  { %6164 = vst [vmem:[#allocation98_spill] sm:$0xff] %v3737_v10  ;;  %v1586_v52 = vmul.f32 %v3737_v10, %v3737_v10  ;;  %v2523_v6 = vpop.f32.mrb[75].mxu0  ;;  %v2607_v59 = vpop.f32.mrb[75].mxu1  ;;  %v3746_v36 = vmul.f32 %v3550_v2, %v715_v17  ;;  %v1454_v39 = vsel %vm1382_vm3, %v3737_v10, 0.0 }
 0x175   :  { %v3751_v54 = vpop.permute.xlu1 %1153  ;;  %v3753_v42 = vpop.permute.xlu0 %1158  ;;  %v1701_v59 = vadd.f32 %v1700_v49, %v1699_v34  ;;  %v1455_v13 = vadd.f32 %v1454_v39, %v1453_v41 }
 0x176   :  { %6165 = vst [vmem:[#allocation99_spill] sm:$0xff] %v3746_v36  ;;  %6166 = vst [vmem:[#allocation100_spill] sm:$0xff] %v3751_v54  ;;  %v1702_v45 = vsel %vm1382_vm3, %v1586_v52, 0.0  ;;  %v1587_v3 = vmul.f32 %v3746_v36, %v3746_v36  ;;  %v1456_v57 = vsel %vm1382_vm3, %v3746_v36, 0.0 }
 0x177   :  { %6167 = vst [vmem:[#allocation101_spill] sm:$0xff] %v3753_v42  ;;  %v1703_v60 = vadd.f32 %v1702_v45, %v1701_v59  ;;  %v1457_v36 = vadd.f32 %v1456_v57, %v1455_v13 }
 0x178   :  { %v1704_v52 = vsel %vm1382_vm3, %v1587_v3, 0.0 }
 0x179   :  { %v720_v1 = vpop.f32.mrb[76].mxu0  ;;  %v3758_v17 = vpop.f32.mrb[76].mxu1 }
 0x17a   :  { %v3763_v6 = vmul.f32 %v3548_v14, %v720_v1  ;;  %v2526_v2 = vpop.f32.mrb[77].mxu0  ;;  %v2610_v47 = vpop.f32.mrb[77].mxu1 }
 0x17b   :  { %v723_v29 = vpop.f32.mrb[78].mxu0  ;;  %v891_v10 = vpop.f32.mrb[78].mxu1 }
 0x17c   :  { %v1458_v34 = vsel %vm1382_vm3, %v3763_v6, 0.0  ;;  %v1588_v49 = vmul.f32 %v3763_v6, %v3763_v6  ;;  %v2527_v39 = vpop.f32.mrb[79].mxu0  ;;  %v2611_v41 = vpop.f32.mrb[79].mxu1  ;;  %v3773_v1 = vmul.f32 %v3580_v30, %v723_v29  ;;  %v1705_v10 = vadd.f32 %v1704_v52, %v1703_v60 }
 0x17d   :  { %v3770_v40 = vpop.permute.xlu1 %1163  ;;  %v3776_v45 = vpop.permute.xlu0 %1168  ;;  %v1459_v3 = vadd.f32 %v1458_v34, %v1457_v36  ;;  %v3784_v39 = vmul.f32 %v3605_v61, %v3236_v18  ;;  %v3794_v34 = vmul.f32 %v3638_v15, %v3238_v23  ;;  %v3809_v23 = vmul.f32 %v3636_v11, %v3244_v28 }
 0x17e   :  { %6168 = vst [vmem:[#allocation102_spill] sm:$0xff] %v3770_v40  ;;  %v1706_v2 = vsel %vm1382_vm3, %v1588_v49, 0.0  ;;  %6169 = vst [vmem:[#allocation103_spill] sm:$0xff] %v3776_v45  ;;  %v1589_v59 = vmul.f32 %v3773_v1, %v3773_v1  ;;  %v1460_v47 = vsel %vm1382_vm3, %v3773_v1, 0.0  ;;  %v3822_v28 = vmul.f32 %v3668_v55, %v3246_v33 }
 0x17f   :  { %v1707_v13 = vadd.f32 %v1706_v2, %v1705_v10  ;;  %v1461_v36 = vadd.f32 %v1460_v47, %v1459_v3  ;;  %v1592_v3 = vmul.f32 %v3784_v39, %v3784_v39 }
 0x180   :  { %v1708_v29 = vsel %vm1382_vm3, %v1589_v59, 0.0 }
 0x181   :  { %v728_v57 = vpop.f32.mrb[80].mxu0  ;;  %v3790_v60 = vpop.permute.xlu1 %1173  ;;  %v1709_v47 = vadd.f32 %v1708_v29, %v1707_v13  ;;  %v1593_v13 = vmul.f32 %v3794_v34, %v3794_v34  ;;  %v1714_v11 = vsel %vm1382_vm3, %v1592_v3, 0.0  ;;  %v3845_v3 = vmul.f32 %v3695_v4, %v3256_v43 }
 0x182   :  { %v3788_v49 = vmul.f32 %v3578_v21, %v728_v57  ;;  %v2530_v41 = vpop.f32.mrb[81].mxu0  ;;  %6170 = vst [vmem:[#allocation104_spill] sm:$0xff] %v3790_v60  ;;  %v3803_v57 = vpop.permute.xlu0 %1178  ;;  %v1466_v21 = vsel %vm1382_vm3, %v3784_v39, 0.0 }
 0x183   :  { %v731_v52 = vpop.f32.mrb[82].mxu0  ;;  %6171 = vst [vmem:[#allocation105_spill] sm:$0xff] %v3803_v57  ;;  %v1716_v55 = vsel %vm1382_vm3, %v1593_v13, 0.0  ;;  %v3854_v13 = vmul.f32 %v3693_v7, %v3264_v48 }
 0x184   :  { %v1462_v18 = vsel %vm1382_vm3, %v3788_v49, 0.0  ;;  %v1590_v2 = vmul.f32 %v3788_v49, %v3788_v49  ;;  %v3801_v10 = vmul.f32 %v3607_v20, %v731_v52  ;;  %v2531_v59 = vpop.f32.mrb[83].mxu0 }
 0x185   :  { %v1463_v41 = vadd.f32 %v1462_v18, %v1461_v36  ;;  %v3825_v36 = vpop.permute.xlu1 %1183 }
 0x186   :  { %v1710_v15 = vsel %vm1382_vm3, %v1590_v2, 0.0  ;;  %v1464_v61 = vsel %vm1382_vm3, %v3801_v10, 0.0  ;;  %v1591_v52 = vmul.f32 %v3801_v10, %v3801_v10  ;;  %6172 = vst [vmem:[#allocation106_spill] sm:$0xff] %v3825_v36  ;;  %v3836_v33 = vpop.permute.xlu0 %1188 }
 0x187   :  { %v1711_v59 = vadd.f32 %v1710_v15, %v1709_v47  ;;  %v1465_v20 = vadd.f32 %v1464_v61, %v1463_v41  ;;  %v1468_v61 = vsel %vm1382_vm3, %v3794_v34, 0.0  ;;  %v1594_v15 = vmul.f32 %v3809_v23, %v3809_v23  ;;  %6173 = vst [vmem:[#allocation107_spill] sm:$0xff] %v3836_v33 }
 0x188   :  { %v1712_v29 = vsel %vm1382_vm3, %v1591_v52, 0.0  ;;  %v3834_v47 = vmul.f32 %v3666_v46, %v3252_v38 }
 0x189   :  { %v1467_v18 = vadd.f32 %v1466_v21, %v1465_v20  ;;  %v1713_v2 = vadd.f32 %v1712_v29, %v1711_v59  ;;  %v1470_v20 = vsel %vm1382_vm3, %v3809_v23, 0.0  ;;  %v1595_v21 = vmul.f32 %v3822_v28, %v3822_v28 }
 0x18a   :  { %v1718_v38 = vsel %vm1382_vm3, %v1594_v15, 0.0  ;;  %v1597_v15 = vmul.f32 %v3845_v3, %v3845_v3 }
 0x18b   :  { %v1469_v41 = vadd.f32 %v1468_v61, %v1467_v18  ;;  %v1715_v52 = vadd.f32 %v1714_v11, %v1713_v2  ;;  %v1472_v18 = vsel %vm1382_vm3, %v3822_v28, 0.0  ;;  %v1596_v11 = vmul.f32 %v3834_v47, %v3834_v47  ;;  %v3856_v2 = vpop.permute.xlu1 %1193 }
 0x18c   :  { %6174 = vst [vmem:[#allocation108_spill] sm:$0xff] %v3856_v2  ;;  %v1720_v43 = vsel %vm1382_vm3, %v1595_v21, 0.0  ;;  %v1598_v21 = vmul.f32 %v3854_v13, %v3854_v13 }
 0x18d   :  { %v1471_v59 = vadd.f32 %v1470_v20, %v1469_v41  ;;  %v1717_v29 = vadd.f32 %v1716_v55, %v1715_v52  ;;  %v1474_v55 = vsel %vm1382_vm3, %v3834_v47, 0.0  ;;  %v3865_v41 = vmul.f32 %v3726_v56, %v3268_v53  ;;  %v3867_v52 = vpop.permute.xlu0 %1198 }
 0x18e   :  { %6175 = vst [vmem:[#allocation109_spill] sm:$0xff] %v3867_v52  ;;  %v1722_v7 = vsel %vm1382_vm3, %v1596_v11, 0.0  ;;  %v1724_v53 = vsel %vm1382_vm3, %v1597_v15, 0.0  ;;  %v3885_v11 = vmul.f32 %v3751_v54, %v3280_v63 }
 0x18f   :  { %v1473_v61 = vadd.f32 %v1472_v18, %v1471_v59  ;;  %v1719_v46 = vadd.f32 %v1718_v38, %v1717_v29  ;;  %v1476_v59 = vsel %vm1382_vm3, %v3845_v3, 0.0  ;;  %v3876_v29 = vmul.f32 %v3724_v26, %v3276_v58 }
 0x190   :  { %6177 = vst [vmem:[#allocation111_spill] sm:$0xff] %v3885_v11  ;;  %v1726_v58 = vsel %vm1382_vm3, %v1598_v21, 0.0  ;;  %v1601_v21 = vmul.f32 %v3885_v11, %v3885_v11 }
 0x191   :  { %v1475_v48 = vadd.f32 %v1474_v55, %v1473_v61  ;;  %v1721_v20 = vadd.f32 %v1720_v43, %v1719_v46  ;;  %6176 = vst [vmem:[#allocation110_spill] sm:$0xff] %v3876_v29  ;;  %v1478_v61 = vsel %vm1382_vm3, %v3854_v13, 0.0  ;;  %v1599_v46 = vmul.f32 %v3865_v41, %v3865_v41  ;;  %v3887_v43 = vpop.permute.xlu1 %1203 }
 0x192   :  { %6178 = vst [vmem:[#allocation112_spill] sm:$0xff] %v3887_v43  ;;  %v1600_v15 = vmul.f32 %v3876_v29, %v3876_v29 }
 0x193   :  { %v1477_v38 = vadd.f32 %v1476_v59, %v1475_v48  ;;  %v1723_v18 = vadd.f32 %v1722_v7, %v1721_v20  ;;  %v1480_v7 = vsel %vm1382_vm3, %v3865_v41, 0.0  ;;  %v3896_v48 = vmul.f32 %v3753_v42, %v3321_v24  ;;  %v3898_v20 = vpop.permute.xlu0 %1208 }
 0x194   :  { %6179 = vst [vmem:[#allocation113_spill] sm:$0xff] %v3898_v20  ;;  %v1728_v54 = vsel %vm1382_vm3, %v1599_v46, 0.0  ;;  %v1730_v24 = vsel %vm1382_vm3, %v1600_v15, 0.0  ;;  %v3916_v46 = vmul.f32 %v3776_v45, %v3358_v31 }
 0x195   :  { %v1479_v55 = vadd.f32 %v1478_v61, %v1477_v38  ;;  %v1725_v56 = vadd.f32 %v1724_v53, %v1723_v18  ;;  %v1482_v38 = vsel %vm1382_vm3, %v3876_v29, 0.0  ;;  %v3907_v18 = vmul.f32 %v3770_v40, %v3333_v44 }
 0x196   :  { %v1732_v44 = vsel %vm1382_vm3, %v1601_v21, 0.0  ;;  %v1604_v21 = vmul.f32 %v3916_v46, %v3916_v46 }
 0x197   :  { %v1481_v63 = vadd.f32 %v1480_v7, %v1479_v55  ;;  %v1727_v59 = vadd.f32 %v1726_v58, %v1725_v56  ;;  %v1484_v55 = vsel %vm1382_vm3, %v3885_v11, 0.0  ;;  %v1602_v56 = vmul.f32 %v3896_v48, %v3896_v48  ;;  %v3918_v58 = vpop.permute.xlu1 %1213 }
 0x198   :  { %6180 = vst [vmem:[#allocation114_spill] sm:$0xff] %v3918_v58  ;;  %v1603_v15 = vmul.f32 %v3907_v18, %v3907_v18 }
 0x199   :  { %v1483_v53 = vadd.f32 %v1482_v38, %v1481_v63  ;;  %v1729_v61 = vadd.f32 %v1728_v54, %v1727_v59  ;;  %v1486_v54 = vsel %vm1382_vm3, %v3896_v48, 0.0  ;;  %v3927_v63 = vmul.f32 %v3790_v60, %v3374_v5  ;;  %v3929_v59 = vpop.permute.xlu0 %1218 }
 0x19a   :  { %6181 = vst [vmem:[#allocation115_spill] sm:$0xff] %v3929_v59  ;;  %v1734_v45 = vsel %vm1382_vm3, %v1602_v56, 0.0  ;;  %v1736_v5 = vsel %vm1382_vm3, %v1603_v15, 0.0  ;;  %v3947_v56 = vmul.f32 %v3825_v36, %v3411_v0 }
 0x19b   :  { %v1485_v7 = vadd.f32 %v1484_v55, %v1483_v53  ;;  %v1731_v42 = vadd.f32 %v1730_v24, %v1729_v61  ;;  %v1488_v53 = vsel %vm1382_vm3, %v3907_v18, 0.0  ;;  %v3938_v61 = vmul.f32 %v3803_v57, %v3392_v8 }
 0x19c   :  { %v1738_v8 = vsel %vm1382_vm3, %v1604_v21, 0.0  ;;  %v1607_v21 = vmul.f32 %v3947_v56, %v3947_v56 }
 0x19d   :  { %v1487_v31 = vadd.f32 %v1486_v54, %v1485_v7  ;;  %v1733_v38 = vadd.f32 %v1732_v44, %v1731_v42  ;;  %v1490_v7 = vsel %vm1382_vm3, %v3916_v46, 0.0  ;;  %v1605_v42 = vmul.f32 %v3927_v63, %v3927_v63  ;;  %v3949_v44 = vpop.permute.xlu1 %1223 }
 0x19e   :  { %6182 = vst [vmem:[#allocation116_spill] sm:$0xff] %v3949_v44  ;;  %v1606_v15 = vmul.f32 %v3938_v61, %v3938_v61 }
 0x19f   :  { %v1489_v24 = vadd.f32 %v1488_v53, %v1487_v31  ;;  %v1735_v55 = vadd.f32 %v1734_v45, %v1733_v38  ;;  %v1492_v45 = vsel %vm1382_vm3, %v3927_v63, 0.0  ;;  %v3958_v31 = vmul.f32 %v3836_v33, %v3430_v51  ;;  %v3960_v38 = vpop.permute.xlu0 %1228 }
 0x1a0   :  { %6184 = vst [vmem:[#allocation118_spill] sm:$0xff] %v3960_v38  ;;  %v1740_v36 = vsel %vm1382_vm3, %v1605_v42, 0.0  ;;  %v1742_v51 = vsel %vm1382_vm3, %v1606_v15, 0.0  ;;  %v3978_v42 = vmul.f32 %v3867_v52, %v3465_v22 }
 0x1a1   :  { %v1491_v54 = vadd.f32 %v1490_v7, %v1489_v24  ;;  %v1737_v60 = vadd.f32 %v1736_v5, %v1735_v55  ;;  %6183 = vst [vmem:[#allocation117_spill] sm:$0xff] %v3958_v31  ;;  %v1494_v24 = vsel %vm1382_vm3, %v3938_v61, 0.0  ;;  %v6185_v55 = vld [vmem:[#allocation44_spill] sm:$0xff] }
 0x1a2   :  { %v3969_v5 = vmul.f32 %v3856_v2, %v6185_v55  ;;  %v1744_v55 = vsel %vm1382_vm3, %v1607_v21, 0.0  ;;  %v1610_v21 = vmul.f32 %v3978_v42, %v3978_v42 }
 0x1a3   :  { %v1493_v0 = vadd.f32 %v1492_v45, %v1491_v54  ;;  %v1739_v53 = vadd.f32 %v1738_v8, %v1737_v60  ;;  %v1496_v54 = vsel %vm1382_vm3, %v3947_v56, 0.0  ;;  %v1608_v60 = vmul.f32 %v3958_v31, %v3958_v31  ;;  %v3980_v8 = vpop.permute.xlu1 %1233 }
 0x1a4   :  { %6186 = vst [vmem:[#allocation44_spill] sm:$0xff] %v3980_v8  ;;  %v1609_v15 = vmul.f32 %v3969_v5, %v3969_v5 }
 0x1a5   :  { %v1495_v7 = vadd.f32 %v1494_v24, %v1493_v0  ;;  %v1741_v57 = vadd.f32 %v1740_v36, %v1739_v53  ;;  %v1498_v36 = vsel %vm1382_vm3, %v3958_v31, 0.0  ;;  %v3989_v0 = vmul.f32 %v3887_v43, %v3470_v12  ;;  %v3991_v53 = vpop.permute.xlu0 %1238 }
 0x1a6   :  { %6187 = vst [vmem:[#allocation119_spill] sm:$0xff] %v3991_v53  ;;  %v1746_v52 = vsel %vm1382_vm3, %v1608_v60, 0.0  ;;  %v1748_v12 = vsel %vm1382_vm3, %v1609_v15, 0.0  ;;  %v4009_v60 = vmul.f32 %v3918_v58, %v3504_v32 }
 0x1a7   :  { %v1497_v45 = vadd.f32 %v1496_v54, %v1495_v7  ;;  %v1743_v33 = vadd.f32 %v1742_v51, %v1741_v57  ;;  %v1500_v57 = vsel %vm1382_vm3, %v3969_v5, 0.0  ;;  %v6188_v7 = vld [vmem:[#allocation53_spill] sm:$0xff] }
 0x1a8   :  { %v4000_v51 = vmul.f32 %v3898_v20, %v6188_v7  ;;  %v1750_v7 = vsel %vm1382_vm3, %v1610_v21, 0.0  ;;  %v1613_v21 = vmul.f32 %v4009_v60, %v4009_v60 }
 0x1a9   :  { %v1499_v22 = vadd.f32 %v1498_v36, %v1497_v45  ;;  %v1745_v24 = vadd.f32 %v1744_v55, %v1743_v33  ;;  %v1502_v45 = vsel %vm1382_vm3, %v3978_v42, 0.0  ;;  %v1611_v33 = vmul.f32 %v3989_v0, %v3989_v0  ;;  %v4011_v55 = vpop.permute.xlu1 %1243 }
 0x1aa   :  { %6189 = vst [vmem:[#allocation53_spill] sm:$0xff] %v4011_v55  ;;  %v1612_v15 = vmul.f32 %v4000_v51, %v4000_v51 }
 0x1ab   :  { %v1501_v54 = vadd.f32 %v1500_v57, %v1499_v22  ;;  %v1747_v2 = vadd.f32 %v1746_v52, %v1745_v24  ;;  %v1504_v52 = vsel %vm1382_vm3, %v3989_v0, 0.0  ;;  %v6190_v22 = vld [vmem:[#allocation59_spill] sm:$0xff]  ;;  %v4022_v57 = vpop.permute.xlu0 %1248  ;;  %v1752_v20 = vsel %vm1382_vm3, %v1611_v33, 0.0 }
 0x1ac   :  { %v4020_v24 = vmul.f32 %v3929_v59, %v6190_v22  ;;  %6191 = vst [vmem:[#allocation59_spill] sm:$0xff] %v4022_v57  ;;  %v1754_v22 = vsel %vm1382_vm3, %v1612_v15, 0.0  ;;  %v4040_v33 = vmul.f32 %v3960_v38, %v3558_v9  ;;  %v4051_v15 = vmul.f32 %v3980_v8, %v3563_v16 }
 0x1ad   :  { %v1503_v36 = vadd.f32 %v1502_v45, %v1501_v54  ;;  %v1749_v43 = vadd.f32 %v1748_v12, %v1747_v2  ;;  %v1506_v2 = vsel %vm1382_vm3, %v4000_v51, 0.0  ;;  %v4031_v54 = vmul.f32 %v3949_v44, %v3536_v50 }
 0x1ae   :  { %v1756_v50 = vsel %vm1382_vm3, %v1613_v21, 0.0  ;;  %v1616_v21 = vmul.f32 %v4040_v33, %v4040_v33 }
 0x1af   :  { %v1505_v32 = vadd.f32 %v1504_v52, %v1503_v36  ;;  %v1751_v58 = vadd.f32 %v1750_v7, %v1749_v43  ;;  %v1508_v36 = vsel %vm1382_vm3, %v4009_v60, 0.0  ;;  %v1614_v43 = vmul.f32 %v4020_v24, %v4020_v24  ;;  %v4042_v7 = vpop.permute.xlu1 %1253 }
 0x1b0   :  { %6192 = vst [vmem:[#allocation120_spill] sm:$0xff] %v4042_v7 }
 0x1b1   :  { %v1507_v12 = vadd.f32 %v1506_v2, %v1505_v32  ;;  %v1753_v45 = vadd.f32 %v1752_v20, %v1751_v58  ;;  %v1510_v20 = vsel %vm1382_vm3, %v4020_v24, 0.0  ;;  %v1615_v58 = vmul.f32 %v4031_v54, %v4031_v54  ;;  %v4053_v32 = vpop.permute.xlu0 %1258 }
 0x1b2   :  { %6193 = vst [vmem:[#allocation121_spill] sm:$0xff] %v4053_v32  ;;  %v1758_v38 = vsel %vm1382_vm3, %v1614_v43, 0.0  ;;  %v4071_v43 = vmul.f32 %v4011_v55, %v3594_v25 }
 0x1b3   :  { %v1509_v52 = vadd.f32 %v1508_v36, %v1507_v12  ;;  %v1755_v59 = vadd.f32 %v1754_v22, %v1753_v45  ;;  %v1512_v12 = vsel %vm1382_vm3, %v4031_v54, 0.0  ;;  %v6194_v45 = vld [vmem:[#allocation69_spill] sm:$0xff]  ;;  %v1760_v16 = vsel %vm1382_vm3, %v1615_v58, 0.0 }
 0x1b4   :  { %v4062_v22 = vmul.f32 %v3991_v53, %v6194_v45  ;;  %v1762_v45 = vsel %vm1382_vm3, %v1616_v21, 0.0  ;;  %v1619_v21 = vmul.f32 %v4071_v43, %v4071_v43 }
 0x1b5   :  { %v1511_v9 = vadd.f32 %v1510_v20, %v1509_v52  ;;  %v1757_v2 = vadd.f32 %v1756_v50, %v1755_v59  ;;  %v1514_v52 = vsel %vm1382_vm3, %v4040_v33, 0.0  ;;  %v1617_v59 = vmul.f32 %v4051_v15, %v4051_v15  ;;  %v4073_v50 = vpop.permute.xlu1 %1263 }
 0x1b6   :  { %6195 = vst [vmem:[#allocation69_spill] sm:$0xff] %v4073_v50  ;;  %v1618_v58 = vmul.f32 %v4062_v22, %v4062_v22 }
 0x1b7   :  { %v1513_v36 = vadd.f32 %v1512_v12, %v1511_v9  ;;  %v1759_v44 = vadd.f32 %v1758_v38, %v1757_v2  ;;  %v1516_v38 = vsel %vm1382_vm3, %v4051_v15, 0.0  ;;  %v6196_v9 = vld [vmem:[#allocation75_spill] sm:$0xff]  ;;  %v4084_v12 = vpop.permute.xlu0 %1268  ;;  %v1764_v53 = vsel %vm1382_vm3, %v1617_v59, 0.0 }
 0x1b8   :  { %v4082_v2 = vmul.f32 %v4022_v57, %v6196_v9  ;;  %6197 = vst [vmem:[#allocation75_spill] sm:$0xff] %v4084_v12  ;;  %v1766_v9 = vsel %vm1382_vm3, %v1618_v58, 0.0  ;;  %v4102_v59 = vmul.f32 %v4053_v32, %v3646_v62  ;;  %v4113_v58 = vmul.f32 %v4073_v50, %v3651_v27 }
 0x1b9   :  { %v1515_v20 = vadd.f32 %v1514_v52, %v1513_v36  ;;  %v1761_v8 = vadd.f32 %v1760_v16, %v1759_v44  ;;  %v1518_v44 = vsel %vm1382_vm3, %v4062_v22, 0.0  ;;  %v4093_v36 = vmul.f32 %v4042_v7, %v3624_v37 }
 0x1ba   :  { %v1768_v37 = vsel %vm1382_vm3, %v1619_v21, 0.0  ;;  %v1622_v21 = vmul.f32 %v4102_v59, %v4102_v59 }
 0x1bb   :  { %v1517_v25 = vadd.f32 %v1516_v38, %v1515_v20  ;;  %v1763_v55 = vadd.f32 %v1762_v45, %v1761_v8  ;;  %v1520_v20 = vsel %vm1382_vm3, %v4071_v43, 0.0  ;;  %v1620_v8 = vmul.f32 %v4082_v2, %v4082_v2  ;;  %v4104_v45 = vpop.permute.xlu1 %1273 }
 0x1bc   :  { %6198 = vst [vmem:[#allocation122_spill] sm:$0xff] %v4104_v45 }
 0x1bd   :  { %v1519_v16 = vadd.f32 %v1518_v44, %v1517_v25  ;;  %v1765_v52 = vadd.f32 %v1764_v53, %v1763_v55  ;;  %v1522_v53 = vsel %vm1382_vm3, %v4082_v2, 0.0  ;;  %v1621_v55 = vmul.f32 %v4093_v36, %v4093_v36  ;;  %v4115_v25 = vpop.permute.xlu0 %1278 }
 0x1be   :  { %6199 = vst [vmem:[#allocation123_spill] sm:$0xff] %v4115_v25  ;;  %v1770_v32 = vsel %vm1382_vm3, %v1620_v8, 0.0  ;;  %v4133_v8 = vmul.f32 %v4104_v45, %v3682_v19 }
 0x1bf   :  { %v1521_v38 = vadd.f32 %v1520_v20, %v1519_v16  ;;  %v1767_v57 = vadd.f32 %v1766_v9, %v1765_v52  ;;  %v1524_v16 = vsel %vm1382_vm3, %v4093_v36, 0.0  ;;  %v6200_v52 = vld [vmem:[#allocation85_spill] sm:$0xff]  ;;  %v1772_v27 = vsel %vm1382_vm3, %v1621_v55, 0.0 }
 0x1c0   :  { %v4124_v9 = vmul.f32 %v4084_v12, %v6200_v52  ;;  %6201 = vst [vmem:[#allocation85_spill] sm:$0xff] %v4133_v8  ;;  %v1774_v52 = vsel %vm1382_vm3, %v1622_v21, 0.0  ;;  %v1625_v21 = vmul.f32 %v4133_v8, %v4133_v8 }
 0x1c1   :  { %v1523_v62 = vadd.f32 %v1522_v53, %v1521_v38  ;;  %v1769_v44 = vadd.f32 %v1768_v37, %v1767_v57  ;;  %v1526_v38 = vsel %vm1382_vm3, %v4102_v59, 0.0  ;;  %v1623_v57 = vmul.f32 %v4113_v58, %v4113_v58  ;;  %v4135_v37 = vpop.permute.xlu1 %1283 }
 0x1c2   :  { %6202 = vst [vmem:[#allocation124_spill] sm:$0xff] %v4135_v37  ;;  %v1624_v55 = vmul.f32 %v4124_v9, %v4124_v9 }
 0x1c3   :  { %v1525_v20 = vadd.f32 %v1524_v16, %v1523_v62  ;;  %v1771_v7 = vadd.f32 %v1770_v32, %v1769_v44  ;;  %v1528_v32 = vsel %vm1382_vm3, %v4113_v58, 0.0  ;;  %v6203_v62 = vld [vmem:[#allocation91_spill] sm:$0xff]  ;;  %v4146_v16 = vpop.permute.xlu0 %1288  ;;  %v1776_v12 = vsel %vm1382_vm3, %v1623_v57, 0.0  ;;  %v6207_v57 = vld [vmem:[#allocation97_spill] sm:$0xff] }
 0x1c4   :  { %v4144_v44 = vmul.f32 %v4115_v25, %v6203_v62  ;;  %6205 = vst [vmem:[#allocation125_spill] sm:$0xff] %v4146_v16  ;;  %v1778_v62 = vsel %vm1382_vm3, %v1624_v55, 0.0 }
 0x1c5   :  { %v1527_v53 = vadd.f32 %v1526_v38, %v1525_v20  ;;  %v1773_v50 = vadd.f32 %v1772_v27, %v1771_v7  ;;  %v1530_v7 = vsel %vm1382_vm3, %v4124_v9, 0.0  ;;  %v6206_v20 = vld [vmem:[#allocation93_spill] sm:$0xff] }
 0x1c6   :  { %6204 = vst [vmem:[#allocation91_spill] sm:$0xff] %v4144_v44  ;;  %v4155_v27 = vmul.f32 %v4135_v37, %v6206_v20  ;;  %v1780_v20 = vsel %vm1382_vm3, %v1625_v21, 0.0 }
 0x1c7   :  { %v1529_v19 = vadd.f32 %v1528_v32, %v1527_v53  ;;  %v1775_v45 = vadd.f32 %v1774_v52, %v1773_v50  ;;  %v1532_v53 = vsel %vm1382_vm3, %v4133_v8, 0.0  ;;  %v1626_v50 = vmul.f32 %v4144_v44, %v4144_v44  ;;  %v4166_v32 = vpop.permute.xlu1 %1293 }
 0x1c8   :  { %v4164_v52 = vmul.f32 %v4146_v16, %v6207_v57  ;;  %6208 = vst [vmem:[#allocation93_spill] sm:$0xff] %v4166_v32  ;;  %v4175_v55 = vmul.f32 %v4166_v32, %v3739_v35 }
 0x1c9   :  { %v1531_v38 = vadd.f32 %v1530_v7, %v1529_v19  ;;  %v1777_v40 = vadd.f32 %v1776_v12, %v1775_v45  ;;  %v1534_v12 = vsel %vm1382_vm3, %v4144_v44, 0.0  ;;  %v1627_v45 = vmul.f32 %v4155_v27, %v4155_v27  ;;  %v4177_v19 = vpop.permute.xlu0 %1298 }
 0x1ca   :  { %6209 = vst [vmem:[#allocation97_spill] sm:$0xff] %v4177_v19  ;;  %v1782_v16 = vsel %vm1382_vm3, %v1626_v50, 0.0  ;;  %v1628_v21 = vmul.f32 %v4164_v52, %v4164_v52  ;;  %v1540_v32 = vsel %vm1382_vm3, %v4175_v55, 0.0 }
 0x1cb   :  { %v1533_v25 = vadd.f32 %v1532_v53, %v1531_v38  ;;  %v1779_v26 = vadd.f32 %v1778_v62, %v1777_v40  ;;  %v1536_v40 = vsel %vm1382_vm3, %v4155_v27, 0.0  ;;  %v4186_v38 = vmul.f32 %v4177_v19, %v3758_v17 }
 0x1cc   :  { %v1784_v35 = vsel %vm1382_vm3, %v1627_v45, 0.0 }
 0x1cd   :  { %v1535_v7 = vadd.f32 %v1534_v12, %v1533_v25  ;;  %v1781_v57 = vadd.f32 %v1780_v20, %v1779_v26  ;;  %6210 = vst [vmem:[#allocation126_spill] sm:$0xff] %v4186_v38  ;;  %v1538_v25 = vsel %vm1382_vm3, %v4164_v52, 0.0  ;;  %v1629_v26 = vmul.f32 %v4175_v55, %v4175_v55 }
 0x1ce   :  { %v1786_v12 = vsel %vm1382_vm3, %v1628_v21, 0.0  ;;  %v1630_v17 = vmul.f32 %v4186_v38, %v4186_v38 }
 0x1cf   :  { %v1537_v62 = vadd.f32 %v1536_v40, %v1535_v7  ;;  %v1783_v53 = vadd.f32 %v1782_v16, %v1781_v57  ;;  %v1788_v45 = vsel %vm1382_vm3, %v1629_v26, 0.0  ;;  %v1542_v57 = vsel %vm1382_vm3, %v4186_v38, 0.0 }
 0x1d1   :  { %v1539_v50 = vadd.f32 %v1538_v25, %v1537_v62  ;;  %v1785_v20 = vadd.f32 %v1784_v35, %v1783_v53  ;;  %v1790_v62 = vsel %vm1382_vm3, %v1630_v17, 0.0 }
 0x1d3   :  { %v1541_v7 = vadd.f32 %v1540_v32, %v1539_v50  ;;  %v1787_v16 = vadd.f32 %v1786_v12, %v1785_v20  ;;  %v1887_v50 = vlaneseq }
 0x1d5   :  { %v1543_v40 = vadd.f32 %v1542_v57, %v1541_v7  ;;  %v1789_v19 = vadd.f32 %v1788_v45, %v1787_v16  ;;  %v4204_v7 = vshrl.u32 %v1887_v50, 7  ;;  %v6211_v45 = vld [vmem:[#allocation28_spill] sm:$0xff]  ;;  %v6242_v57 = vld [vmem:[#allocation86_spill] sm:$0xff] }
 0x1d6   :  { %v6245_v50 = vld [vmem:[#allocation92_spill] sm:$0xff] }
 0x1d7   :  { %v1544_v53 = vrot.slane %v1543_v40, 4  ;;  %v1791_v35 = vadd.f32 %v1790_v62, %v1789_v19 }
 0x1d9   :  { %v1545_v21 = vadd.f32 %v1544_v53, %v1543_v40  ;;  %v1792_v25 = vrot.slane %v1791_v35, 4  ;;  %v6215_v53 = vld [vmem:[#allocation33_spill] sm:$0xff] }
 0x1da   :  { %v894_v40 = vld [vmem:[%s5845_s3] sm:$0x1] }
 0x1db   :  { %v1546_v37 = vrot.slane %v1545_v21, 2  ;;  %v1793_v4 = vadd.f32 %v1792_v25, %v1791_v35  ;;  %v6244_v25 = vld [vmem:[#allocation90_spill] sm:$0xff]  ;;  %v6250_v35 = vld [vmem:[#allocation85_spill] sm:$0xff] }
 0x1dd   :  { %v1547_v30 = vadd.f32 %v1546_v37, %v1545_v21  ;;  %v1794_v14 = vrot.slane %v1793_v4, 2  ;;  %v6212_v37 = vld [vmem:[#allocation27_spill] sm:$0xff] }
 0x1df   :  { %v1548_v44 = vrot.slane %v1547_v30, 1  ;;  %v1795_v32 = vadd.f32 %v1794_v14, %v1793_v4  ;;  %v6213_v14 = vld [vmem:[#allocation29_spill] sm:$0xff]  ;;  %v6243_v4 = vld [vmem:[#allocation87_spill] sm:$0xff] }
 0x1e1   :  { %v1549_v20 = vadd.f32 %v1548_v44, %v1547_v30  ;;  %v1796_v26 = vrot.slane %v1795_v32, 1  ;;  %v6214_v44 = vld [vmem:[#allocation30_spill] sm:$0xff]  ;;  %v6248_v30 = vld [vmem:[#allocation99_spill] sm:$0xff] }
 0x1e3   :  { %v1797_v12 = vadd.f32 %v1796_v26, %v1795_v32  ;;  %v4202_v8 = vmul.f32 0.001953125, %v1549_v20  ;;  %v6246_v26 = vld [vmem:[#allocation94_spill] sm:$0xff] }
 0x1e5   :  { %v1799_v16 = vmul.f32 0.001953125, %v1797_v12  ;;  %v1800_v19 = vmul.f32 %v4202_v8, %v4202_v8  ;;  %v6252_v20 = vsub.f32 %v6211_v45, %v4202_v8  ;;  %v6255_v38 = vsub.f32 %v6214_v44, %v4202_v8 }
 0x1e7   :  { %v1801_v17 = vsub.f32 %v1799_v16, %v1800_v19  ;;  %v6247_v16 = vld [vmem:[#allocation98_spill] sm:$0xff] }
 0x1e9   :  { %v1802_v32 = vmax.f32 %v1801_v17, 0.0  ;;  %v6223_v17 = vld [vmem:[#allocation48_spill] sm:$0xff] }
 0x1eb   :  { %v1803_v21 = vadd.f32 1e-05, %v1802_v32  ;;  %v6230_v32 = vld [vmem:[#allocation61_spill] sm:$0xff] }
 0x1ed   :  { %2667 = vrsqrt.f32 %v1803_v21  ;;  %v6251_v21 = vld [vmem:[#allocation91_spill] sm:$0xff] }
 0x1f7   :  { %v2668_v11 = vpop.eup %2667 }
 0x1f8   :  { %v1805_v19 = vmul.f32 %v2668_v11, %v894_v40  ;;  %v6249_v40 = vsub.s32 0, %v4204_v7  ;;  %v6253_v7 = vsub.f32 %v6212_v37, %v4202_v8 }
 0x1fa   :  { %v4368_v29 = vrot.slane %v1805_v19, %v6249_v40  ;;  %v6254_v40 = vsub.f32 %v6213_v14, %v4202_v8 }
 0x1fc   :  { %v4382_v11 = vmul.f32 %v4368_v29, %v6252_v20  ;;  %v4388_v19 = vmul.f32 %v4368_v29, %v6253_v7  ;;  %v4394_v12 = vmul.f32 %v4368_v29, %v6254_v40  ;;  %v4400_v45 = vmul.f32 %v4368_v29, %v6255_v38  ;;  %v6259_v7 = vld [vmem:[#allocation34_spill] sm:$0xff]  ;;  %v6262_v40 = vld [vmem:[#allocation35_spill] sm:$0xff] }
 0x1fd   :  { %v6257_v20 = vsub.f32 %v6215_v53, %v4202_v8  ;;  %v6260_v31 = vsub.f32 %v6259_v7, %v4202_v8  ;;  %v6263_v62 = vsub.f32 %v6262_v40, %v4202_v8  ;;  %v6265_v38 = vld [vmem:[#allocation38_spill] sm:$0xff] }
 0x1fe   :  { %6256 = vst [vmem:[#allocation28_spill] sm:$0xff] %v4400_v45  ;;  %v6266_v45 = vsub.f32 %v6265_v38, %v4202_v8 }
 0x1ff   :  { %v4406_v37 = vmul.f32 %v4368_v29, %v6257_v20  ;;  %v4412_v14 = vmul.f32 %v4368_v29, %v6260_v31  ;;  %v4418_v44 = vmul.f32 %v4368_v29, %v6263_v62  ;;  %v6268_v20 = vld [vmem:[#allocation39_spill] sm:$0xff]  ;;  %v6270_v31 = vld [vmem:[#allocation42_spill] sm:$0xff] }
 0x200   :  { %v4424_v53 = vmul.f32 %v4368_v29, %v6266_v45  ;;  %v6273_v62 = vld [vmem:[#allocation43_spill] sm:$0xff]  ;;  %v6276_v45 = vld [vmem:[#allocation45_spill] sm:$0xff] }
 0x201   :  { %6258 = vst [vmem:[#allocation27_spill] sm:$0xff] %v4406_v37  ;;  %6261 = vst [vmem:[#allocation29_spill] sm:$0xff] %v4412_v14  ;;  %v6269_v37 = vsub.f32 %v6268_v20, %v4202_v8  ;;  %v6271_v14 = vsub.f32 %v6270_v31, %v4202_v8 }
 0x202   :  { %6264 = vst [vmem:[#allocation30_spill] sm:$0xff] %v4418_v44  ;;  %6267 = vst [vmem:[#allocation33_spill] sm:$0xff] %v4424_v53  ;;  %v6274_v44 = vsub.f32 %v6273_v62, %v4202_v8  ;;  %v6277_v53 = vsub.f32 %v6276_v45, %v4202_v8 }
 0x203   :  { %v4430_v7 = vmul.f32 %v4368_v29, %v6269_v37  ;;  %v4436_v40 = vmul.f32 %v4368_v29, %v6271_v14  ;;  %v6279_v37 = vsub.f32 %v6223_v17, %v4202_v8  ;;  %v6281_v14 = vld [vmem:[#allocation49_spill] sm:$0xff] }
 0x204   :  { %v4442_v38 = vmul.f32 %v4368_v29, %v6274_v44  ;;  %v4448_v20 = vmul.f32 %v4368_v29, %v6277_v53  ;;  %v6284_v44 = vld [vmem:[#allocation50_spill] sm:$0xff] }
 0x205   :  { %6272 = vst [vmem:[#allocation48_spill] sm:$0xff] %v4436_v40  ;;  %v4454_v31 = vmul.f32 %v4368_v29, %v6279_v37  ;;  %v6282_v40 = vsub.f32 %v6281_v14, %v4202_v8  ;;  %v6287_v53 = vld [vmem:[#allocation54_spill] sm:$0xff]  ;;  %v6289_v37 = vld [vmem:[#allocation55_spill] sm:$0xff] }
 0x206   :  { %6275 = vst [vmem:[#allocation61_spill] sm:$0xff] %v4442_v38  ;;  %6278 = vst [vmem:[#allocation86_spill] sm:$0xff] %v4448_v20  ;;  %v6285_v38 = vsub.f32 %v6284_v44, %v4202_v8  ;;  %v6288_v20 = vsub.f32 %v6287_v53, %v4202_v8 }
 0x207   :  { %6280 = vst [vmem:[#allocation87_spill] sm:$0xff] %v4454_v31  ;;  %v4460_v62 = vmul.f32 %v4368_v29, %v6282_v40  ;;  %v6290_v31 = vsub.f32 %v6289_v37, %v4202_v8  ;;  %v6292_v40 = vld [vmem:[#allocation58_spill] sm:$0xff] }
 0x208   :  { %v4466_v45 = vmul.f32 %v4368_v29, %v6285_v38  ;;  %v4472_v17 = vmul.f32 %v4368_v29, %v6288_v20  ;;  %v6295_v38 = vld [vmem:[#allocation60_spill] sm:$0xff]  ;;  %v6298_v20 = vsub.f32 %v6230_v32, %v4202_v8 }
 0x209   :  { %6283 = vst [vmem:[#allocation90_spill] sm:$0xff] %v4460_v62  ;;  %v4478_v14 = vmul.f32 %v4368_v29, %v6290_v31  ;;  %v6293_v62 = vsub.f32 %v6292_v40, %v4202_v8  ;;  %v6300_v31 = vld [vmem:[#allocation64_spill] sm:$0xff] }
 0x20a   :  { %6286 = vst [vmem:[#allocation92_spill] sm:$0xff] %v4466_v45  ;;  %v6296_v45 = vsub.f32 %v6295_v38, %v4202_v8  ;;  %v4496_v37 = vmul.f32 %v4368_v29, %v6298_v20  ;;  %v6309_v20 = vld [vmem:[#allocation70_spill] sm:$0xff] }
 0x20b   :  { %6291 = vst [vmem:[#allocation94_spill] sm:$0xff] %v4478_v14  ;;  %v4484_v44 = vmul.f32 %v4368_v29, %v6293_v62  ;;  %v6301_v14 = vsub.f32 %v6300_v31, %v4202_v8  ;;  %v6303_v62 = vld [vmem:[#allocation65_spill] sm:$0xff] }
 0x20c   :  { %v4490_v53 = vmul.f32 %v4368_v29, %v6296_v45  ;;  %6299 = vst [vmem:[#allocation85_spill] sm:$0xff] %v4496_v37  ;;  %v6306_v45 = vld [vmem:[#allocation66_spill] sm:$0xff]  ;;  %v6310_v37 = vsub.f32 %v6309_v20, %v4202_v8 }
 0x20d   :  { %6294 = vst [vmem:[#allocation98_spill] sm:$0xff] %v4484_v44  ;;  %v4502_v40 = vmul.f32 %v4368_v29, %v6301_v14  ;;  %v6304_v44 = vsub.f32 %v6303_v62, %v4202_v8  ;;  %v6312_v14 = vld [vmem:[#allocation71_spill] sm:$0xff] }
 0x20e   :  { %6297 = vst [vmem:[#allocation99_spill] sm:$0xff] %v4490_v53  ;;  %v6307_v53 = vsub.f32 %v6306_v45, %v4202_v8  ;;  %v4520_v31 = vmul.f32 %v4368_v29, %v6310_v37  ;;  %v6321_v37 = vld [vmem:[#allocation77_spill] sm:$0xff] }
 0x20f   :  { %6302 = vst [vmem:[#allocation91_spill] sm:$0xff] %v4502_v40  ;;  %v4508_v38 = vmul.f32 %v4368_v29, %v6304_v44  ;;  %v6313_v40 = vsub.f32 %v6312_v14, %v4202_v8  ;;  %v6315_v44 = vld [vmem:[#allocation74_spill] sm:$0xff] }
 0x210   :  { %v4514_v32 = vmul.f32 %v4368_v29, %v6307_v53  ;;  %6311 = vst [vmem:[#allocation38_spill] sm:$0xff] %v4520_v31  ;;  %v6318_v53 = vld [vmem:[#allocation76_spill] sm:$0xff]  ;;  %v6322_v31 = vsub.f32 %v6321_v37, %v4202_v8 }
 0x211   :  { %6305 = vst [vmem:[#allocation34_spill] sm:$0xff] %v4508_v38  ;;  %v4526_v62 = vmul.f32 %v4368_v29, %v6313_v40  ;;  %v6316_v38 = vsub.f32 %v6315_v44, %v4202_v8  ;;  %v6323_v40 = vld [vmem:[#allocation80_spill] sm:$0xff] }
 0x212   :  { %6308 = vst [vmem:[#allocation35_spill] sm:$0xff] %v4514_v32  ;;  %v6319_v32 = vsub.f32 %v6318_v53, %v4202_v8  ;;  %v4544_v14 = vmul.f32 %v4368_v29, %v6322_v31  ;;  %v6329_v31 = vsub.f32 %v6242_v57, %v4202_v8 }
 0x213   :  { %6314 = vst [vmem:[#allocation39_spill] sm:$0xff] %v4526_v62  ;;  %v4532_v45 = vmul.f32 %v4368_v29, %v6316_v38  ;;  %v6324_v62 = vsub.f32 %v6323_v40, %v4202_v8  ;;  %v6325_v38 = vld [vmem:[#allocation81_spill] sm:$0xff] }
 0x214   :  { %v4538_v20 = vmul.f32 %v4368_v29, %v6319_v32  ;;  %v6327_v32 = vld [vmem:[#allocation82_spill] sm:$0xff]  ;;  %v4568_v40 = vmul.f32 %v4368_v29, %v6329_v31  ;;  %v6333_v31 = vsub.f32 %v6246_v26, %v4202_v8 }
 0x215   :  { %6317 = vst [vmem:[#allocation42_spill] sm:$0xff] %v4532_v45  ;;  %v4550_v44 = vmul.f32 %v4368_v29, %v6324_v62  ;;  %v6326_v45 = vsub.f32 %v6325_v38, %v4202_v8  ;;  %v6330_v62 = vsub.f32 %v6243_v4, %v4202_v8 }
 0x216   :  { %6320 = vst [vmem:[#allocation43_spill] sm:$0xff] %v4538_v20  ;;  %v6328_v20 = vsub.f32 %v6327_v32, %v4202_v8  ;;  %v4592_v4 = vmul.f32 %v4368_v29, %v6333_v31  ;;  %v6337_v31 = vsub.f32 %v3773_v1, %v4202_v8 }
 0x217   :  { %v4556_v53 = vmul.f32 %v4368_v29, %v6326_v45  ;;  %v4574_v38 = vmul.f32 %v4368_v29, %v6330_v62  ;;  %v6331_v45 = vsub.f32 %v6244_v25, %v4202_v8  ;;  %v6334_v62 = vsub.f32 %v6247_v16, %v4202_v8 }
 0x218   :  { %v4562_v37 = vmul.f32 %v4368_v29, %v6328_v20  ;;  %v6332_v20 = vsub.f32 %v6245_v50, %v4202_v8  ;;  %v4616_v16 = vmul.f32 %v4368_v29, %v6337_v31  ;;  %v6341_v31 = vsub.f32 %v3794_v34, %v4202_v8 }
 0x219   :  { %v4580_v32 = vmul.f32 %v4368_v29, %v6331_v45  ;;  %v4598_v25 = vmul.f32 %v4368_v29, %v6334_v62  ;;  %v6335_v45 = vsub.f32 %v6248_v30, %v4202_v8  ;;  %v6338_v62 = vsub.f32 %v3788_v49, %v4202_v8 }
 0x21a   :  { %v4586_v57 = vmul.f32 %v4368_v29, %v6332_v20  ;;  %v6336_v20 = vsub.f32 %v3763_v6, %v4202_v8  ;;  %v4640_v49 = vmul.f32 %v4368_v29, %v6341_v31  ;;  %v6346_v31 = vsub.f32 %v3845_v3, %v4202_v8 }
 0x21b   :  { %v4604_v50 = vmul.f32 %v4368_v29, %v6335_v45  ;;  %v4622_v30 = vmul.f32 %v4368_v29, %v6338_v62  ;;  %v6339_v45 = vsub.f32 %v3801_v10, %v4202_v8  ;;  %v6342_v62 = vsub.f32 %v3809_v23, %v4202_v8 }
 0x21c   :  { %v4610_v26 = vmul.f32 %v4368_v29, %v6336_v20  ;;  %v6340_v20 = vsub.f32 %v3784_v39, %v4202_v8  ;;  %v4664_v23 = vmul.f32 %v4368_v29, %v6346_v31  ;;  %v6352_v31 = vld [vmem:[#allocation111_spill] sm:$0xff] }
 0x21d   :  { %v4628_v6 = vmul.f32 %v4368_v29, %v6339_v45  ;;  %v4646_v10 = vmul.f32 %v4368_v29, %v6342_v62  ;;  %v6343_v45 = vsub.f32 %v3822_v28, %v4202_v8  ;;  %v6348_v62 = vsub.f32 %v3854_v13, %v4202_v8 }
 0x21e   :  { %v4634_v1 = vmul.f32 %v4368_v29, %v6340_v20  ;;  %v6344_v20 = vsub.f32 %v3834_v47, %v4202_v8  ;;  %6347 = vst [vmem:[#allocation49_spill] sm:$0xff] %v4664_v23  ;;  %v6353_v23 = vsub.f32 %v6352_v31, %v4202_v8 }
 0x21f   :  { %v4652_v39 = vmul.f32 %v4368_v29, %v6343_v45  ;;  %v4670_v28 = vmul.f32 %v4368_v29, %v6348_v62  ;;  %v6349_v45 = vsub.f32 %v3865_v41, %v4202_v8  ;;  %v6354_v62 = vsub.f32 %v3896_v48, %v4202_v8 }
 0x220   :  { %v4658_v34 = vmul.f32 %v4368_v29, %v6344_v20  ;;  %v6350_v20 = vld [vmem:[#allocation110_spill] sm:$0xff]  ;;  %v4688_v13 = vmul.f32 %v4368_v29, %v6353_v23  ;;  %v6358_v23 = vsub.f32 %v3927_v63, %v4202_v8 }
 0x221   :  { %v4676_v47 = vmul.f32 %v4368_v29, %v6349_v45  ;;  %v4694_v41 = vmul.f32 %v4368_v29, %v6354_v62  ;;  %v6355_v45 = vsub.f32 %v3907_v18, %v4202_v8  ;;  %v6359_v62 = vsub.f32 %v3938_v61, %v4202_v8 }
 0x222   :  { %6345 = vst [vmem:[#allocation45_spill] sm:$0xff] %v4658_v34  ;;  %v6351_v34 = vsub.f32 %v6350_v20, %v4202_v8  ;;  %v4712_v48 = vmul.f32 %v4368_v29, %v6358_v23  ;;  %v6363_v23 = vsub.f32 %v3969_v5, %v4202_v8 }
 0x223   :  { %v4700_v20 = vmul.f32 %v4368_v29, %v6355_v45  ;;  %v4718_v18 = vmul.f32 %v4368_v29, %v6359_v62  ;;  %v6360_v45 = vsub.f32 %v3947_v56, %v4202_v8  ;;  %v6364_v62 = vsub.f32 %v3978_v42, %v4202_v8 }
 0x224   :  { %v4682_v3 = vmul.f32 %v4368_v29, %v6351_v34  ;;  %v6356_v34 = vsub.f32 %v3916_v46, %v4202_v8  ;;  %v4736_v61 = vmul.f32 %v4368_v29, %v6363_v23  ;;  %v6367_v23 = vsub.f32 %v4009_v60, %v4202_v8 }
 0x225   :  { %v4724_v46 = vmul.f32 %v4368_v29, %v6360_v45  ;;  %v4742_v56 = vmul.f32 %v4368_v29, %v6364_v62  ;;  %v6365_v45 = vsub.f32 %v3989_v0, %v4202_v8  ;;  %v6368_v62 = vsub.f32 %v4020_v24, %v4202_v8 }
 0x226   :  { %v4706_v31 = vmul.f32 %v4368_v29, %v6356_v34  ;;  %v6361_v34 = vld [vmem:[#allocation117_spill] sm:$0xff]  ;;  %v4760_v42 = vmul.f32 %v4368_v29, %v6367_v23  ;;  %v6371_v23 = vsub.f32 %v4051_v15, %v4202_v8  ;;  %v6375_v15 = vsub.f32 %v4082_v2, %v4202_v8 }
 0x227   :  { %v4766_v0 = vmul.f32 %v4368_v29, %v6368_v62  ;;  %v4789_v62 = vld [vmem:[%s5846_s4] ss:$0 sm:$0xff] }
 0x228   :  { %6357 = vst [vmem:[#allocation50_spill] sm:$0xff] %v4706_v31  ;;  %v6362_v31 = vsub.f32 %v6361_v34, %v4202_v8  ;;  %v4748_v34 = vmul.f32 %v4368_v29, %v6365_v45  ;;  %v6369_v45 = vsub.f32 %v4031_v54, %v4202_v8  ;;  %v4784_v24 = vmul.f32 %v4368_v29, %v6371_v23 }
 0x229   :  { %v6373_v54 = vsub.f32 %v4062_v22, %v4202_v8  ;;  %v4807_v23 = vmul.f32 %v4368_v29, %v6375_v15  ;;  %v6379_v15 = vsub.f32 %v4124_v9, %v4202_v8 }
 0x22a   :  { %v4730_v63 = vmul.f32 %v4368_v29, %v6362_v31  ;;  %v6366_v31 = vsub.f32 %v4000_v51, %v4202_v8  ;;  %v4772_v51 = vmul.f32 %v4368_v29, %v6369_v45  ;;  %6372 = vst [vmem:[#allocation54_spill] sm:$0xff] %v4784_v24  ;;  %v6376_v24 = vsub.f32 %v4093_v36, %v4202_v8 }
 0x22b   :  { %v4795_v45 = vmul.f32 %v4368_v29, %v6373_v54  ;;  %v6377_v54 = vsub.f32 %v4102_v59, %v4202_v8  ;;  %v4831_v36 = vmul.f32 %v4368_v29, %v6379_v15  ;;  %v6384_v15 = vsub.f32 %v4164_v52, %v4202_v8 }
 0x22c   :  { %v4754_v5 = vmul.f32 %v4368_v29, %v6366_v31  ;;  %v6370_v31 = vsub.f32 %v4040_v33, %v4202_v8  ;;  %v6374_v33 = vsub.f32 %v4071_v43, %v4202_v8  ;;  %v4813_v22 = vmul.f32 %v4368_v29, %v6376_v24 }
 0x22d   :  { %v4819_v43 = vmul.f32 %v4368_v29, %v6377_v54  ;;  %v6380_v24 = vsub.f32 %v6250_v35, %v4202_v8  ;;  %v6381_v54 = vsub.f32 %v6251_v21, %v4202_v8  ;;  %v4855_v35 = vmul.f32 %v4368_v29, %v6384_v15  ;;  %v6391_v15 = vld [vmem:[#allocation28_spill] sm:$0xff] }
 0x22e   :  { %v4778_v60 = vmul.f32 %v4368_v29, %v6370_v31  ;;  %v4801_v31 = vmul.f32 %v4368_v29, %v6374_v33  ;;  %v6378_v33 = vsub.f32 %v4113_v58, %v4202_v8  ;;  %v4875_v52 = vadd.f32 %v4789_v62, %v4388_v19 }
 0x22f   :  { %v4837_v59 = vmul.f32 %v4368_v29, %v6380_v24  ;;  %v4843_v58 = vmul.f32 %v4368_v29, %v6381_v54  ;;  %v6385_v24 = vsub.f32 %v4175_v55, %v4202_v8  ;;  %v6386_v54 = vld [vmem:[#allocation126_spill] sm:$0xff]  ;;  %v4879_v55 = vadd.f32 %v4789_v62, %v4394_v12 }
 0x230   :  { %v4825_v2 = vmul.f32 %v4368_v29, %v6378_v33  ;;  %v6383_v33 = vsub.f32 %v4155_v27, %v4202_v8  ;;  %6389 = vst [vmem:[#allocation60_spill] sm:$0xff] %v4875_v52  ;;  %v6399_v52 = vld [vmem:[#allocation33_spill] sm:$0xff] }
 0x231   :  { %6382 = vst [vmem:[#allocation55_spill] sm:$0xff] %v4843_v58  ;;  %v4861_v21 = vmul.f32 %v4368_v29, %v6385_v24  ;;  %v6387_v58 = vsub.f32 %v6386_v54, %v4202_v8  ;;  %6390 = vst [vmem:[#allocation64_spill] sm:$0xff] %v4879_v55  ;;  %v4883_v24 = vadd.f32 %v4789_v62, %v6391_v15  ;;  %v6393_v8 = vld [vmem:[#allocation27_spill] sm:$0xff]  ;;  %v6397_v54 = vld [vmem:[#allocation30_spill] sm:$0xff] }
 0x232   :  { %v4849_v9 = vmul.f32 %v4368_v29, %v6383_v33  ;;  %v4871_v33 = vadd.f32 %v4789_v62, %v4382_v11  ;;  %v4895_v19 = vadd.f32 %v4789_v62, %v6397_v54  ;;  %v4899_v12 = vadd.f32 %v4789_v62, %v6399_v52 }
 0x233   :  { %v4867_v27 = vmul.f32 %v4368_v29, %v6387_v58  ;;  %6392 = vst [vmem:[#allocation65_spill] sm:$0xff] %v4883_v24  ;;  %v4887_v29 = vadd.f32 %v4789_v62, %v6393_v8  ;;  %v6395_v58 = vld [vmem:[#allocation29_spill] sm:$0xff]  ;;  %v4903_v15 = vadd.f32 %v4789_v62, %v4430_v7  ;;  %v6402_v24 = vld [vmem:[#allocation48_spill] sm:$0xff] }
 0x234   :  { %6388 = vst [vmem:[#allocation58_spill] sm:$0xff] %v4871_v33  ;;  %v4891_v11 = vadd.f32 %v4789_v62, %v6395_v58  ;;  %6398 = vst [vmem:[#allocation71_spill] sm:$0xff] %v4895_v19  ;;  %v4907_v8 = vadd.f32 %v4789_v62, %v6402_v24  ;;  %v6408_v19 = vld [vmem:[#allocation87_spill] sm:$0xff] }
 0x235   :  { %6394 = vst [vmem:[#allocation66_spill] sm:$0xff] %v4887_v29  ;;  %6400 = vst [vmem:[#allocation74_spill] sm:$0xff] %v4899_v12  ;;  %v6404_v29 = vld [vmem:[#allocation61_spill] sm:$0xff]  ;;  %v4919_v52 = vadd.f32 %v4789_v62, %v6408_v19  ;;  %v6410_v12 = vld [vmem:[#allocation90_spill] sm:$0xff] }
 0x236   :  { %6396 = vst [vmem:[#allocation70_spill] sm:$0xff] %v4891_v11  ;;  %6401 = vst [vmem:[#allocation76_spill] sm:$0xff] %v4903_v15  ;;  %v4911_v58 = vadd.f32 %v4789_v62, %v6404_v29  ;;  %v6406_v11 = vld [vmem:[#allocation86_spill] sm:$0xff]  ;;  %v4923_v7 = vadd.f32 %v4789_v62, %v6410_v12  ;;  %v6412_v15 = vld [vmem:[#allocation92_spill] sm:$0xff]  ;;  %v4931_v29 = vadd.f32 %v4789_v62, %v4472_v17 }
 0x237   :  { %6403 = vst [vmem:[#allocation77_spill] sm:$0xff] %v4907_v8  ;;  %v4915_v54 = vadd.f32 %v4789_v62, %v6406_v11  ;;  %6409 = vst [vmem:[#allocation82_spill] sm:$0xff] %v4919_v52  ;;  %v4927_v24 = vadd.f32 %v4789_v62, %v6412_v15  ;;  %v6419_v52 = vld [vmem:[#allocation99_spill] sm:$0xff] }
 0x238   :  { %6405 = vst [vmem:[#allocation80_spill] sm:$0xff] %v4911_v58  ;;  %6411 = vst [vmem:[#allocation110_spill] sm:$0xff] %v4923_v7  ;;  %v6415_v58 = vld [vmem:[#allocation94_spill] sm:$0xff]  ;;  %v4943_v12 = vadd.f32 %v4789_v62, %v6419_v52  ;;  %v6421_v7 = vld [vmem:[#allocation85_spill] sm:$0xff] }
 0x239   :  { %6407 = vst [vmem:[#allocation81_spill] sm:$0xff] %v4915_v54  ;;  %6413 = vst [vmem:[#allocation111_spill] sm:$0xff] %v4927_v24  ;;  %v4935_v11 = vadd.f32 %v4789_v62, %v6415_v58  ;;  %v6417_v54 = vld [vmem:[#allocation98_spill] sm:$0xff]  ;;  %v4947_v15 = vadd.f32 %v4789_v62, %v6421_v7  ;;  %v6423_v24 = vld [vmem:[#allocation91_spill] sm:$0xff] }
 0x23a   :  { %6414 = vst [vmem:[#allocation117_spill] sm:$0xff] %v4931_v29  ;;  %v4939_v19 = vadd.f32 %v4789_v62, %v6417_v54  ;;  %6420 = vst [vmem:[#allocation27_spill] sm:$0xff] %v4943_v12  ;;  %v4951_v17 = vadd.f32 %v4789_v62, %v6423_v24  ;;  %v6425_v29 = vld [vmem:[#allocation34_spill] sm:$0xff]  ;;  %v6428_v12 = vld [vmem:[#allocation39_spill] sm:$0xff] }
 0x23b   :  { %6416 = vst [vmem:[#allocation126_spill] sm:$0xff] %v4935_v11  ;;  %6422 = vst [vmem:[#allocation29_spill] sm:$0xff] %v4947_v15  ;;  %v4955_v58 = vadd.f32 %v4789_v62, %v6425_v29  ;;  %v6426_v11 = vld [vmem:[#allocation35_spill] sm:$0xff]  ;;  %v4967_v7 = vadd.f32 %v4789_v62, %v6428_v12  ;;  %v6429_v15 = vld [vmem:[#allocation42_spill] sm:$0xff]  ;;  %v4987_v12 = vadd.f32 %v4789_v62, %v4556_v53 }
 0x23c   :  { %6418 = vst [vmem:[#allocation28_spill] sm:$0xff] %v4939_v19  ;;  %6424 = vst [vmem:[#allocation30_spill] sm:$0xff] %v4951_v17  ;;  %v4959_v54 = vadd.f32 %v4789_v62, %v6426_v11  ;;  %v6427_v19 = vld [vmem:[#allocation38_spill] sm:$0xff]  ;;  %v4971_v24 = vadd.f32 %v4789_v62, %v6429_v15  ;;  %v6430_v17 = vld [vmem:[#allocation43_spill] sm:$0xff]  ;;  %v4979_v11 = vadd.f32 %v4789_v62, %v4544_v14 }
 0x23d   :  { %v4963_v52 = vadd.f32 %v4789_v62, %v6427_v19  ;;  %v4975_v29 = vadd.f32 %v4789_v62, %v6430_v17  ;;  %v4983_v19 = vadd.f32 %v4789_v62, %v4550_v44  ;;  %6431 = vst [vmem:[#allocation33_spill] sm:$0xff] %v4987_v12  ;;  %v4991_v15 = vadd.f32 %v4789_v62, %v4562_v37 }
 0x23e   :  { %v4995_v17 = vadd.f32 %v4789_v62, %v4568_v40  ;;  %v4999_v14 = vadd.f32 %v4789_v62, %v4574_v38  ;;  %v5003_v44 = vadd.f32 %v4789_v62, %v4580_v32  ;;  %v5007_v53 = vadd.f32 %v4789_v62, %v4586_v57 }
 0x23f   :  { %6432 = vst [vmem:[#allocation48_spill] sm:$0xff] %v4991_v15  ;;  %v5011_v37 = vadd.f32 %v4789_v62, %v4592_v4  ;;  %v5015_v40 = vadd.f32 %v4789_v62, %v4598_v25  ;;  %v5019_v38 = vadd.f32 %v4789_v62, %v4604_v50  ;;  %v5023_v32 = vadd.f32 %v4789_v62, %v4610_v26  ;;  %v6481_v55 = vld [vmem:[#allocation110_spill] sm:$0xff] }
 0x240   :  { %v5027_v57 = vadd.f32 %v4789_v62, %v4616_v16  ;;  %v5031_v4 = vadd.f32 %v4789_v62, %v4622_v30  ;;  %v5035_v25 = vadd.f32 %v4789_v62, %v4628_v6  ;;  %v5039_v50 = vadd.f32 %v4789_v62, %v4634_v1  ;;  %v6479_v33 = vld [vmem:[#allocation81_spill] sm:$0xff] }
 0x241   :  { %6433 = vst [vmem:[#allocation61_spill] sm:$0xff] %v5019_v38  ;;  %v5043_v26 = vadd.f32 %v4789_v62, %v4640_v49  ;;  %v5047_v16 = vadd.f32 %v4789_v62, %v4646_v10  ;;  %v5051_v30 = vadd.f32 %v4789_v62, %v4652_v39  ;;  %v5063_v49 = vadd.f32 %v4789_v62, %v4670_v28 }
 0x242   :  { %6434 = vst [vmem:[#allocation86_spill] sm:$0xff] %v5031_v4  ;;  %6435 = vst [vmem:[#allocation87_spill] sm:$0xff] %v5035_v25  ;;  %v6436_v4 = vld [vmem:[#allocation45_spill] sm:$0xff]  ;;  %v5067_v10 = vadd.f32 %v4789_v62, %v4676_v47  ;;  %v5071_v39 = vadd.f32 %v4789_v62, %v4682_v3  ;;  %v5083_v28 = vadd.f32 %v4789_v62, %v4700_v20 }
 0x243   :  { %v5055_v6 = vadd.f32 %v4789_v62, %v6436_v4  ;;  %v6437_v25 = vld [vmem:[#allocation49_spill] sm:$0xff]  ;;  %6438 = vst [vmem:[#allocation90_spill] sm:$0xff] %v5063_v49  ;;  %v5075_v4 = vadd.f32 %v4789_v62, %v4688_v13  ;;  %v6441_v49 = vld [vmem:[#allocation50_spill] sm:$0xff]  ;;  %v5091_v3 = vadd.f32 %v4789_v62, %v4712_v48  ;;  %v5095_v13 = vadd.f32 %v4789_v62, %v4718_v18 }
 0x244   :  { %v5059_v1 = vadd.f32 %v4789_v62, %v6437_v25  ;;  %6439 = vst [vmem:[#allocation92_spill] sm:$0xff] %v5071_v39  ;;  %v5079_v25 = vadd.f32 %v4789_v62, %v4694_v41  ;;  %6440 = vst [vmem:[#allocation94_spill] sm:$0xff] %v5083_v28  ;;  %v5087_v47 = vadd.f32 %v4789_v62, %v6441_v49  ;;  %v6488_v8 = vld [vmem:[#allocation30_spill] sm:$0xff]  ;;  %v6509_v39 = vld [vmem:[#allocation3_spill] sm:$0xff] }
 0x245   :  { %6443 = vst [vmem:[#allocation99_spill] sm:$0xff] %v5091_v3  ;;  %6444 = vst [vmem:[#allocation85_spill] sm:$0xff] %v5095_v13  ;;  %v5099_v41 = vadd.f32 %v4789_v62, %v4724_v46  ;;  %v5103_v20 = vadd.f32 %v4789_v62, %v4730_v63  ;;  %v5107_v49 = vadd.f32 %v4789_v62, %v4736_v61  ;;  %v6518_v13 = vld [vmem:[#allocation5_spill] sm:$0xff]  ;;  %v6525_v3 = vld [vmem:[#allocation71_spill] sm:$0xff] }
 0x246   :  { %6442 = vst [vmem:[#allocation98_spill] sm:$0xff] %v5087_v47  ;;  %v5111_v48 = vadd.f32 %v4789_v62, %v4742_v56  ;;  %v5115_v18 = vadd.f32 %v4789_v62, %v4748_v34  ;;  %v5119_v46 = vadd.f32 %v4789_v62, %v4754_v5  ;;  %v5123_v63 = vadd.f32 %v4789_v62, %v4760_v42  ;;  %v6528_v47 = vld [vmem:[#allocation74_spill] sm:$0xff]  ;;  %v6531_v28 = vld [vmem:[#allocation76_spill] sm:$0xff] }
 0x247   :  { %6445 = vst [vmem:[#allocation91_spill] sm:$0xff] %v5099_v41  ;;  %6446 = vst [vmem:[#allocation34_spill] sm:$0xff] %v5103_v20  ;;  %v5127_v61 = vadd.f32 %v4789_v62, %v4766_v0  ;;  %v5131_v56 = vadd.f32 %v4789_v62, %v4772_v51  ;;  %v5135_v34 = vadd.f32 %v4789_v62, %v4778_v60  ;;  %v6522_v20 = vld [vmem:[#allocation70_spill] sm:$0xff] }
 0x248   :  { %6447 = vst [vmem:[#allocation35_spill] sm:$0xff] %v5107_v49  ;;  %6448 = vst [vmem:[#allocation38_spill] sm:$0xff] %v5111_v48  ;;  %v5143_v42 = vadd.f32 %v4789_v62, %v4795_v45  ;;  %v5147_v0 = vadd.f32 %v4789_v62, %v4801_v31  ;;  %v5151_v51 = vadd.f32 %v4789_v62, %v4807_v23  ;;  %v6506_v49 = vld [vmem:[#allocation2_spill] sm:$0xff] }
 0x249   :  { %6449 = vst [vmem:[#allocation39_spill] sm:$0xff] %v5115_v18  ;;  %6450 = vst [vmem:[#allocation42_spill] sm:$0xff] %v5119_v46  ;;  %v6455_v18 = vld [vmem:[#allocation54_spill] sm:$0xff]  ;;  %v5155_v60 = vadd.f32 %v4789_v62, %v4813_v22  ;;  %v5163_v45 = vadd.f32 %v4789_v62, %v4825_v2  ;;  %v5167_v31 = vadd.f32 %v4789_v62, %v4831_v36  ;;  %v6490_v15 = vld [vmem:[#allocation87_spill] sm:$0xff] }
 0x24a   :  { %6451 = vst [vmem:[#allocation43_spill] sm:$0xff] %v5123_v63  ;;  %6452 = vst [vmem:[#allocation45_spill] sm:$0xff] %v5127_v61  ;;  %v5139_v5 = vadd.f32 %v4789_v62, %v6455_v18  ;;  %v5159_v18 = vadd.f32 %v4789_v62, %v4819_v43  ;;  %v5171_v23 = vadd.f32 %v4789_v62, %v4837_v59  ;;  %v6489_v12 = vld [vmem:[#allocation86_spill] sm:$0xff]  ;;  %v6512_v63 = vld [vmem:[#allocation4_spill] sm:$0xff] }
 0x24b   :  { %6453 = vst [vmem:[#allocation49_spill] sm:$0xff] %v5131_v56  ;;  %6454 = vst [vmem:[#allocation50_spill] sm:$0xff] %v5135_v34  ;;  %v5179_v43 = vadd.f32 %v4789_v62, %v4849_v9  ;;  %v5183_v2 = vadd.f32 %v4789_v62, %v4855_v35  ;;  %v5187_v36 = vadd.f32 %v4789_v62, %v4861_v21  ;;  %v6482_v9 = vld [vmem:[#allocation111_spill] sm:$0xff]  ;;  %v6484_v35 = vld [vmem:[#allocation126_spill] sm:$0xff] }
 0x24c   :  { %6456 = vst [vmem:[#allocation54_spill] sm:$0xff] %v5139_v5  ;;  %6457 = vst [vmem:[#allocation127_spill] sm:$0xff] %v5143_v42  ;;  %v5191_v59 = vadd.f32 %v4789_v62, %v4867_v27  ;;  %v6478_v27 = vld [vmem:[#allocation80_spill] sm:$0xff]  ;;  %v6486_v21 = vld [vmem:[#allocation27_spill] sm:$0xff] }
 0x24d   :  { %6458 = vst [vmem:[#allocation128_spill] sm:$0xff] %v5147_v0  ;;  %6459 = vst [vmem:[#allocation129_spill] sm:$0xff] %v5151_v51  ;;  %v6465_v51 = vld [vmem:[#allocation55_spill] sm:$0xff]  ;;  %v6487_v42 = vld [vmem:[#allocation29_spill] sm:$0xff] }
 0x24e   :  { %6460 = vst [vmem:[#allocation130_spill] sm:$0xff] %v5155_v60  ;;  %6461 = vst [vmem:[#allocation131_spill] sm:$0xff] %v5159_v18  ;;  %v5175_v22 = vadd.f32 %v4789_v62, %v6465_v51  ;;  %v6480_v51 = vld [vmem:[#allocation82_spill] sm:$0xff]  ;;  %v6485_v60 = vld [vmem:[#allocation28_spill] sm:$0xff] }
 0x24f   :  { %6462 = vst [vmem:[#allocation132_spill] sm:$0xff] %v5163_v45  ;;  %6463 = vst [vmem:[#allocation133_spill] sm:$0xff] %v5167_v31  ;;  %v6483_v45 = vld [vmem:[#allocation117_spill] sm:$0xff]  ;;  %v6491_v38 = vld [vmem:[#allocation90_spill] sm:$0xff] }
 0x250   :  { %6464 = vst [vmem:[#allocation134_spill] sm:$0xff] %v5171_v23  ;;  %6466 = vst [vmem:[#allocation55_spill] sm:$0xff] %v5175_v22  ;;  %v6507_v22 = vld [vmem:[#allocation58_spill] sm:$0xff] }
 0x251   :  { %6467 = vst [vmem:[#allocation135_spill] sm:$0xff] %v5179_v43  ;;  %6468 = vst [vmem:[#allocation136_spill] sm:$0xff] %v5183_v2  ;;  %v6508_v48 = vmax.f32 %v6507_v22, 0.0  ;;  %v6510_v43 = vld [vmem:[#allocation60_spill] sm:$0xff]  ;;  %v6515_v56 = vld [vmem:[#allocation6_spill] sm:$0xff]  ;;  %v6523_v22 = vmax.f32 %v6522_v20, 0.0 }
 0x252   :  { %6469 = vst [vmem:[#allocation137_spill] sm:$0xff] %v5187_v36  ;;  %6470 = vst [vmem:[#allocation138_spill] sm:$0xff] %v5191_v59  ;;  %v6511_v46 = vmax.f32 %v6510_v43, 0.0  ;;  %v6513_v2 = vld [vmem:[#allocation64_spill] sm:$0xff]  ;;  %v6516_v36 = vld [vmem:[#allocation65_spill] sm:$0xff]  ;;  %v6526_v43 = vmax.f32 %v6525_v3, 0.0 }
 0x253   :  { %v2140_v31 = vmul.f32 %v6508_v48, %v6506_v49  ;;  %v6514_v61 = vmax.f32 %v6513_v2, 0.0  ;;  %v6517_v34 = vmax.f32 %v6516_v36, 0.0  ;;  %v6519_v62 = vld [vmem:[#allocation66_spill] sm:$0xff]  ;;  %v6521_v59 = vld [vmem:[#allocation8_spill] sm:$0xff]  ;;  %v6524_v48 = vld [vmem:[#allocation7_spill] sm:$0xff]  ;;  %v6529_v2 = vmax.f32 %v6528_v47, 0.0 }
 0x254   :  { %v2141_v18 = vmul.f32 %v6511_v46, %v6509_v39  ;;  %v6520_v41 = vmax.f32 %v6519_v62, 0.0  ;;  %v2145_v49 = vmul.f32 %v6523_v22, %v6521_v59  ;;  %v2146_v39 = vmul.f32 %v6526_v43, %v6524_v48  ;;  %v6527_v46 = vld [vmem:[#allocation10_spill] sm:$0xff]  ;;  %v6536_v59 = vld [vmem:[#allocation11_spill] sm:$0xff]  ;;  %v6540_v43 = vld [vmem:[#allocation13_spill] sm:$0xff] }
 0x255   :  { %v2142_v0 = vmul.f32 %v6514_v61, %v6512_v63  ;;  %v2143_v5 = vmul.f32 %v6517_v34, %v6515_v56  ;;  %v2147_v63 = vmul.f32 %v6529_v2, %v6527_v46  ;;  %v6530_v61 = vld [vmem:[#allocation9_spill] sm:$0xff]  ;;  %v6532_v36 = vmax.f32 %v6531_v28, 0.0  ;;  %2227 = vst.msk [vmem:[%s5844_s5 + $0x18] sm:$0xff] %vm1382_vm3, %v2140_v31  ;;  %v6538_v22 = vld [vmem:[#allocation14_spill] sm:$0xff] }
 0x256   :  { %v2144_v23 = vmul.f32 %v6520_v41, %v6518_v13  ;;  %v6533_v13 = vld [vmem:[#allocation12_spill] sm:$0xff]  ;;  %v6534_v41 = vld [vmem:[#allocation77_spill] sm:$0xff]  ;;  %v6537_v3 = vmax.f32 %v6478_v27, 0.0  ;;  %v6539_v47 = vmax.f32 %v6479_v33, 0.0  ;;  %v6541_v28 = vmax.f32 %v6480_v51, 0.0  ;;  %2228 = vst.msk [vmem:[%s5844_s5 + $0x20] sm:$0xff] %vm1382_vm3, %v2141_v18 }
 0x257   :  { %v2148_v56 = vmul.f32 %v6532_v36, %v6530_v61  ;;  %v6535_v20 = vmax.f32 %v6534_v41, 0.0  ;;  %2229 = vst.msk [vmem:[%s5844_s5 + $0x28] sm:$0xff] %vm1382_vm3, %v2142_v0  ;;  %2230 = vst.msk [vmem:[%s5844_s5 + $0x30] sm:$0xff] %vm1382_vm3, %v2143_v5  ;;  %v6542_v33 = vld [vmem:[#allocation16_spill] sm:$0xff]  ;;  %v6543_v31 = vmax.f32 %v6481_v55, 0.0  ;;  %v6544_v18 = vld [vmem:[#allocation15_spill] sm:$0xff] }
 0x258   :  { %v2150_v62 = vmul.f32 %v6537_v3, %v6536_v59  ;;  %v2151_v48 = vmul.f32 %v6539_v47, %v6538_v22  ;;  %v2152_v46 = vmul.f32 %v6541_v28, %v6540_v43  ;;  %2231 = vst.msk [vmem:[%s5844_s5 + $0x38] sm:$0xff] %vm1382_vm3, %v2144_v23  ;;  %v6545_v27 = vmax.f32 %v6482_v9, 0.0  ;;  %v6546_v61 = vld [vmem:[#allocation18_spill] sm:$0xff]  ;;  %2232 = vst.msk [vmem:[%s5844_s5 + $0x40] sm:$0xff] %vm1382_vm3, %v2145_v49  ;;  %v6550_v55 = vld [vmem:[#allocation20_spill] sm:$0xff] }
 0x259   :  { %v2149_v34 = vmul.f32 %v6535_v20, %v6533_v13  ;;  %v2153_v51 = vmul.f32 %v6543_v31, %v6542_v33  ;;  %v6547_v0 = vmax.f32 %v6483_v45, 0.0  ;;  %v6548_v13 = vld [vmem:[#allocation17_spill] sm:$0xff]  ;;  %v6549_v5 = vmax.f32 %v6484_v35, 0.0  ;;  %2233 = vst.msk [vmem:[%s5844_s5 + $0x48] sm:$0xff] %vm1382_vm3, %v2146_v39  ;;  %2234 = vst.msk [vmem:[%s5844_s5 + $0x50] sm:$0xff] %vm1382_vm3, %v2147_v63  ;;  %v6552_v9 = vld [vmem:[#allocation19_spill] sm:$0xff] }
 0x25a   :  { %v2154_v2 = vmul.f32 %v6545_v27, %v6544_v18  ;;  %2235 = vst.msk [vmem:[%s5844_s5 + $0x58] sm:$0xff] %vm1382_vm3, %v2148_v56  ;;  %v6551_v45 = vmax.f32 %v6485_v60, 0.0  ;;  %v6553_v35 = vmax.f32 %v6486_v21, 0.0  ;;  %v6554_v20 = vld [vmem:[#allocation22_spill] sm:$0xff]  ;;  %v6555_v39 = vmax.f32 %v6487_v42, 0.0  ;;  %v6556_v3 = vld [vmem:[#allocation21_spill] sm:$0xff] }
 0x25b   :  { %v2155_v36 = vmul.f32 %v6547_v0, %v6546_v61  ;;  %v2156_v41 = vmul.f32 %v6549_v5, %v6548_v13  ;;  %v6557_v63 = vmax.f32 %v6488_v8, 0.0  ;;  %2236 = vst.msk [vmem:[%s5844_s5 + $0x60] sm:$0xff] %vm1382_vm3, %v2149_v34  ;;  %2237 = vst.msk [vmem:[%s5844_s5 + $0x68] sm:$0xff] %vm1382_vm3, %v2150_v62  ;;  %v6558_v8 = vld [vmem:[#allocation24_spill] sm:$0xff]  ;;  %v6559_v42 = vmax.f32 %v4955_v58, 0.0  ;;  %v6560_v21 = vld [vmem:[#allocation23_spill] sm:$0xff] }
 0x25c   :  { %v2157_v23 = vmul.f32 %v6551_v45, %v6550_v55  ;;  %v2158_v49 = vmul.f32 %v6553_v35, %v6552_v9  ;;  %v2159_v59 = vmul.f32 %v6555_v39, %v6554_v20  ;;  %2238 = vst.msk [vmem:[%s5844_s5 + $0x70] sm:$0xff] %vm1382_vm3, %v2151_v48  ;;  %2239 = vst.msk [vmem:[%s5844_s5 + $0x78] sm:$0xff] %vm1382_vm3, %v2152_v46  ;;  %v6561_v56 = vmax.f32 %v4959_v54, 0.0  ;;  %v6562_v47 = vld [vmem:[#allocation26_spill] sm:$0xff]  ;;  %v6564_v28 = vld [vmem:[#allocation25_spill] sm:$0xff] }
 0x25d   :  { %v2160_v22 = vmul.f32 %v6557_v63, %v6556_v3  ;;  %v2161_v60 = vmul.f32 %v6559_v42, %v6558_v8  ;;  %v6563_v62 = vmax.f32 %v4963_v52, 0.0  ;;  %v6565_v48 = vmax.f32 %v4967_v7, 0.0  ;;  %2240 = vst.msk [vmem:[%s5844_s5 + $0x80] sm:$0xff] %vm1382_vm3, %v2153_v51  ;;  %2241 = vst.msk [vmem:[%s5844_s5 + $0x88] sm:$0xff] %vm1382_vm3, %v2154_v2  ;;  %v6566_v58 = vld [vmem:[#allocation32_spill] sm:$0xff]  ;;  %v6568_v7 = vld [vmem:[#allocation31_spill] sm:$0xff] }
 0x25e   :  { %v2162_v34 = vmul.f32 %v6561_v56, %v6560_v21  ;;  %2242 = vst.msk [vmem:[%s5844_s5 + $0x90] sm:$0xff] %vm1382_vm3, %v2155_v36  ;;  %2243 = vst.msk [vmem:[%s5844_s5 + $0x98] sm:$0xff] %vm1382_vm3, %v2156_v41  ;;  %v6567_v54 = vmax.f32 %v4971_v24, 0.0  ;;  %v6569_v46 = vmax.f32 %v4975_v29, 0.0  ;;  %v6570_v51 = vld [vmem:[#allocation37_spill] sm:$0xff]  ;;  %v6571_v18 = vmax.f32 %v4979_v11, 0.0 }
 0x25f   :  { %v2163_v43 = vmul.f32 %v6563_v62, %v6562_v47  ;;  %v2164_v33 = vmul.f32 %v6565_v48, %v6564_v28  ;;  %v6572_v2 = vld [vmem:[#allocation36_spill] sm:$0xff]  ;;  %v6573_v61 = vmax.f32 %v4983_v19, 0.0  ;;  %2244 = vst.msk [vmem:[%s5844_s5 + $0xa0] sm:$0xff] %vm1382_vm3, %v2157_v23  ;;  %2245 = vst.msk [vmem:[%s5844_s5 + $0xa8] sm:$0xff] %vm1382_vm3, %v2158_v49  ;;  %v6574_v24 = vld [vmem:[#allocation41_spill] sm:$0xff]  ;;  %v6581_v45 = vmax.f32 %v4995_v17, 0.0 }
 0x260   :  { %v2165_v52 = vmul.f32 %v6567_v54, %v6566_v58  ;;  %v2166_v31 = vmul.f32 %v6569_v46, %v6568_v7  ;;  %v2167_v27 = vmul.f32 %v6571_v18, %v6570_v51  ;;  %2246 = vst.msk [vmem:[%s5844_s5 + $0xb0] sm:$0xff] %vm1382_vm3, %v2159_v59  ;;  %2247 = vst.msk [vmem:[%s5844_s5 + $0xb8] sm:$0xff] %vm1382_vm3, %v2160_v22  ;;  %v6575_v29 = vld [vmem:[#allocation33_spill] sm:$0xff]  ;;  %v6577_v36 = vld [vmem:[#allocation40_spill] sm:$0xff]  ;;  %v6583_v35 = vmax.f32 %v4999_v14, 0.0 }
 0x261   :  { %v2168_v0 = vmul.f32 %v6573_v61, %v6572_v2  ;;  %v6576_v11 = vmax.f32 %v6575_v29, 0.0  ;;  %v6578_v13 = vld [vmem:[#allocation48_spill] sm:$0xff]  ;;  %v6580_v55 = vld [vmem:[#allocation47_spill] sm:$0xff]  ;;  %v6582_v9 = vld [vmem:[#allocation46_spill] sm:$0xff]  ;;  %2248 = vst.msk [vmem:[%s5844_s5 + $0xc0] sm:$0xff] %vm1382_vm3, %v2161_v60  ;;  %v6585_v14 = vmax.f32 %v5003_v44, 0.0 }
 0x262   :  { %v6579_v5 = vmax.f32 %v6578_v13, 0.0  ;;  %v2171_v23 = vmul.f32 %v6581_v45, %v6580_v55  ;;  %v2172_v49 = vmul.f32 %v6583_v35, %v6582_v9  ;;  %2249 = vst.msk [vmem:[%s5844_s5 + $0xc8] sm:$0xff] %vm1382_vm3, %v2162_v34  ;;  %2250 = vst.msk [vmem:[%s5844_s5 + $0xd0] sm:$0xff] %vm1382_vm3, %v2163_v43  ;;  %v6584_v17 = vld [vmem:[#allocation52_spill] sm:$0xff]  ;;  %v6586_v39 = vld [vmem:[#allocation51_spill] sm:$0xff]  ;;  %v6587_v59 = vmax.f32 %v5007_v53, 0.0 }
 0x263   :  { %v2169_v19 = vmul.f32 %v6576_v11, %v6574_v24  ;;  %2251 = vst.msk [vmem:[%s5844_s5 + $0xd8] sm:$0xff] %vm1382_vm3, %v2164_v33  ;;  %v2173_v20 = vmul.f32 %v6585_v14, %v6584_v17  ;;  %v6588_v63 = vld [vmem:[#allocation57_spill] sm:$0xff]  ;;  %v6589_v22 = vmax.f32 %v5011_v37, 0.0  ;;  %v6590_v42 = vld [vmem:[#allocation56_spill] sm:$0xff]  ;;  %v6591_v60 = vmax.f32 %v5015_v40, 0.0  ;;  %2252 = vst.msk [vmem:[%s5844_s5 + $0xe0] sm:$0xff] %vm1382_vm3, %v2165_v52 }
 0x264   :  { %v2170_v41 = vmul.f32 %v6579_v5, %v6577_v36  ;;  %v2174_v3 = vmul.f32 %v6587_v59, %v6586_v39  ;;  %2253 = vst.msk [vmem:[%s5844_s5 + $0xe8] sm:$0xff] %vm1382_vm3, %v2166_v31  ;;  %2254 = vst.msk [vmem:[%s5844_s5 + $0xf0] sm:$0xff] %vm1382_vm3, %v2167_v27  ;;  %v6592_v44 = vld [vmem:[#allocation63_spill] sm:$0xff]  ;;  %v6593_v53 = vld [vmem:[#allocation61_spill] sm:$0xff]  ;;  %v6596_v34 = vmax.f32 %v5023_v32, 0.0  ;;  %v6598_v43 = vmax.f32 %v5027_v57, 0.0 }
 0x265   :  { %v2175_v8 = vmul.f32 %v6589_v22, %v6588_v63  ;;  %v2176_v21 = vmul.f32 %v6591_v60, %v6590_v42  ;;  %2255 = vst.msk [vmem:[%s5844_s5 + $0xf8] sm:$0xff] %vm1382_vm3, %v2168_v0  ;;  %v6594_v37 = vmax.f32 %v6593_v53, 0.0  ;;  %v6595_v56 = vld [vmem:[#allocation62_spill] sm:$0xff]  ;;  %v6597_v62 = vld [vmem:[#allocation68_spill] sm:$0xff]  ;;  %v6599_v48 = vld [vmem:[#allocation67_spill] sm:$0xff]  ;;  %v6600_v33 = vmax.f32 %v6489_v12, 0.0 }
 0x266   :  { %v2178_v47 = vmul.f32 %v6596_v34, %v6595_v56  ;;  %v2179_v28 = vmul.f32 %v6598_v43, %v6597_v62  ;;  %2256 = vst.msk [vmem:[%s5844_s5 + $0x100] sm:$0xff] %vm1382_vm3, %v2169_v19  ;;  %2257 = vst.msk [vmem:[%s5844_s5 + $0x108] sm:$0xff] %vm1382_vm3, %v2170_v41  ;;  %v6601_v12 = vld [vmem:[#allocation73_spill] sm:$0xff]  ;;  %v6602_v32 = vmax.f32 %v6490_v15, 0.0  ;;  %v6603_v54 = vld [vmem:[#allocation72_spill] sm:$0xff]  ;;  %v6604_v52 = vmax.f32 %v5039_v50, 0.0 }
 0x267   :  { %v2177_v40 = vmul.f32 %v6594_v37, %v6592_v44  ;;  %v2180_v58 = vmul.f32 %v6600_v33, %v6599_v48  ;;  %2258 = vst.msk [vmem:[%s5844_s5 + $0x110] sm:$0xff] %vm1382_vm3, %v2171_v23  ;;  %2259 = vst.msk [vmem:[%s5844_s5 + $0x118] sm:$0xff] %vm1382_vm3, %v2172_v49  ;;  %v6605_v46 = vld [vmem:[#allocation79_spill] sm:$0xff]  ;;  %v6606_v31 = vmax.f32 %v5043_v26, 0.0  ;;  %v6607_v18 = vld [vmem:[#allocation78_spill] sm:$0xff]  ;;  %v6608_v27 = vmax.f32 %v5047_v16, 0.0 }
 0x268   :  { %v2181_v57 = vmul.f32 %v6602_v32, %v6601_v12  ;;  %v2182_v7 = vmul.f32 %v6604_v52, %v6603_v54  ;;  %2260 = vst.msk [vmem:[%s5844_s5 + $0x120] sm:$0xff] %vm1382_vm3, %v2173_v20  ;;  %2261 = vst.msk [vmem:[%s5844_s5 + $0x128] sm:$0xff] %vm1382_vm3, %v2174_v3  ;;  %v6609_v15 = vld [vmem:[#allocation84_spill] sm:$0xff]  ;;  %v6610_v50 = vmax.f32 %v5051_v30, 0.0  ;;  %v6611_v16 = vld [vmem:[#allocation83_spill] sm:$0xff]  ;;  %v6612_v61 = vmax.f32 %v5055_v6, 0.0 }
 0x269   :  { %v2183_v51 = vmul.f32 %v6606_v31, %v6605_v46  ;;  %v2184_v2 = vmul.f32 %v6608_v27, %v6607_v18  ;;  %2262 = vst.msk [vmem:[%s5844_s5 + $0x130] sm:$0xff] %vm1382_vm3, %v2175_v8  ;;  %2263 = vst.msk [vmem:[%s5844_s5 + $0x138] sm:$0xff] %vm1382_vm3, %v2176_v21  ;;  %v6613_v24 = vld [vmem:[#allocation89_spill] sm:$0xff]  ;;  %v6614_v29 = vmax.f32 %v5059_v1, 0.0  ;;  %v6615_v19 = vld [vmem:[#allocation88_spill] sm:$0xff]  ;;  %v6616_v36 = vmax.f32 %v6491_v38, 0.0 }
 0x26a   :  { %v2185_v26 = vmul.f32 %v6610_v50, %v6609_v15  ;;  %v2186_v0 = vmul.f32 %v6612_v61, %v6611_v16  ;;  %2264 = vst.msk [vmem:[%s5844_s5 + $0x140] sm:$0xff] %vm1382_vm3, %v2177_v40  ;;  %2265 = vst.msk [vmem:[%s5844_s5 + $0x148] sm:$0xff] %vm1382_vm3, %v2178_v47  ;;  %v6617_v38 = vld [vmem:[#allocation96_spill] sm:$0xff]  ;;  %v6618_v30 = vmax.f32 %v5067_v10, 0.0  ;;  %v6619_v1 = vld [vmem:[#allocation95_spill] sm:$0xff]  ;;  %v6623_v23 = vmax.f32 %v5075_v4, 0.0 }
 0x26b   :  { %v2187_v11 = vmul.f32 %v6614_v29, %v6613_v24  ;;  %v2188_v13 = vmul.f32 %v6616_v36, %v6615_v19  ;;  %2266 = vst.msk [vmem:[%s5844_s5 + $0x150] sm:$0xff] %vm1382_vm3, %v2179_v28  ;;  %2267 = vst.msk [vmem:[%s5844_s5 + $0x158] sm:$0xff] %vm1382_vm3, %v2180_v58  ;;  %v6620_v5 = vld [vmem:[#allocation92_spill] sm:$0xff]  ;;  %v6624_v35 = vld [vmem:[#allocation101_spill] sm:$0xff]  ;;  %v6625_v49 = vmax.f32 %v5079_v25, 0.0 }
 0x26c   :  { %v2189_v6 = vmul.f32 %v6618_v30, %v6617_v38  ;;  %v6621_v41 = vmax.f32 %v6620_v5, 0.0  ;;  %v6622_v45 = vld [vmem:[#allocation100_spill] sm:$0xff]  ;;  %2268 = vst.msk [vmem:[%s5844_s5 + $0x160] sm:$0xff] %vm1382_vm3, %v2181_v57  ;;  %2269 = vst.msk [vmem:[%s5844_s5 + $0x168] sm:$0xff] %vm1382_vm3, %v2182_v7  ;;  %v6626_v10 = vld [vmem:[#allocation102_spill] sm:$0xff] }
 0x26d   :  { %v2191_v9 = vmul.f32 %v6623_v23, %v6622_v45  ;;  %v2192_v17 = vmul.f32 %v6625_v49, %v6624_v35  ;;  %2270 = vst.msk [vmem:[%s5844_s5 + $0x170] sm:$0xff] %vm1382_vm3, %v2183_v51  ;;  %2271 = vst.msk [vmem:[%s5844_s5 + $0x178] sm:$0xff] %vm1382_vm3, %v2184_v2  ;;  %v6627_v4 = vld [vmem:[#allocation94_spill] sm:$0xff]  ;;  %v6629_v20 = vld [vmem:[#allocation103_spill] sm:$0xff] }
 0x26e   :  { %v2190_v55 = vmul.f32 %v6621_v41, %v6619_v1  ;;  %v6628_v25 = vmax.f32 %v6627_v4, 0.0  ;;  %v6630_v39 = vld [vmem:[#allocation98_spill] sm:$0xff]  ;;  %v6632_v63 = vld [vmem:[#allocation104_spill] sm:$0xff]  ;;  %v6633_v22 = vld [vmem:[#allocation99_spill] sm:$0xff]  ;;  %2272 = vst.msk [vmem:[%s5844_s5 + $0x180] sm:$0xff] %vm1382_vm3, %v2185_v26 }
 0x26f   :  { %v6631_v59 = vmax.f32 %v6630_v39, 0.0  ;;  %v6634_v8 = vmax.f32 %v6633_v22, 0.0  ;;  %v6635_v60 = vld [vmem:[#allocation105_spill] sm:$0xff]  ;;  %2273 = vst.msk [vmem:[%s5844_s5 + $0x188] sm:$0xff] %vm1382_vm3, %v2186_v0  ;;  %2274 = vst.msk [vmem:[%s5844_s5 + $0x190] sm:$0xff] %vm1382_vm3, %v2187_v11  ;;  %v6638_v37 = vld [vmem:[#allocation106_spill] sm:$0xff] }
 0x270   :  { %v2193_v14 = vmul.f32 %v6628_v25, %v6626_v10  ;;  %v6636_v21 = vld [vmem:[#allocation85_spill] sm:$0xff]  ;;  %2275 = vst.msk [vmem:[%s5844_s5 + $0x198] sm:$0xff] %vm1382_vm3, %v2188_v13  ;;  %v6639_v40 = vld [vmem:[#allocation91_spill] sm:$0xff]  ;;  %v6642_v62 = vld [vmem:[#allocation34_spill] sm:$0xff] }
 0x271   :  { %v2194_v3 = vmul.f32 %v6631_v59, %v6629_v20  ;;  %v2195_v42 = vmul.f32 %v6634_v8, %v6632_v63  ;;  %v6637_v44 = vmax.f32 %v6636_v21, 0.0  ;;  %v6640_v56 = vmax.f32 %v6639_v40, 0.0  ;;  %v6641_v47 = vld [vmem:[#allocation107_spill] sm:$0xff]  ;;  %v6644_v48 = vld [vmem:[#allocation108_spill] sm:$0xff]  ;;  %v6647_v32 = vld [vmem:[#allocation109_spill] sm:$0xff]  ;;  %2276 = vst.msk [vmem:[%s5844_s5 + $0x1a0] sm:$0xff] %vm1382_vm3, %v2189_v6 }
 0x272   :  { %v6643_v43 = vmax.f32 %v6642_v62, 0.0  ;;  %v6645_v33 = vld [vmem:[#allocation35_spill] sm:$0xff]  ;;  %v6648_v57 = vld [vmem:[#allocation38_spill] sm:$0xff]  ;;  %2277 = vst.msk [vmem:[%s5844_s5 + $0x1a8] sm:$0xff] %vm1382_vm3, %v2190_v55  ;;  %2278 = vst.msk [vmem:[%s5844_s5 + $0x1b0] sm:$0xff] %vm1382_vm3, %v2191_v9 }
 0x273   :  { %v2196_v53 = vmul.f32 %v6637_v44, %v6635_v60  ;;  %v2197_v34 = vmul.f32 %v6640_v56, %v6638_v37  ;;  %v6646_v58 = vmax.f32 %v6645_v33, 0.0  ;;  %v6649_v54 = vmax.f32 %v6648_v57, 0.0  ;;  %2279 = vst.msk [vmem:[%s5844_s5 + $0x1b8] sm:$0xff] %vm1382_vm3, %v2192_v17  ;;  %v6650_v7 = vld [vmem:[#allocation112_spill] sm:$0xff]  ;;  %v6651_v46 = vld [vmem:[#allocation39_spill] sm:$0xff]  ;;  %v6653_v18 = vld [vmem:[#allocation113_spill] sm:$0xff] }
 0x274   :  { %v2198_v28 = vmul.f32 %v6643_v43, %v6641_v47  ;;  %v6652_v31 = vmax.f32 %v6651_v46, 0.0  ;;  %v6654_v27 = vld [vmem:[#allocation42_spill] sm:$0xff]  ;;  %v6657_v26 = vld [vmem:[#allocation43_spill] sm:$0xff]  ;;  %v6660_v24 = vld [vmem:[#allocation45_spill] sm:$0xff]  ;;  %2280 = vst.msk [vmem:[%s5844_s5 + $0x1c0] sm:$0xff] %vm1382_vm3, %v2193_v14 }
 0x275   :  { %v2199_v12 = vmul.f32 %v6646_v58, %v6644_v48  ;;  %v2200_v52 = vmul.f32 %v6649_v54, %v6647_v32  ;;  %v6655_v2 = vmax.f32 %v6654_v27, 0.0  ;;  %v6656_v50 = vld [vmem:[#allocation114_spill] sm:$0xff]  ;;  %v6658_v16 = vmax.f32 %v6657_v26, 0.0  ;;  %v6659_v0 = vld [vmem:[#allocation115_spill] sm:$0xff]  ;;  %2281 = vst.msk [vmem:[%s5844_s5 + $0x1c8] sm:$0xff] %vm1382_vm3, %v2194_v3  ;;  %2282 = vst.msk [vmem:[%s5844_s5 + $0x1d0] sm:$0xff] %vm1382_vm3, %v2195_v42 }
 0x276   :  { %v2201_v51 = vmul.f32 %v6652_v31, %v6650_v7  ;;  %v6661_v29 = vmax.f32 %v6660_v24, 0.0  ;;  %2283 = vst.msk [vmem:[%s5844_s5 + $0x1d8] sm:$0xff] %vm1382_vm3, %v2196_v53  ;;  %v6662_v19 = vld [vmem:[#allocation116_spill] sm:$0xff]  ;;  %v6663_v36 = vld [vmem:[#allocation49_spill] sm:$0xff]  ;;  %v6665_v30 = vld [vmem:[#allocation118_spill] sm:$0xff] }
 0x277   :  { %v2202_v15 = vmul.f32 %v6655_v2, %v6653_v18  ;;  %v2203_v61 = vmul.f32 %v6658_v16, %v6656_v50  ;;  %v6664_v13 = vmax.f32 %v6663_v36, 0.0  ;;  %v6666_v6 = vld [vmem:[#allocation50_spill] sm:$0xff]  ;;  %v6668_v41 = vld [vmem:[#allocation44_spill] sm:$0xff]  ;;  %v6671_v9 = vld [vmem:[#allocation119_spill] sm:$0xff]  ;;  %2284 = vst.msk [vmem:[%s5844_s5 + $0x1e0] sm:$0xff] %vm1382_vm3, %v2197_v34 }
 0x278   :  { %v2204_v11 = vmul.f32 %v6661_v29, %v6659_v0  ;;  %v6667_v1 = vmax.f32 %v6666_v6, 0.0  ;;  %v6669_v55 = vld [vmem:[#allocation54_spill] sm:$0xff]  ;;  %v6672_v35 = vld [vmem:[#allocation127_spill] sm:$0xff]  ;;  %2285 = vst.msk [vmem:[%s5844_s5 + $0x1e8] sm:$0xff] %vm1382_vm3, %v2198_v28  ;;  %2286 = vst.msk [vmem:[%s5844_s5 + $0x1f0] sm:$0xff] %vm1382_vm3, %v2199_v12 }
 0x279   :  { %v2205_v38 = vmul.f32 %v6664_v13, %v6662_v19  ;;  %v6670_v45 = vmax.f32 %v6669_v55, 0.0  ;;  %v6673_v49 = vmax.f32 %v6672_v35, 0.0  ;;  %2287 = vst.msk [vmem:[%s5844_s5 + $0x1f8] sm:$0xff] %vm1382_vm3, %v2200_v52  ;;  %v6674_v10 = vld [vmem:[#allocation53_spill] sm:$0xff]  ;;  %v6675_v4 = vld [vmem:[#allocation128_spill] sm:$0xff]  ;;  %v6677_v20 = vld [vmem:[#allocation59_spill] sm:$0xff] }
 0x27a   :  { %v2206_v5 = vmul.f32 %v6667_v1, %v6665_v30  ;;  %v6676_v25 = vmax.f32 %v6675_v4, 0.0  ;;  %v6678_v39 = vld [vmem:[#allocation129_spill] sm:$0xff]  ;;  %v6680_v63 = vld [vmem:[#allocation120_spill] sm:$0xff]  ;;  %v6681_v22 = vld [vmem:[#allocation130_spill] sm:$0xff]  ;;  %2288 = vst.msk [vmem:[%s5844_s5 + $0x200] sm:$0xff] %vm1382_vm3, %v2201_v51 }
 0x27b   :  { %v2207_v23 = vmul.f32 %v6670_v45, %v6668_v41  ;;  %v2208_v17 = vmul.f32 %v6673_v49, %v6671_v9  ;;  %v6679_v59 = vmax.f32 %v6678_v39, 0.0  ;;  %v6682_v8 = vmax.f32 %v6681_v22, 0.0  ;;  %v6683_v60 = vld [vmem:[#allocation121_spill] sm:$0xff]  ;;  %v6684_v21 = vld [vmem:[#allocation131_spill] sm:$0xff]  ;;  %2289 = vst.msk [vmem:[%s5844_s5 + $0x208] sm:$0xff] %vm1382_vm3, %v2202_v15  ;;  %2290 = vst.msk [vmem:[%s5844_s5 + $0x210] sm:$0xff] %vm1382_vm3, %v2203_v61 }
 0x27c   :  { %v2209_v14 = vmul.f32 %v6676_v25, %v6674_v10  ;;  %v6685_v44 = vmax.f32 %v6684_v21, 0.0  ;;  %2291 = vst.msk [vmem:[%s5844_s5 + $0x218] sm:$0xff] %vm1382_vm3, %v2204_v11  ;;  %v6686_v37 = vld [vmem:[#allocation69_spill] sm:$0xff]  ;;  %v6687_v40 = vld [vmem:[#allocation132_spill] sm:$0xff]  ;;  %v6689_v47 = vld [vmem:[#allocation75_spill] sm:$0xff] }
 0x27d   :  { %v2210_v3 = vmul.f32 %v6679_v59, %v6677_v20  ;;  %v2211_v42 = vmul.f32 %v6682_v8, %v6680_v63  ;;  %v6688_v56 = vmax.f32 %v6687_v40, 0.0  ;;  %v6690_v62 = vld [vmem:[#allocation133_spill] sm:$0xff]  ;;  %v6692_v48 = vld [vmem:[#allocation122_spill] sm:$0xff]  ;;  %v6695_v32 = vld [vmem:[#allocation123_spill] sm:$0xff]  ;;  %2292 = vst.msk [vmem:[%s5844_s5 + $0x220] sm:$0xff] %vm1382_vm3, %v2205_v38 }
 0x27e   :  { %v2212_v53 = vmul.f32 %v6685_v44, %v6683_v60  ;;  %v6691_v43 = vmax.f32 %v6690_v62, 0.0  ;;  %v6693_v33 = vld [vmem:[#allocation134_spill] sm:$0xff]  ;;  %v6696_v57 = vld [vmem:[#allocation55_spill] sm:$0xff]  ;;  %2293 = vst.msk [vmem:[%s5844_s5 + $0x228] sm:$0xff] %vm1382_vm3, %v2206_v5  ;;  %2294 = vst.msk [vmem:[%s5844_s5 + $0x230] sm:$0xff] %vm1382_vm3, %v2207_v23 }
 0x27f   :  { %v2213_v34 = vmul.f32 %v6688_v56, %v6686_v37  ;;  %v6694_v58 = vmax.f32 %v6693_v33, 0.0  ;;  %v6697_v54 = vmax.f32 %v6696_v57, 0.0  ;;  %2295 = vst.msk [vmem:[%s5844_s5 + $0x238] sm:$0xff] %vm1382_vm3, %v2208_v17  ;;  %v6698_v7 = vld [vmem:[#allocation124_spill] sm:$0xff]  ;;  %v6699_v46 = vld [vmem:[#allocation135_spill] sm:$0xff]  ;;  %v6701_v18 = vld [vmem:[#allocation125_spill] sm:$0xff] }
 0x280   :  { %v2214_v28 = vmul.f32 %v6691_v43, %v6689_v47  ;;  %v6700_v31 = vmax.f32 %v6699_v46, 0.0  ;;  %v6702_v27 = vld [vmem:[#allocation136_spill] sm:$0xff]  ;;  %v6704_v50 = vld [vmem:[#allocation93_spill] sm:$0xff]  ;;  %v6708_v24 = vld [vmem:[#allocation138_spill] sm:$0xff]  ;;  %2296 = vst.msk [vmem:[%s5844_s5 + $0x240] sm:$0xff] %vm1382_vm3, %v2209_v14 }
 0x281   :  { %v2215_v12 = vmul.f32 %v6694_v58, %v6692_v48  ;;  %v2216_v52 = vmul.f32 %v6697_v54, %v6695_v32  ;;  %v6703_v2 = vmax.f32 %v6702_v27, 0.0  ;;  %v6705_v26 = vld [vmem:[#allocation137_spill] sm:$0xff]  ;;  %v6709_v29 = vmax.f32 %v6708_v24, 0.0  ;;  %2297 = vst.msk [vmem:[%s5844_s5 + $0x248] sm:$0xff] %vm1382_vm3, %v2210_v3  ;;  %2298 = vst.msk [vmem:[%s5844_s5 + $0x250] sm:$0xff] %vm1382_vm3, %v2211_v42 }
 0x282   :  { %v2217_v51 = vmul.f32 %v6700_v31, %v6698_v7  ;;  %v6706_v16 = vmax.f32 %v6705_v26, 0.0  ;;  %v6707_v0 = vld [vmem:[#allocation97_spill] sm:$0xff]  ;;  %2299 = vst.msk [vmem:[%s5844_s5 + $0x258] sm:$0xff] %vm1382_vm3, %v2212_v53  ;;  %2300 = vst.msk [vmem:[%s5844_s5 + $0x260] sm:$0xff] %vm1382_vm3, %v2213_v34 }
 0x283   :  { %v2218_v15 = vmul.f32 %v6703_v2, %v6701_v18  ;;  %v2220_v11 = vmul.f32 %v6709_v29, %v6707_v0  ;;  %2301 = vst.msk [vmem:[%s5844_s5 + $0x268] sm:$0xff] %vm1382_vm3, %v2214_v28  ;;  %2302 = vst.msk [vmem:[%s5844_s5 + $0x270] sm:$0xff] %vm1382_vm3, %v2215_v12 }
 0x284   :  { %v2219_v61 = vmul.f32 %v6706_v16, %v6704_v50  ;;  %2303 = vst.msk [vmem:[%s5844_s5 + $0x278] sm:$0xff] %vm1382_vm3, %v2216_v52  ;;  %2304 = vst.msk [vmem:[%s5844_s5 + $0x280] sm:$0xff] %vm1382_vm3, %v2217_v51 }
 0x285   :  { %2305 = vst.msk [vmem:[%s5844_s5 + $0x288] sm:$0xff] %vm1382_vm3, %v2218_v15  ;;  %2307 = vst.msk [vmem:[%s5844_s5 + $0x298] sm:$0xff] %vm1382_vm3, %v2220_v11 }
 0x286   :  { %2306 = vst.msk [vmem:[%s5844_s5 + $0x290] sm:$0xff] %vm1382_vm3, %v2219_v61 }

</bundles_post_ra>
